<compile_context>
chip_gen: v7x
topology: tpu7x:2x2x1
jax: 0.10.0
libtpu: 0.0.40
codegen_flags: <defaults>
</compile_context>

<pallas_src>
import functools

import jax
import jax.numpy as jnp
from jax.experimental import pallas as pl
from jax.experimental.pallas import tpu as pltpu

# ---------------- configuration (small, consistent with the module) ---------
BATCH = 2
SEQ = 3
NODES = 8
DIM_IN = 4
DIM_OUT = 32          # >= 16 so the SelfAtt reduction (//16) stays >= 1
CHEB_K = 3
EMBED_DIM = 4
NUM_LAYERS = 1
REDUCTION = 16


# ---------------- static layout of the packed weight arrays -----------------
def _rnd8(v):
    return ((v + 7) // 8) * 8


def _branch_layout(din, co, cheb_k, embed_dim, bn):
    """Static, 8-row-aligned offsets of one AVWGCN's two packed arrays."""
    eco = embed_dim * co
    kd = cheb_k * din
    kd_p = _rnd8(kd)
    lay = {"din": din, "co": co, "eco": eco, "kd": kd}
    # ---- pack E: last dim = embed_dim*co
    lay["ws"] = 0                     # stacked adaptive weight pool (kd, eco)
    lay["ne_rep"] = kd_p              # tiled node-embedding map (bn, eco)
    lay["rows_e"] = kd_p + bn
    # ---- pack C: last dim = co
    q = 0
    lay["rmat"] = q;    q += eco      # R matrix (eco, co)
    lay["bias0"] = q;   q += bn       # tiled ne @ bias_pool (bn, co)
    lay["wcomb"] = q;   q += kd_p     # folded static weights (kd, co)
    lay["bias_st"] = q; q += bn       # folded static bias (bn, co)
    lay["att"] = q;     q += 4 * co   # SelfAtt fc weights, zero-padded
    lay["rows_c"] = q
    return lay


def _pack_branch(p, ne, cheb_static, din, co, cheb_k, embed_dim, batch):
    """Pack one AVWGCN's parameters (plus all hoisted ne-/support-derived
    tensors) into two 2-D arrays: pack_e (cols = embed_dim*co) and
    pack_c (cols = co)."""
    n = ne.shape[0]
    bn = batch * n
    lay = _branch_layout(din, co, cheb_k, embed_dim, bn)
    eco, kd = lay["eco"], lay["kd"]
    f32 = jnp.float32

    # -------- pack E: last dim = embed_dim*co --------
    pack_e = jnp.zeros((lay["rows_e"], eco), f32)
    # stacked adaptive weights: row k*din + i, col d*co + o = weights_pool[d,k,i,o]
    wstack = jnp.transpose(p["weights_pool"], (1, 2, 0, 3)).reshape(kd, eco)
    pack_e = pack_e.at[lay["ws"]:lay["ws"] + kd].set(wstack)
    # ne_rep[b*n+v, d*co+o] = ne[v, d]
    ne_rep = jnp.tile(jnp.repeat(ne.astype(f32), co, axis=1), (batch, 1))
    pack_e = pack_e.at[lay["ne_rep"]:lay["ne_rep"] + bn].set(ne_rep)

    # -------- pack C: last dim = co --------
    pack_c = jnp.zeros((lay["rows_c"], co), f32)
    rmat = jnp.tile(jnp.eye(co, dtype=f32), (embed_dim, 1))      # (eco, co)
    pack_c = pack_c.at[lay["rmat"]:lay["rmat"] + eco].set(rmat)
    bias0 = jnp.tile(ne @ p["bias_pool"], (batch, 1))            # (bn, co)
    pack_c = pack_c.at[lay["bias0"]:lay["bias0"] + bn].set(bias0)
    # Static branch folding: gconv(sup_s @ (init_gconv(xh))) becomes
    #   sum_k (sup_s[k] @ xh) @ (Wi @ Wg_k) + rowsum(sup_s[k]) * (bi @ Wg_k) + bg
    wg = p["gconv_w"]                                            # (K*co, co)
    wcomb = jnp.concatenate(
        [p["init_w"] @ wg[k * co:(k + 1) * co] for k in range(cheb_k)], axis=0)
    pack_c = pack_c.at[lay["wcomb"]:lay["wcomb"] + kd].set(wcomb)
    rs = jnp.sum(cheb_static.astype(f32), axis=2)                # (K, N)
    bb = jnp.stack([p["init_b"] @ wg[k * co:(k + 1) * co]
                    for k in range(cheb_k)], axis=0)             # (K, co)
    bias_st = jnp.einsum("kn,ko->no", rs, bb) + p["gconv_b"]     # (N, co)
    pack_c = pack_c.at[lay["bias_st"]:lay["bias_st"] + bn].set(
        jnp.tile(bias_st, (batch, 1)))
    # SelfAtt fc weights, zero-padded to (co, co) so they live in the same
    # lane-dense pack.  NOTE: correctness relies on the padded columns of
    # s*w1 staying exactly zero (ReLU(0)=0) and the padded rows of s*w2
    # being zero, so the padding never contributes to the gate.
    red = p["s1w1"].shape[1]
    att = lay["att"]
    pack_c = pack_c.at[att:att + co, :red].set(p["s1w1"])
    pack_c = pack_c.at[att + co:att + co + red, 0].set(p["s1w2"][:, 0])
    pack_c = pack_c.at[att + 2 * co:att + 3 * co, :red].set(p["s2w1"])
    pack_c = pack_c.at[att + 3 * co:att + 3 * co + red, 0].set(p["s2w2"][:, 0])
    return pack_e, pack_c, lay


# ---------------- Pallas kernel: one RGCN layer (all timesteps) --------------
def _layer_kernel(x_ref, h0_ref, sup_ref, ge_ref, gc_ref, ue_ref, uc_ref,
                  out_ref, *, seq, batch, nodes, cheb_k, dim_out, g_lay,
                  u_lay):
    f32 = jnp.float32
    bn = batch * nodes

    def dot(a, b):
        return jnp.dot(a, b, preferred_element_type=f32)

    # ---- load every loop-invariant operand from VMEM exactly once ----------
    def load_branch(e_ref, c_ref, lay):
        co, eco, kd = lay["co"], lay["eco"], lay["kd"]
        att = lay["att"]
        return {
            "co": co,
            "ws": e_ref[lay["ws"]:lay["ws"] + kd],               # (kd, eco)
            "ne_rep": e_ref[lay["ne_rep"]:lay["ne_rep"] + bn],   # (bn, eco)
            "rmat": c_ref[lay["rmat"]:lay["rmat"] + eco],        # (eco, co)
            "bias0": c_ref[lay["bias0"]:lay["bias0"] + bn],      # (bn, co)
            "wcomb": c_ref[lay["wcomb"]:lay["wcomb"] + kd],      # (kd, co)
            "bias_st": c_ref[lay["bias_st"]:lay["bias_st"] + bn],
            "w1a": c_ref[att:att + co],
            "w2a": c_ref[att + co:att + 2 * co],
            "w1b": c_ref[att + 2 * co:att + 3 * co],
            "w2b": c_ref[att + 3 * co:att + 4 * co],
        }

    gw = load_branch(ge_ref, gc_ref, g_lay)
    uw = load_branch(ue_ref, uc_ref, u_lay)
    sup_all = sup_ref[...]                     # (2K*bn, bn), learned | static

    def self_att(a, w1p, w2p):
        # per-batch avg-pool over nodes = sublane reduction (no MXU, no masks)
        y = jnp.concatenate(
            [jnp.mean(a[b * nodes:(b + 1) * nodes], axis=0, keepdims=True)
             for b in range(batch)], axis=0)                 # (batch, co)
        hid = jnp.maximum(dot(y, w1p), 0.0)                  # (batch, co)
        s = dot(hid, w2p)[:, 0:1]                            # (batch, 1)
        s = jnp.clip(s / 6.0 + 0.5, 0.0, 1.0)                # hard-sigmoid
        # per-batch scalar gate, re-broadcast without an MXU expand matmul
        return jnp.concatenate(
            [a[b * nodes:(b + 1) * nodes] * s[b:b + 1, 0:1]
             for b in range(batch)], axis=0)                 # (bn, co)

    def avwgcn(xa, xb, w):
        xh = jnp.concatenate([xa, xb], axis=1)               # (bn, din)
        # ONE support application for learned + static, all Chebyshev orders
        sx = dot(sup_all, xh)                                 # (2K*bn, din)
        sxl = jnp.concatenate(
            [sx[k * bn:(k + 1) * bn] for k in range(cheb_k)], axis=1)
        sxs = jnp.concatenate(
            [sx[(cheb_k + k) * bn:(cheb_k + k + 1) * bn]
             for k in range(cheb_k)], axis=1)                 # (bn, K*din)
        # adaptive branch: one wide dot + ne contraction via R matrix
        ys = dot(sxl, w["ws"])                                # (bn, eco)
        g0 = dot(ys * w["ne_rep"], w["rmat"]) + w["bias0"]    # (bn, co)
        # static branch: init_gconv/gconv pre-folded -> one dot
        g1 = dot(sxs, w["wcomb"]) + w["bias_st"]              # (bn, co)
        a0 = jnp.where(g0 >= 0, g0, 0.01 * g0)                # leaky_relu
        a1 = jnp.where(g1 >= 0, g1, 0.01 * g1)
        return (self_att(a0, w["w1a"], w["w2a"])
                + self_att(a1, w["w1b"], w["w2b"]))

    # ---- whole sequence in a single grid step (statically unrolled) --------
    h = h0_ref[...]                                           # (bn, dim_out)
    for t in range(seq):
        x = x_ref[t]                                          # (bn, da)
        zr = jax.nn.sigmoid(avwgcn(x, h, gw))                 # (bn, 2*dim_out)
        z = zr[:, :dim_out]
        r = zr[:, dim_out:]
        hc = jnp.tanh(avwgcn(x, z * h, uw))
        h = r * h + (1.0 - r) * hc
        out_ref[t] = h


def _run_layer(x_fold, h0_fold, sup_all, g_packs, u_packs, *, batch, nodes,
               cheb_k, dim_out):
    seq, bn, _ = x_fold.shape
    ge, gc, g_lay = g_packs
    ue, uc, u_lay = u_packs
    operands = (x_fold, h0_fold, sup_all, ge, gc, ue, uc)

    # explicit VMEM budget: all operands + resident output, with headroom
    total = sum(int(a.size) * a.dtype.itemsize for a in operands)
    total += seq * bn * dim_out * 4
    vmem_limit = min(max(4 * total, 16 * 1024 * 1024), 128 * 1024 * 1024)

    def full(a):
        zeros = (0,) * a.ndim
        return pl.BlockSpec(a.shape, lambda i, _z=zeros: _z)

    kernel = functools.partial(
        _layer_kernel, seq=seq, batch=batch, nodes=nodes, cheb_k=cheb_k,
        dim_out=dim_out, g_lay=g_lay, u_lay=u_lay)

    return pl.pallas_call(
        kernel,
        grid=(1,),
        in_specs=[full(a) for a in operands],
        out_specs=pl.BlockSpec((seq, bn, dim_out), lambda i: (0, 0, 0)),
        out_shape=jax.ShapeDtypeStruct((seq, bn, dim_out), jnp.float32),
        compiler_params=pltpu.CompilerParams(
            dimension_semantics=("arbitrary",),
            vmem_limit_bytes=vmem_limit),
    )(*operands)


# ---------------- wrapper (plain JAX, jitted) --------------------------------
def _cheb_polys(l_tilde, cheb_k):
    n = l_tilde.shape[0]
    polys = [jnp.eye(n, dtype=jnp.float32), l_tilde.astype(jnp.float32)]
    for _ in range(2, cheb_k):
        polys.append(2.0 * (l_tilde @ polys[-1]) - polys[-2])
    return jnp.stack(polys[:cheb_k], axis=0)


def _fold_supports(sup, batch):
    """(K, N, N) -> (K*B*N, B*N): per-k block-diag over batch, row-stacked.
    Fine at these toy sizes; see TODO(synk) at top for production scaling."""
    k, n, _ = sup.shape
    eye_b = jnp.eye(batch, dtype=sup.dtype)
    bd = jnp.einsum("bc,knm->kbncm", eye_b, sup)
    return bd.reshape(k * batch * n, batch * n)


@jax.jit
def rgcn_forward_pallas(layer_params, x, init_state, node_embeddings,
                        learned_tilde, cheb_static):
    batch, seq, nodes, dim_in = x.shape
    dim_out = init_state.shape[-1]
    cheb_k = cheb_static.shape[0]
    embed_dim = node_embeddings.shape[1]

    sup_learned = _cheb_polys(learned_tilde, cheb_k)
    sup_all = jnp.concatenate(
        [_fold_supports(sup_learned, batch),
         _fold_supports(cheb_static.astype(jnp.float32), batch)], axis=0)

    current = jnp.transpose(x, (1, 0, 2, 3)).reshape(
        seq, batch * nodes, dim_in)
    output_hidden = []
    for li, (gate_p, upd_p) in enumerate(layer_params):
        da = dim_in if li == 0 else dim_out
        din = da + dim_out
        g_packs = _pack_branch(gate_p, node_embeddings, cheb_static, din,
                               2 * dim_out, cheb_k, embed_dim, batch)
        u_packs = _pack_branch(upd_p, node_embeddings, cheb_static, din,
                               dim_out, cheb_k, embed_dim, batch)
        h0 = init_state[li].reshape(batch * nodes, dim_out)
        out = _run_layer(current, h0, sup_all, g_packs, u_packs,
                         batch=batch, nodes=nodes, cheb_k=cheb_k,
                         dim_out=dim_out)
        output_hidden.append(out[-1].reshape(batch, nodes, dim_out))
        current = out
    y = current.reshape(seq, batch, nodes, dim_out).transpose(1, 0, 2, 3)
    return y, output_hidden


# ---------------- parameter construction ------------------------------------
def init_avwgcn_params(key, dim_in_total, dim_out, cheb_k, embed_dim,
                       reduction):
    """Canonical (PyTorch-equivalent) parameters; Linear weights stored as
    (in, out) so forward is x @ W + b."""
    red = max(dim_out // reduction, 1)
    ks = jax.random.split(key, 10)

    def nrm(k, shape, fan_in):
        return jax.random.normal(k, shape, jnp.float32) / jnp.sqrt(
            jnp.float32(fan_in))

    return {
        "weights_pool": nrm(ks[0], (embed_dim, cheb_k, dim_in_total, dim_out),
                            cheb_k * dim_in_total),
        "bias_pool": nrm(ks[1], (embed_dim, dim_out), embed_dim),
        "init_w": nrm(ks[2], (dim_in_total, dim_out), dim_in_total),
        "init_b": nrm(ks[3], (dim_out,), dim_in_total),
        "gconv_w": nrm(ks[4], (cheb_k * dim_out, dim_out), cheb_k * dim_out),
        "gconv_b": nrm(ks[5], (dim_out,), cheb_k * dim_out),
        "s1w1": nrm(ks[6], (dim_out, red), dim_out),
        "s1w2": nrm(ks[7], (red, 1), red),
        "s2w1": nrm(ks[8], (dim_out, red), dim_out),
        "s2w2": nrm(ks[9], (red, 1), red),
    }


# ---------------- pure-JAX reference (mirrors the PyTorch code) --------------
def _self_att_ref(x_bcl, w1, w2):
    y = jnp.mean(x_bcl, axis=2)
    hid = jnp.maximum(y @ w1, 0.0)
    s = jnp.clip(hid @ w2 / 6.0 + 0.5, 0.0, 1.0)
    return x_bcl * s[:, :, None]


def _avwgcn_ref(x, ne, sup_l, sup_s, p):
    b, n, _ = x.shape
    weights = jnp.einsum("nd,dkio->nkio", ne, p["weights_pool"])
    bias = ne @ p["bias_pool"]
    x_g = jnp.einsum("knm,bmc->bknc", sup_l, x).transpose(0, 2, 1, 3)
    x_gconv0 = jnp.einsum("bnki,nkio->bno", x_g, weights) + bias
    x0 = x @ p["init_w"] + p["init_b"]
    x_g1 = jnp.einsum("knm,bmc->bknc", sup_s, x0).transpose(0, 2, 1, 3)
    x_g1 = x_g1.reshape(b, n, -1)
    x_gconv1 = x_g1 @ p["gconv_w"] + p["gconv_b"]
    a0 = jnp.where(x_gconv0 >= 0, x_gconv0, 0.01 * x_gconv0)
    a1 = jnp.where(x_gconv1 >= 0, x_gconv1, 0.01 * x_gconv1)
    g0 = _self_att_ref(a0.transpose(0, 2, 1), p["s1w1"], p["s1w2"])
    g1 = _self_att_ref(a1.transpose(0, 2, 1), p["s2w1"], p["s2w2"])
    return (g0 + g1).transpose(0, 2, 1)


def _cell_ref(x, state, ne, sup_l, sup_s, gate_p, upd_p, dim_out):
    zr = jax.nn.sigmoid(
        _avwgcn_ref(jnp.concatenate([x, state], -1), ne, sup_l, sup_s, gate_p))
    z, r = zr[..., :dim_out], zr[..., dim_out:]
    hc = jnp.tanh(
        _avwgcn_ref(jnp.concatenate([x, z * state], -1), ne, sup_l, sup_s,
                    upd_p))
    return r * state + (1.0 - r) * hc


def _cheb_ref(l, k):
    n = l.shape[0]
    polys = [jnp.eye(n, dtype=jnp.float32), l]
    for _ in range(2, k):
        polys.append(2.0 * (l @ polys[-1]) - polys[-2])
    return jnp.stack(polys[:k], 0)


# ---------------- main --------------------------------------------------------
if __name__ == "__main__":
    key = jax.random.PRNGKey(0)
    k_x, k_s, k_ne, k_lt, k_ls, k_p = jax.random.split(key, 6)

    x = jax.random.normal(k_x, (BATCH, SEQ, NODES, DIM_IN), jnp.float32)
    init_state = 0.1 * jax.random.normal(
        k_s, (NUM_LAYERS, BATCH, NODES, DIM_OUT), jnp.float32)
    node_embeddings = jax.random.normal(k_ne, (NODES, EMBED_DIM), jnp.float32)
    a_mat = jax.random.normal(k_lt, (NODES, NODES), jnp.float32)
    learned_tilde = (a_mat + a_mat.T) / (2.0 * NODES)
    b_mat = jax.random.normal(k_ls, (NODES, NODES), jnp.float32)
    l_tilde_static = (b_mat + b_mat.T) / (2.0 * NODES)

    layer_params = []
    pk = k_p
    for li in range(NUM_LAYERS):
        din = DIM_IN if li == 0 else DIM_OUT
        pk, kg, ku = jax.random.split(pk, 3)
        gate_p = init_avwgcn_params(kg, din + DIM_OUT, 2 * DIM_OUT, CHEB_K,
                                    EMBED_DIM, REDUCTION)
        upd_p = init_avwgcn_params(ku, din + DIM_OUT, DIM_OUT, CHEB_K,
                                   EMBED_DIM, REDUCTION)
        layer_params.append((gate_p, upd_p))

    # static "cheb_polynomials" (constructor argument in the PyTorch module)
    cheb_static = _cheb_ref(l_tilde_static, CHEB_K)

    out_pallas, hidden_pallas = rgcn_forward_pallas(
        layer_params, x, init_state, node_embeddings, learned_tilde,
        cheb_static)
    out_pallas = jax.block_until_ready(out_pallas)

    # ---- pure-JAX reference check ----
    sup_l_ref = _cheb_ref(learned_tilde, CHEB_K)
    cur = x
    hidden_ref = []
    for li in range(NUM_LAYERS):
        gate_p, upd_p = layer_params[li]
        state = init_state[li]
        states = []
        for t in range(SEQ):
            state = _cell_ref(cur[:, t], state, node_embeddings, sup_l_ref,
                              cheb_static, gate_p, upd_p, DIM_OUT)
            states.append(state)
        hidden_ref.append(state)
        cur = jnp.stack(states, axis=1)

    err = float(jnp.max(jnp.abs(out_pallas - cur)))
    assert jnp.allclose(out_pallas, cur, atol=1e-4, rtol=1e-4), err
    for hp, hr in zip(hidden_pallas, hidden_ref):
        assert jnp.allclose(hp, hr, atol=1e-4, rtol=1e-4)

    print("KERNEL_OK")
</pallas_src>

<mosaic_0001>
module attributes {stable_mosaic.version = 11 : i64} {
  func.func @_layer_kernel(%arg0: i32, %arg1: memref<3x16x4xf32, #tpu.memory_space<vmem>>, %arg2: memref<16x32xf32, #tpu.memory_space<vmem>>, %arg3: memref<96x16xf32, #tpu.memory_space<vmem>>, %arg4: memref<128x256xf32, #tpu.memory_space<vmem>>, %arg5: memref<656x64xf32, #tpu.memory_space<vmem>>, %arg6: memref<128x128xf32, #tpu.memory_space<vmem>>, %arg7: memref<400x32xf32, #tpu.memory_space<vmem>>, %arg8: memref<3x16x32xf32, #tpu.memory_space<vmem>>) attributes {dimension_semantics = [#tpu.dimension_semantics<arbitrary>], iteration_bounds = array<i64: 1>, scalar_prefetch = 0 : i64, scratch_operands = 0 : i64, tpu.core_type = #tpu.core_type<tc>, window_params = [{pipeline_mode = #tpu.pipeline_mode<synchronous>, transform_indices = @transform_0, window_bounds = array<i64: 3, 16, 4>}, {pipeline_mode = #tpu.pipeline_mode<synchronous>, transform_indices = @transform_1, window_bounds = array<i64: 16, 32>}, {pipeline_mode = #tpu.pipeline_mode<synchronous>, transform_indices = @transform_2, window_bounds = array<i64: 96, 16>}, {pipeline_mode = #tpu.pipeline_mode<synchronous>, transform_indices = @transform_3, window_bounds = array<i64: 128, 256>}, {pipeline_mode = #tpu.pipeline_mode<synchronous>, transform_indices = @transform_4, window_bounds = array<i64: 656, 64>}, {pipeline_mode = #tpu.pipeline_mode<synchronous>, transform_indices = @transform_5, window_bounds = array<i64: 128, 128>}, {pipeline_mode = #tpu.pipeline_mode<synchronous>, transform_indices = @transform_6, window_bounds = array<i64: 400, 32>}, {pipeline_mode = #tpu.pipeline_mode<synchronous>, transform_indices = @transform_7, window_bounds = array<i64: 3, 16, 32>}]} {
    %c0 = arith.constant 0 : index
    %c0_0 = arith.constant 0 : index
    %0 = vector.load %arg4[%c0, %c0_0] : memref<128x256xf32, #tpu.memory_space<vmem>>, vector<108x256xf32>
    %c112 = arith.constant 112 : index
    %c0_1 = arith.constant 0 : index
    %1 = vector.load %arg4[%c112, %c0_1] : memref<128x256xf32, #tpu.memory_space<vmem>>, vector<16x256xf32>
    %c0_2 = arith.constant 0 : index
    %c0_3 = arith.constant 0 : index
    %2 = vector.load %arg5[%c0_2, %c0_3] : memref<656x64xf32, #tpu.memory_space<vmem>>, vector<256x64xf32>
    %c256 = arith.constant 256 : index
    %c0_4 = arith.constant 0 : index
    %3 = vector.load %arg5[%c256, %c0_4] : memref<656x64xf32, #tpu.memory_space<vmem>>, vector<16x64xf32>
    %c272 = arith.constant 272 : index
    %c0_5 = arith.constant 0 : index
    %4 = vector.load %arg5[%c272, %c0_5] : memref<656x64xf32, #tpu.memory_space<vmem>>, vector<108x64xf32>
    %c384 = arith.constant 384 : index
    %c0_6 = arith.constant 0 : index
    %5 = vector.load %arg5[%c384, %c0_6] : memref<656x64xf32, #tpu.memory_space<vmem>>, vector<16x64xf32>
    %c400 = arith.constant 400 : index
    %c0_7 = arith.constant 0 : index
    %6 = vector.load %arg5[%c400, %c0_7] : memref<656x64xf32, #tpu.memory_space<vmem>>, vector<64x64xf32>
    %c464 = arith.constant 464 : index
    %c0_8 = arith.constant 0 : index
    %7 = vector.load %arg5[%c464, %c0_8] : memref<656x64xf32, #tpu.memory_space<vmem>>, vector<64x64xf32>
    %c528 = arith.constant 528 : index
    %c0_9 = arith.constant 0 : index
    %8 = vector.load %arg5[%c528, %c0_9] : memref<656x64xf32, #tpu.memory_space<vmem>>, vector<64x64xf32>
    %c592 = arith.constant 592 : index
    %c0_10 = arith.constant 0 : index
    %9 = vector.load %arg5[%c592, %c0_10] : memref<656x64xf32, #tpu.memory_space<vmem>>, vector<64x64xf32>
    %c0_11 = arith.constant 0 : index
    %c0_12 = arith.constant 0 : index
    %10 = vector.load %arg6[%c0_11, %c0_12] : memref<128x128xf32, #tpu.memory_space<vmem>>, vector<108x128xf32>
    %c112_13 = arith.constant 112 : index
    %c0_14 = arith.constant 0 : index
    %11 = vector.load %arg6[%c112_13, %c0_14] : memref<128x128xf32, #tpu.memory_space<vmem>>, vector<16x128xf32>
    %c0_15 = arith.constant 0 : index
    %c0_16 = arith.constant 0 : index
    %12 = vector.load %arg7[%c0_15, %c0_16] : memref<400x32xf32, #tpu.memory_space<vmem>>, vector<128x32xf32>
    %c128 = arith.constant 128 : index
    %c0_17 = arith.constant 0 : index
    %13 = vector.load %arg7[%c128, %c0_17] : memref<400x32xf32, #tpu.memory_space<vmem>>, vector<16x32xf32>
    %c144 = arith.constant 144 : index
    %c0_18 = arith.constant 0 : index
    %14 = vector.load %arg7[%c144, %c0_18] : memref<400x32xf32, #tpu.memory_space<vmem>>, vector<108x32xf32>
    %c256_19 = arith.constant 256 : index
    %c0_20 = arith.constant 0 : index
    %15 = vector.load %arg7[%c256_19, %c0_20] : memref<400x32xf32, #tpu.memory_space<vmem>>, vector<16x32xf32>
    %c272_21 = arith.constant 272 : index
    %c0_22 = arith.constant 0 : index
    %16 = vector.load %arg7[%c272_21, %c0_22] : memref<400x32xf32, #tpu.memory_space<vmem>>, vector<32x32xf32>
    %c304 = arith.constant 304 : index
    %c0_23 = arith.constant 0 : index
    %17 = vector.load %arg7[%c304, %c0_23] : memref<400x32xf32, #tpu.memory_space<vmem>>, vector<32x32xf32>
    %c336 = arith.constant 336 : index
    %c0_24 = arith.constant 0 : index
    %18 = vector.load %arg7[%c336, %c0_24] : memref<400x32xf32, #tpu.memory_space<vmem>>, vector<32x32xf32>
    %c368 = arith.constant 368 : index
    %c0_25 = arith.constant 0 : index
    %19 = vector.load %arg7[%c368, %c0_25] : memref<400x32xf32, #tpu.memory_space<vmem>>, vector<32x32xf32>
    %c0_26 = arith.constant 0 : index
    %c0_27 = arith.constant 0 : index
    %20 = vector.load %arg3[%c0_26, %c0_27] : memref<96x16xf32, #tpu.memory_space<vmem>>, vector<96x16xf32>
    %c0_28 = arith.constant 0 : index
    %c0_29 = arith.constant 0 : index
    %21 = vector.load %arg2[%c0_28, %c0_29] : memref<16x32xf32, #tpu.memory_space<vmem>>, vector<16x32xf32>
    %c0_30 = arith.constant 0 : index
    %c0_31 = arith.constant 0 : index
    %c0_32 = arith.constant 0 : index
    %22 = vector.load %arg1[%c0_30, %c0_31, %c0_32] : memref<3x16x4xf32, #tpu.memory_space<vmem>>, vector<1x16x4xf32>
    %23 = vector.shape_cast %22 : vector<1x16x4xf32> to vector<16x4xf32>
    %24 = tpu.concatenate %23, %21 in 1 : vector<16x4xf32>, vector<16x32xf32> -> vector<16x36xf32>
    %cst = arith.constant dense<0.000000e+00> : vector<96x36xf32>
    %25 = tpu.matmul %20, %24, %cst {dimension_numbers = #tpu.dot_dimension_numbers<[1], [0], [0], [1], [0, 0, 1, 1], [], []>} : vector<96x16xf32>, vector<16x36xf32>, vector<96x36xf32> -> vector<96x36xf32>
    %26 = vector.extract_strided_slice %25 {offsets = [0, 0], sizes = [16, 36], strides = [1, 1]} : vector<96x36xf32> to vector<16x36xf32>
    %27 = vector.extract_strided_slice %25 {offsets = [16, 0], sizes = [16, 36], strides = [1, 1]} : vector<96x36xf32> to vector<16x36xf32>
    %28 = vector.extract_strided_slice %25 {offsets = [32, 0], sizes = [16, 36], strides = [1, 1]} : vector<96x36xf32> to vector<16x36xf32>
    %29 = tpu.concatenate %26, %27, %28 in 1 : vector<16x36xf32>, vector<16x36xf32>, vector<16x36xf32> -> vector<16x108xf32>
    %30 = vector.extract_strided_slice %25 {offsets = [48, 0], sizes = [16, 36], strides = [1, 1]} : vector<96x36xf32> to vector<16x36xf32>
    %31 = vector.extract_strided_slice %25 {offsets = [64, 0], sizes = [16, 36], strides = [1, 1]} : vector<96x36xf32> to vector<16x36xf32>
    %32 = vector.extract_strided_slice %25 {offsets = [80, 0], sizes = [16, 36], strides = [1, 1]} : vector<96x36xf32> to vector<16x36xf32>
    %33 = tpu.concatenate %30, %31, %32 in 1 : vector<16x36xf32>, vector<16x36xf32>, vector<16x36xf32> -> vector<16x108xf32>
    %cst_33 = arith.constant dense<0.000000e+00> : vector<16x256xf32>
    %34 = tpu.matmul %29, %0, %cst_33 {dimension_numbers = #tpu.dot_dimension_numbers<[1], [0], [0], [1], [0, 0, 1, 1], [], []>} : vector<16x108xf32>, vector<108x256xf32>, vector<16x256xf32> -> vector<16x256xf32>
    %35 = arith.mulf %34, %1 : vector<16x256xf32>
    %cst_34 = arith.constant dense<0.000000e+00> : vector<16x64xf32>
    %36 = tpu.matmul %35, %2, %cst_34 {dimension_numbers = #tpu.dot_dimension_numbers<[1], [0], [0], [1], [0, 0, 1, 1], [], []>} : vector<16x256xf32>, vector<256x64xf32>, vector<16x64xf32> -> vector<16x64xf32>
    %37 = arith.addf %36, %3 : vector<16x64xf32>
    %cst_35 = arith.constant dense<0.000000e+00> : vector<16x64xf32>
    %38 = tpu.matmul %33, %4, %cst_35 {dimension_numbers = #tpu.dot_dimension_numbers<[1], [0], [0], [1], [0, 0, 1, 1], [], []>} : vector<16x108xf32>, vector<108x64xf32>, vector<16x64xf32> -> vector<16x64xf32>
    %39 = arith.addf %38, %5 : vector<16x64xf32>
    %cst_36 = arith.constant 0.000000e+00 : f32
    %40 = vector.broadcast %cst_36 : f32 to vector<16x64xf32>
    %41 = arith.cmpf oge, %37, %40 : vector<16x64xf32>
    %cst_37 = arith.constant 0.00999999977 : f32
    %42 = vector.broadcast %cst_37 : f32 to vector<16x64xf32>
    %43 = arith.mulf %42, %37 : vector<16x64xf32>
    %44 = arith.select %41, %37, %43 : vector<16x64xi1>, vector<16x64xf32>
    %cst_38 = arith.constant 0.000000e+00 : f32
    %45 = vector.broadcast %cst_38 : f32 to vector<16x64xf32>
    %46 = arith.cmpf oge, %39, %45 : vector<16x64xf32>
    %cst_39 = arith.constant 0.00999999977 : f32
    %47 = vector.broadcast %cst_39 : f32 to vector<16x64xf32>
    %48 = arith.mulf %47, %39 : vector<16x64xf32>
    %49 = arith.select %46, %39, %48 : vector<16x64xi1>, vector<16x64xf32>
    %50 = vector.extract_strided_slice %44 {offsets = [0, 0], sizes = [8, 64], strides = [1, 1]} : vector<16x64xf32> to vector<8x64xf32>
    %cst_40 = arith.constant dense<0.000000e+00> : vector<64xf32>
    %51 = vector.multi_reduction <add>, %50, %cst_40 [0] : vector<8x64xf32> to vector<64xf32>
    %52 = vector.shape_cast %51 : vector<64xf32> to vector<1x64xf32>
    %cst_41 = arith.constant 8.000000e+00 : f32
    %53 = vector.broadcast %cst_41 : f32 to vector<1x64xf32>
    %54 = arith.divf %52, %53 : vector<1x64xf32>
    %55 = vector.extract_strided_slice %44 {offsets = [8, 0], sizes = [8, 64], strides = [1, 1]} : vector<16x64xf32> to vector<8x64xf32>
    %cst_42 = arith.constant dense<0.000000e+00> : vector<64xf32>
    %56 = vector.multi_reduction <add>, %55, %cst_42 [0] : vector<8x64xf32> to vector<64xf32>
    %57 = vector.shape_cast %56 : vector<64xf32> to vector<1x64xf32>
    %cst_43 = arith.constant 8.000000e+00 : f32
    %58 = vector.broadcast %cst_43 : f32 to vector<1x64xf32>
    %59 = arith.divf %57, %58 : vector<1x64xf32>
    %60 = tpu.concatenate %54, %59 in 0 : vector<1x64xf32>, vector<1x64xf32> -> vector<2x64xf32>
    %cst_44 = arith.constant dense<0.000000e+00> : vector<2x64xf32>
    %61 = tpu.matmul %60, %6, %cst_44 {dimension_numbers = #tpu.dot_dimension_numbers<[1], [0], [0], [1], [0, 0, 1, 1], [], []>} : vector<2x64xf32>, vector<64x64xf32>, vector<2x64xf32> -> vector<2x64xf32>
    %cst_45 = arith.constant 0.000000e+00 : f32
    %62 = vector.broadcast %cst_45 : f32 to vector<2x64xf32>
    %63 = arith.maximumf %61, %62 : vector<2x64xf32>
    %cst_46 = arith.constant dense<0.000000e+00> : vector<2x64xf32>
    %64 = tpu.matmul %63, %7, %cst_46 {dimension_numbers = #tpu.dot_dimension_numbers<[1], [0], [0], [1], [0, 0, 1, 1], [], []>} : vector<2x64xf32>, vector<64x64xf32>, vector<2x64xf32> -> vector<2x64xf32>
    %65 = vector.extract_strided_slice %64 {offsets = [0, 0], sizes = [2, 1], strides = [1, 1]} : vector<2x64xf32> to vector<2x1xf32>
    %cst_47 = arith.constant 6.000000e+00 : f32
    %66 = vector.broadcast %cst_47 : f32 to vector<2x1xf32>
    %67 = arith.divf %65, %66 : vector<2x1xf32>
    %cst_48 = arith.constant 5.000000e-01 : f32
    %68 = vector.broadcast %cst_48 : f32 to vector<2x1xf32>
    %69 = arith.addf %67, %68 : vector<2x1xf32>
    %cst_49 = arith.constant 0.000000e+00 : f32
    %cst_50 = arith.constant 1.000000e+00 : f32
    %70 = vector.broadcast %cst_49 : f32 to vector<2x1xf32>
    %71 = arith.maximumf %70, %69 : vector<2x1xf32>
    %72 = vector.broadcast %cst_50 : f32 to vector<2x1xf32>
    %73 = arith.minimumf %72, %71 : vector<2x1xf32>
    %74 = vector.extract_strided_slice %44 {offsets = [0, 0], sizes = [8, 64], strides = [1, 1]} : vector<16x64xf32> to vector<8x64xf32>
    %75 = vector.extract_strided_slice %73 {offsets = [0, 0], sizes = [1, 1], strides = [1, 1]} : vector<2x1xf32> to vector<1x1xf32>
    %76 = vector.broadcast %75 : vector<1x1xf32> to vector<8x64xf32>
    %77 = arith.mulf %74, %76 : vector<8x64xf32>
    %78 = vector.extract_strided_slice %44 {offsets = [8, 0], sizes = [8, 64], strides = [1, 1]} : vector<16x64xf32> to vector<8x64xf32>
    %79 = vector.extract_strided_slice %73 {offsets = [1, 0], sizes = [1, 1], strides = [1, 1]} : vector<2x1xf32> to vector<1x1xf32>
    %80 = vector.broadcast %79 : vector<1x1xf32> to vector<8x64xf32>
    %81 = arith.mulf %78, %80 : vector<8x64xf32>
    %82 = tpu.concatenate %77, %81 in 0 : vector<8x64xf32>, vector<8x64xf32> -> vector<16x64xf32>
    %83 = vector.extract_strided_slice %49 {offsets = [0, 0], sizes = [8, 64], strides = [1, 1]} : vector<16x64xf32> to vector<8x64xf32>
    %cst_51 = arith.constant dense<0.000000e+00> : vector<64xf32>
    %84 = vector.multi_reduction <add>, %83, %cst_51 [0] : vector<8x64xf32> to vector<64xf32>
    %85 = vector.shape_cast %84 : vector<64xf32> to vector<1x64xf32>
    %cst_52 = arith.constant 8.000000e+00 : f32
    %86 = vector.broadcast %cst_52 : f32 to vector<1x64xf32>
    %87 = arith.divf %85, %86 : vector<1x64xf32>
    %88 = vector.extract_strided_slice %49 {offsets = [8, 0], sizes = [8, 64], strides = [1, 1]} : vector<16x64xf32> to vector<8x64xf32>
    %cst_53 = arith.constant dense<0.000000e+00> : vector<64xf32>
    %89 = vector.multi_reduction <add>, %88, %cst_53 [0] : vector<8x64xf32> to vector<64xf32>
    %90 = vector.shape_cast %89 : vector<64xf32> to vector<1x64xf32>
    %cst_54 = arith.constant 8.000000e+00 : f32
    %91 = vector.broadcast %cst_54 : f32 to vector<1x64xf32>
    %92 = arith.divf %90, %91 : vector<1x64xf32>
    %93 = tpu.concatenate %87, %92 in 0 : vector<1x64xf32>, vector<1x64xf32> -> vector<2x64xf32>
    %cst_55 = arith.constant dense<0.000000e+00> : vector<2x64xf32>
    %94 = tpu.matmul %93, %8, %cst_55 {dimension_numbers = #tpu.dot_dimension_numbers<[1], [0], [0], [1], [0, 0, 1, 1], [], []>} : vector<2x64xf32>, vector<64x64xf32>, vector<2x64xf32> -> vector<2x64xf32>
    %cst_56 = arith.constant 0.000000e+00 : f32
    %95 = vector.broadcast %cst_56 : f32 to vector<2x64xf32>
    %96 = arith.maximumf %94, %95 : vector<2x64xf32>
    %cst_57 = arith.constant dense<0.000000e+00> : vector<2x64xf32>
    %97 = tpu.matmul %96, %9, %cst_57 {dimension_numbers = #tpu.dot_dimension_numbers<[1], [0], [0], [1], [0, 0, 1, 1], [], []>} : vector<2x64xf32>, vector<64x64xf32>, vector<2x64xf32> -> vector<2x64xf32>
    %98 = vector.extract_strided_slice %97 {offsets = [0, 0], sizes = [2, 1], strides = [1, 1]} : vector<2x64xf32> to vector<2x1xf32>
    %cst_58 = arith.constant 6.000000e+00 : f32
    %99 = vector.broadcast %cst_58 : f32 to vector<2x1xf32>
    %100 = arith.divf %98, %99 : vector<2x1xf32>
    %cst_59 = arith.constant 5.000000e-01 : f32
    %101 = vector.broadcast %cst_59 : f32 to vector<2x1xf32>
    %102 = arith.addf %100, %101 : vector<2x1xf32>
    %cst_60 = arith.constant 0.000000e+00 : f32
    %cst_61 = arith.constant 1.000000e+00 : f32
    %103 = vector.broadcast %cst_60 : f32 to vector<2x1xf32>
    %104 = arith.maximumf %103, %102 : vector<2x1xf32>
    %105 = vector.broadcast %cst_61 : f32 to vector<2x1xf32>
    %106 = arith.minimumf %105, %104 : vector<2x1xf32>
    %107 = vector.extract_strided_slice %49 {offsets = [0, 0], sizes = [8, 64], strides = [1, 1]} : vector<16x64xf32> to vector<8x64xf32>
    %108 = vector.extract_strided_slice %106 {offsets = [0, 0], sizes = [1, 1], strides = [1, 1]} : vector<2x1xf32> to vector<1x1xf32>
    %109 = vector.broadcast %108 : vector<1x1xf32> to vector<8x64xf32>
    %110 = arith.mulf %107, %109 : vector<8x64xf32>
    %111 = vector.extract_strided_slice %49 {offsets = [8, 0], sizes = [8, 64], strides = [1, 1]} : vector<16x64xf32> to vector<8x64xf32>
    %112 = vector.extract_strided_slice %106 {offsets = [1, 0], sizes = [1, 1], strides = [1, 1]} : vector<2x1xf32> to vector<1x1xf32>
    %113 = vector.broadcast %112 : vector<1x1xf32> to vector<8x64xf32>
    %114 = arith.mulf %111, %113 : vector<8x64xf32>
    %115 = tpu.concatenate %110, %114 in 0 : vector<8x64xf32>, vector<8x64xf32> -> vector<16x64xf32>
    %116 = arith.addf %82, %115 : vector<16x64xf32>
    %117 = arith.negf %116 : vector<16x64xf32>
    %118 = math.exp %117 : vector<16x64xf32>
    %cst_62 = arith.constant 1.000000e+00 : f32
    %119 = vector.broadcast %cst_62 : f32 to vector<16x64xf32>
    %120 = arith.addf %119, %118 : vector<16x64xf32>
    %121 = arith.divf %119, %120 : vector<16x64xf32>
    %122 = vector.extract_strided_slice %121 {offsets = [0, 0], sizes = [16, 32], strides = [1, 1]} : vector<16x64xf32> to vector<16x32xf32>
    %123 = vector.extract_strided_slice %121 {offsets = [0, 32], sizes = [16, 32], strides = [1, 1]} : vector<16x64xf32> to vector<16x32xf32>
    %124 = arith.mulf %122, %21 : vector<16x32xf32>
    %125 = tpu.concatenate %23, %124 in 1 : vector<16x4xf32>, vector<16x32xf32> -> vector<16x36xf32>
    %cst_63 = arith.constant dense<0.000000e+00> : vector<96x36xf32>
    %126 = tpu.matmul %20, %125, %cst_63 {dimension_numbers = #tpu.dot_dimension_numbers<[1], [0], [0], [1], [0, 0, 1, 1], [], []>} : vector<96x16xf32>, vector<16x36xf32>, vector<96x36xf32> -> vector<96x36xf32>
    %127 = vector.extract_strided_slice %126 {offsets = [0, 0], sizes = [16, 36], strides = [1, 1]} : vector<96x36xf32> to vector<16x36xf32>
    %128 = vector.extract_strided_slice %126 {offsets = [16, 0], sizes = [16, 36], strides = [1, 1]} : vector<96x36xf32> to vector<16x36xf32>
    %129 = vector.extract_strided_slice %126 {offsets = [32, 0], sizes = [16, 36], strides = [1, 1]} : vector<96x36xf32> to vector<16x36xf32>
    %130 = tpu.concatenate %127, %128, %129 in 1 : vector<16x36xf32>, vector<16x36xf32>, vector<16x36xf32> -> vector<16x108xf32>
    %131 = vector.extract_strided_slice %126 {offsets = [48, 0], sizes = [16, 36], strides = [1, 1]} : vector<96x36xf32> to vector<16x36xf32>
    %132 = vector.extract_strided_slice %126 {offsets = [64, 0], sizes = [16, 36], strides = [1, 1]} : vector<96x36xf32> to vector<16x36xf32>
    %133 = vector.extract_strided_slice %126 {offsets = [80, 0], sizes = [16, 36], strides = [1, 1]} : vector<96x36xf32> to vector<16x36xf32>
    %134 = tpu.concatenate %131, %132, %133 in 1 : vector<16x36xf32>, vector<16x36xf32>, vector<16x36xf32> -> vector<16x108xf32>
    %cst_64 = arith.constant dense<0.000000e+00> : vector<16x128xf32>
    %135 = tpu.matmul %130, %10, %cst_64 {dimension_numbers = #tpu.dot_dimension_numbers<[1], [0], [0], [1], [0, 0, 1, 1], [], []>} : vector<16x108xf32>, vector<108x128xf32>, vector<16x128xf32> -> vector<16x128xf32>
    %136 = arith.mulf %135, %11 : vector<16x128xf32>
    %cst_65 = arith.constant dense<0.000000e+00> : vector<16x32xf32>
    %137 = tpu.matmul %136, %12, %cst_65 {dimension_numbers = #tpu.dot_dimension_numbers<[1], [0], [0], [1], [0, 0, 1, 1], [], []>} : vector<16x128xf32>, vector<128x32xf32>, vector<16x32xf32> -> vector<16x32xf32>
    %138 = arith.addf %137, %13 : vector<16x32xf32>
    %cst_66 = arith.constant dense<0.000000e+00> : vector<16x32xf32>
    %139 = tpu.matmul %134, %14, %cst_66 {dimension_numbers = #tpu.dot_dimension_numbers<[1], [0], [0], [1], [0, 0, 1, 1], [], []>} : vector<16x108xf32>, vector<108x32xf32>, vector<16x32xf32> -> vector<16x32xf32>
    %140 = arith.addf %139, %15 : vector<16x32xf32>
    %cst_67 = arith.constant 0.000000e+00 : f32
    %141 = vector.broadcast %cst_67 : f32 to vector<16x32xf32>
    %142 = arith.cmpf oge, %138, %141 : vector<16x32xf32>
    %cst_68 = arith.constant 0.00999999977 : f32
    %143 = vector.broadcast %cst_68 : f32 to vector<16x32xf32>
    %144 = arith.mulf %143, %138 : vector<16x32xf32>
    %145 = arith.select %142, %138, %144 : vector<16x32xi1>, vector<16x32xf32>
    %cst_69 = arith.constant 0.000000e+00 : f32
    %146 = vector.broadcast %cst_69 : f32 to vector<16x32xf32>
    %147 = arith.cmpf oge, %140, %146 : vector<16x32xf32>
    %cst_70 = arith.constant 0.00999999977 : f32
    %148 = vector.broadcast %cst_70 : f32 to vector<16x32xf32>
    %149 = arith.mulf %148, %140 : vector<16x32xf32>
    %150 = arith.select %147, %140, %149 : vector<16x32xi1>, vector<16x32xf32>
    %151 = vector.extract_strided_slice %145 {offsets = [0, 0], sizes = [8, 32], strides = [1, 1]} : vector<16x32xf32> to vector<8x32xf32>
    %cst_71 = arith.constant dense<0.000000e+00> : vector<32xf32>
    %152 = vector.multi_reduction <add>, %151, %cst_71 [0] : vector<8x32xf32> to vector<32xf32>
    %153 = vector.shape_cast %152 : vector<32xf32> to vector<1x32xf32>
    %cst_72 = arith.constant 8.000000e+00 : f32
    %154 = vector.broadcast %cst_72 : f32 to vector<1x32xf32>
    %155 = arith.divf %153, %154 : vector<1x32xf32>
    %156 = vector.extract_strided_slice %145 {offsets = [8, 0], sizes = [8, 32], strides = [1, 1]} : vector<16x32xf32> to vector<8x32xf32>
    %cst_73 = arith.constant dense<0.000000e+00> : vector<32xf32>
    %157 = vector.multi_reduction <add>, %156, %cst_73 [0] : vector<8x32xf32> to vector<32xf32>
    %158 = vector.shape_cast %157 : vector<32xf32> to vector<1x32xf32>
    %cst_74 = arith.constant 8.000000e+00 : f32
    %159 = vector.broadcast %cst_74 : f32 to vector<1x32xf32>
    %160 = arith.divf %158, %159 : vector<1x32xf32>
    %161 = tpu.concatenate %155, %160 in 0 : vector<1x32xf32>, vector<1x32xf32> -> vector<2x32xf32>
    %cst_75 = arith.constant dense<0.000000e+00> : vector<2x32xf32>
    %162 = tpu.matmul %161, %16, %cst_75 {dimension_numbers = #tpu.dot_dimension_numbers<[1], [0], [0], [1], [0, 0, 1, 1], [], []>} : vector<2x32xf32>, vector<32x32xf32>, vector<2x32xf32> -> vector<2x32xf32>
    %cst_76 = arith.constant 0.000000e+00 : f32
    %163 = vector.broadcast %cst_76 : f32 to vector<2x32xf32>
    %164 = arith.maximumf %162, %163 : vector<2x32xf32>
    %cst_77 = arith.constant dense<0.000000e+00> : vector<2x32xf32>
    %165 = tpu.matmul %164, %17, %cst_77 {dimension_numbers = #tpu.dot_dimension_numbers<[1], [0], [0], [1], [0, 0, 1, 1], [], []>} : vector<2x32xf32>, vector<32x32xf32>, vector<2x32xf32> -> vector<2x32xf32>
    %166 = vector.extract_strided_slice %165 {offsets = [0, 0], sizes = [2, 1], strides = [1, 1]} : vector<2x32xf32> to vector<2x1xf32>
    %cst_78 = arith.constant 6.000000e+00 : f32
    %167 = vector.broadcast %cst_78 : f32 to vector<2x1xf32>
    %168 = arith.divf %166, %167 : vector<2x1xf32>
    %cst_79 = arith.constant 5.000000e-01 : f32
    %169 = vector.broadcast %cst_79 : f32 to vector<2x1xf32>
    %170 = arith.addf %168, %169 : vector<2x1xf32>
    %cst_80 = arith.constant 0.000000e+00 : f32
    %cst_81 = arith.constant 1.000000e+00 : f32
    %171 = vector.broadcast %cst_80 : f32 to vector<2x1xf32>
    %172 = arith.maximumf %171, %170 : vector<2x1xf32>
    %173 = vector.broadcast %cst_81 : f32 to vector<2x1xf32>
    %174 = arith.minimumf %173, %172 : vector<2x1xf32>
    %175 = vector.extract_strided_slice %145 {offsets = [0, 0], sizes = [8, 32], strides = [1, 1]} : vector<16x32xf32> to vector<8x32xf32>
    %176 = vector.extract_strided_slice %174 {offsets = [0, 0], sizes = [1, 1], strides = [1, 1]} : vector<2x1xf32> to vector<1x1xf32>
    %177 = vector.broadcast %176 : vector<1x1xf32> to vector<8x32xf32>
    %178 = arith.mulf %175, %177 : vector<8x32xf32>
    %179 = vector.extract_strided_slice %145 {offsets = [8, 0], sizes = [8, 32], strides = [1, 1]} : vector<16x32xf32> to vector<8x32xf32>
    %180 = vector.extract_strided_slice %174 {offsets = [1, 0], sizes = [1, 1], strides = [1, 1]} : vector<2x1xf32> to vector<1x1xf32>
    %181 = vector.broadcast %180 : vector<1x1xf32> to vector<8x32xf32>
    %182 = arith.mulf %179, %181 : vector<8x32xf32>
    %183 = tpu.concatenate %178, %182 in 0 : vector<8x32xf32>, vector<8x32xf32> -> vector<16x32xf32>
    %184 = vector.extract_strided_slice %150 {offsets = [0, 0], sizes = [8, 32], strides = [1, 1]} : vector<16x32xf32> to vector<8x32xf32>
    %cst_82 = arith.constant dense<0.000000e+00> : vector<32xf32>
    %185 = vector.multi_reduction <add>, %184, %cst_82 [0] : vector<8x32xf32> to vector<32xf32>
    %186 = vector.shape_cast %185 : vector<32xf32> to vector<1x32xf32>
    %cst_83 = arith.constant 8.000000e+00 : f32
    %187 = vector.broadcast %cst_83 : f32 to vector<1x32xf32>
    %188 = arith.divf %186, %187 : vector<1x32xf32>
    %189 = vector.extract_strided_slice %150 {offsets = [8, 0], sizes = [8, 32], strides = [1, 1]} : vector<16x32xf32> to vector<8x32xf32>
    %cst_84 = arith.constant dense<0.000000e+00> : vector<32xf32>
    %190 = vector.multi_reduction <add>, %189, %cst_84 [0] : vector<8x32xf32> to vector<32xf32>
    %191 = vector.shape_cast %190 : vector<32xf32> to vector<1x32xf32>
    %cst_85 = arith.constant 8.000000e+00 : f32
    %192 = vector.broadcast %cst_85 : f32 to vector<1x32xf32>
    %193 = arith.divf %191, %192 : vector<1x32xf32>
    %194 = tpu.concatenate %188, %193 in 0 : vector<1x32xf32>, vector<1x32xf32> -> vector<2x32xf32>
    %cst_86 = arith.constant dense<0.000000e+00> : vector<2x32xf32>
    %195 = tpu.matmul %194, %18, %cst_86 {dimension_numbers = #tpu.dot_dimension_numbers<[1], [0], [0], [1], [0, 0, 1, 1], [], []>} : vector<2x32xf32>, vector<32x32xf32>, vector<2x32xf32> -> vector<2x32xf32>
    %cst_87 = arith.constant 0.000000e+00 : f32
    %196 = vector.broadcast %cst_87 : f32 to vector<2x32xf32>
    %197 = arith.maximumf %195, %196 : vector<2x32xf32>
    %cst_88 = arith.constant dense<0.000000e+00> : vector<2x32xf32>
    %198 = tpu.matmul %197, %19, %cst_88 {dimension_numbers = #tpu.dot_dimension_numbers<[1], [0], [0], [1], [0, 0, 1, 1], [], []>} : vector<2x32xf32>, vector<32x32xf32>, vector<2x32xf32> -> vector<2x32xf32>
    %199 = vector.extract_strided_slice %198 {offsets = [0, 0], sizes = [2, 1], strides = [1, 1]} : vector<2x32xf32> to vector<2x1xf32>
    %cst_89 = arith.constant 6.000000e+00 : f32
    %200 = vector.broadcast %cst_89 : f32 to vector<2x1xf32>
    %201 = arith.divf %199, %200 : vector<2x1xf32>
    %cst_90 = arith.constant 5.000000e-01 : f32
    %202 = vector.broadcast %cst_90 : f32 to vector<2x1xf32>
    %203 = arith.addf %201, %202 : vector<2x1xf32>
    %cst_91 = arith.constant 0.000000e+00 : f32
    %cst_92 = arith.constant 1.000000e+00 : f32
    %204 = vector.broadcast %cst_91 : f32 to vector<2x1xf32>
    %205 = arith.maximumf %204, %203 : vector<2x1xf32>
    %206 = vector.broadcast %cst_92 : f32 to vector<2x1xf32>
    %207 = arith.minimumf %206, %205 : vector<2x1xf32>
    %208 = vector.extract_strided_slice %150 {offsets = [0, 0], sizes = [8, 32], strides = [1, 1]} : vector<16x32xf32> to vector<8x32xf32>
    %209 = vector.extract_strided_slice %207 {offsets = [0, 0], sizes = [1, 1], strides = [1, 1]} : vector<2x1xf32> to vector<1x1xf32>
    %210 = vector.broadcast %209 : vector<1x1xf32> to vector<8x32xf32>
    %211 = arith.mulf %208, %210 : vector<8x32xf32>
    %212 = vector.extract_strided_slice %150 {offsets = [8, 0], sizes = [8, 32], strides = [1, 1]} : vector<16x32xf32> to vector<8x32xf32>
    %213 = vector.extract_strided_slice %207 {offsets = [1, 0], sizes = [1, 1], strides = [1, 1]} : vector<2x1xf32> to vector<1x1xf32>
    %214 = vector.broadcast %213 : vector<1x1xf32> to vector<8x32xf32>
    %215 = arith.mulf %212, %214 : vector<8x32xf32>
    %216 = tpu.concatenate %211, %215 in 0 : vector<8x32xf32>, vector<8x32xf32> -> vector<16x32xf32>
    %217 = arith.addf %183, %216 : vector<16x32xf32>
    %218 = math.tanh %217 : vector<16x32xf32>
    %219 = arith.mulf %123, %21 : vector<16x32xf32>
    %cst_93 = arith.constant 1.000000e+00 : f32
    %220 = vector.broadcast %cst_93 : f32 to vector<16x32xf32>
    %221 = arith.subf %220, %123 : vector<16x32xf32>
    %222 = arith.mulf %221, %218 : vector<16x32xf32>
    %223 = arith.addf %219, %222 : vector<16x32xf32>
    %c0_94 = arith.constant 0 : index
    %c0_95 = arith.constant 0 : index
    %c0_96 = arith.constant 0 : index
    %224 = vector.load %arg8[%c0_94, %c0_95, %c0_96] : memref<3x16x32xf32, #tpu.memory_space<vmem>>, vector<1x16x32xf32>
    %225 = vector.shape_cast %224 : vector<1x16x32xf32> to vector<16x32xf32>
    %226 = vector.shape_cast %223 : vector<16x32xf32> to vector<1x16x32xf32>
    tpu.vector_store %arg8[%c0_94, %c0_95, %c0_96], %226 {strides = array<i32>} : memref<3x16x32xf32, #tpu.memory_space<vmem>>, vector<1x16x32xf32>,
    %c1 = arith.constant 1 : index
    %c0_97 = arith.constant 0 : index
    %c0_98 = arith.constant 0 : index
    %227 = vector.load %arg1[%c1, %c0_97, %c0_98] : memref<3x16x4xf32, #tpu.memory_space<vmem>>, vector<1x16x4xf32>
    %228 = vector.shape_cast %227 : vector<1x16x4xf32> to vector<16x4xf32>
    %229 = tpu.concatenate %228, %223 in 1 : vector<16x4xf32>, vector<16x32xf32> -> vector<16x36xf32>
    %cst_99 = arith.constant dense<0.000000e+00> : vector<96x36xf32>
    %230 = tpu.matmul %20, %229, %cst_99 {dimension_numbers = #tpu.dot_dimension_numbers<[1], [0], [0], [1], [0, 0, 1, 1], [], []>} : vector<96x16xf32>, vector<16x36xf32>, vector<96x36xf32> -> vector<96x36xf32>
    %231 = vector.extract_strided_slice %230 {offsets = [0, 0], sizes = [16, 36], strides = [1, 1]} : vector<96x36xf32> to vector<16x36xf32>
    %232 = vector.extract_strided_slice %230 {offsets = [16, 0], sizes = [16, 36], strides = [1, 1]} : vector<96x36xf32> to vector<16x36xf32>
    %233 = vector.extract_strided_slice %230 {offsets = [32, 0], sizes = [16, 36], strides = [1, 1]} : vector<96x36xf32> to vector<16x36xf32>
    %234 = tpu.concatenate %231, %232, %233 in 1 : vector<16x36xf32>, vector<16x36xf32>, vector<16x36xf32> -> vector<16x108xf32>
    %235 = vector.extract_strided_slice %230 {offsets = [48, 0], sizes = [16, 36], strides = [1, 1]} : vector<96x36xf32> to vector<16x36xf32>
    %236 = vector.extract_strided_slice %230 {offsets = [64, 0], sizes = [16, 36], strides = [1, 1]} : vector<96x36xf32> to vector<16x36xf32>
    %237 = vector.extract_strided_slice %230 {offsets = [80, 0], sizes = [16, 36], strides = [1, 1]} : vector<96x36xf32> to vector<16x36xf32>
    %238 = tpu.concatenate %235, %236, %237 in 1 : vector<16x36xf32>, vector<16x36xf32>, vector<16x36xf32> -> vector<16x108xf32>
    %cst_100 = arith.constant dense<0.000000e+00> : vector<16x256xf32>
    %239 = tpu.matmul %234, %0, %cst_100 {dimension_numbers = #tpu.dot_dimension_numbers<[1], [0], [0], [1], [0, 0, 1, 1], [], []>} : vector<16x108xf32>, vector<108x256xf32>, vector<16x256xf32> -> vector<16x256xf32>
    %240 = arith.mulf %239, %1 : vector<16x256xf32>
    %cst_101 = arith.constant dense<0.000000e+00> : vector<16x64xf32>
    %241 = tpu.matmul %240, %2, %cst_101 {dimension_numbers = #tpu.dot_dimension_numbers<[1], [0], [0], [1], [0, 0, 1, 1], [], []>} : vector<16x256xf32>, vector<256x64xf32>, vector<16x64xf32> -> vector<16x64xf32>
    %242 = arith.addf %241, %3 : vector<16x64xf32>
    %cst_102 = arith.constant dense<0.000000e+00> : vector<16x64xf32>
    %243 = tpu.matmul %238, %4, %cst_102 {dimension_numbers = #tpu.dot_dimension_numbers<[1], [0], [0], [1], [0, 0, 1, 1], [], []>} : vector<16x108xf32>, vector<108x64xf32>, vector<16x64xf32> -> vector<16x64xf32>
    %244 = arith.addf %243, %5 : vector<16x64xf32>
    %cst_103 = arith.constant 0.000000e+00 : f32
    %245 = vector.broadcast %cst_103 : f32 to vector<16x64xf32>
    %246 = arith.cmpf oge, %242, %245 : vector<16x64xf32>
    %cst_104 = arith.constant 0.00999999977 : f32
    %247 = vector.broadcast %cst_104 : f32 to vector<16x64xf32>
    %248 = arith.mulf %247, %242 : vector<16x64xf32>
    %249 = arith.select %246, %242, %248 : vector<16x64xi1>, vector<16x64xf32>
    %cst_105 = arith.constant 0.000000e+00 : f32
    %250 = vector.broadcast %cst_105 : f32 to vector<16x64xf32>
    %251 = arith.cmpf oge, %244, %250 : vector<16x64xf32>
    %cst_106 = arith.constant 0.00999999977 : f32
    %252 = vector.broadcast %cst_106 : f32 to vector<16x64xf32>
    %253 = arith.mulf %252, %244 : vector<16x64xf32>
    %254 = arith.select %251, %244, %253 : vector<16x64xi1>, vector<16x64xf32>
    %255 = vector.extract_strided_slice %249 {offsets = [0, 0], sizes = [8, 64], strides = [1, 1]} : vector<16x64xf32> to vector<8x64xf32>
    %cst_107 = arith.constant dense<0.000000e+00> : vector<64xf32>
    %256 = vector.multi_reduction <add>, %255, %cst_107 [0] : vector<8x64xf32> to vector<64xf32>
    %257 = vector.shape_cast %256 : vector<64xf32> to vector<1x64xf32>
    %cst_108 = arith.constant 8.000000e+00 : f32
    %258 = vector.broadcast %cst_108 : f32 to vector<1x64xf32>
    %259 = arith.divf %257, %258 : vector<1x64xf32>
    %260 = vector.extract_strided_slice %249 {offsets = [8, 0], sizes = [8, 64], strides = [1, 1]} : vector<16x64xf32> to vector<8x64xf32>
    %cst_109 = arith.constant dense<0.000000e+00> : vector<64xf32>
    %261 = vector.multi_reduction <add>, %260, %cst_109 [0] : vector<8x64xf32> to vector<64xf32>
    %262 = vector.shape_cast %261 : vector<64xf32> to vector<1x64xf32>
    %cst_110 = arith.constant 8.000000e+00 : f32
    %263 = vector.broadcast %cst_110 : f32 to vector<1x64xf32>
    %264 = arith.divf %262, %263 : vector<1x64xf32>
    %265 = tpu.concatenate %259, %264 in 0 : vector<1x64xf32>, vector<1x64xf32> -> vector<2x64xf32>
    %cst_111 = arith.constant dense<0.000000e+00> : vector<2x64xf32>
    %266 = tpu.matmul %265, %6, %cst_111 {dimension_numbers = #tpu.dot_dimension_numbers<[1], [0], [0], [1], [0, 0, 1, 1], [], []>} : vector<2x64xf32>, vector<64x64xf32>, vector<2x64xf32> -> vector<2x64xf32>
    %cst_112 = arith.constant 0.000000e+00 : f32
    %267 = vector.broadcast %cst_112 : f32 to vector<2x64xf32>
    %268 = arith.maximumf %266, %267 : vector<2x64xf32>
    %cst_113 = arith.constant dense<0.000000e+00> : vector<2x64xf32>
    %269 = tpu.matmul %268, %7, %cst_113 {dimension_numbers = #tpu.dot_dimension_numbers<[1], [0], [0], [1], [0, 0, 1, 1], [], []>} : vector<2x64xf32>, vector<64x64xf32>, vector<2x64xf32> -> vector<2x64xf32>
    %270 = vector.extract_strided_slice %269 {offsets = [0, 0], sizes = [2, 1], strides = [1, 1]} : vector<2x64xf32> to vector<2x1xf32>
    %cst_114 = arith.constant 6.000000e+00 : f32
    %271 = vector.broadcast %cst_114 : f32 to vector<2x1xf32>
    %272 = arith.divf %270, %271 : vector<2x1xf32>
    %cst_115 = arith.constant 5.000000e-01 : f32
    %273 = vector.broadcast %cst_115 : f32 to vector<2x1xf32>
    %274 = arith.addf %272, %273 : vector<2x1xf32>
    %cst_116 = arith.constant 0.000000e+00 : f32
    %cst_117 = arith.constant 1.000000e+00 : f32
    %275 = vector.broadcast %cst_116 : f32 to vector<2x1xf32>
    %276 = arith.maximumf %275, %274 : vector<2x1xf32>
    %277 = vector.broadcast %cst_117 : f32 to vector<2x1xf32>
    %278 = arith.minimumf %277, %276 : vector<2x1xf32>
    %279 = vector.extract_strided_slice %249 {offsets = [0, 0], sizes = [8, 64], strides = [1, 1]} : vector<16x64xf32> to vector<8x64xf32>
    %280 = vector.extract_strided_slice %278 {offsets = [0, 0], sizes = [1, 1], strides = [1, 1]} : vector<2x1xf32> to vector<1x1xf32>
    %281 = vector.broadcast %280 : vector<1x1xf32> to vector<8x64xf32>
    %282 = arith.mulf %279, %281 : vector<8x64xf32>
    %283 = vector.extract_strided_slice %249 {offsets = [8, 0], sizes = [8, 64], strides = [1, 1]} : vector<16x64xf32> to vector<8x64xf32>
    %284 = vector.extract_strided_slice %278 {offsets = [1, 0], sizes = [1, 1], strides = [1, 1]} : vector<2x1xf32> to vector<1x1xf32>
    %285 = vector.broadcast %284 : vector<1x1xf32> to vector<8x64xf32>
    %286 = arith.mulf %283, %285 : vector<8x64xf32>
    %287 = tpu.concatenate %282, %286 in 0 : vector<8x64xf32>, vector<8x64xf32> -> vector<16x64xf32>
    %288 = vector.extract_strided_slice %254 {offsets = [0, 0], sizes = [8, 64], strides = [1, 1]} : vector<16x64xf32> to vector<8x64xf32>
    %cst_118 = arith.constant dense<0.000000e+00> : vector<64xf32>
    %289 = vector.multi_reduction <add>, %288, %cst_118 [0] : vector<8x64xf32> to vector<64xf32>
    %290 = vector.shape_cast %289 : vector<64xf32> to vector<1x64xf32>
    %cst_119 = arith.constant 8.000000e+00 : f32
    %291 = vector.broadcast %cst_119 : f32 to vector<1x64xf32>
    %292 = arith.divf %290, %291 : vector<1x64xf32>
    %293 = vector.extract_strided_slice %254 {offsets = [8, 0], sizes = [8, 64], strides = [1, 1]} : vector<16x64xf32> to vector<8x64xf32>
    %cst_120 = arith.constant dense<0.000000e+00> : vector<64xf32>
    %294 = vector.multi_reduction <add>, %293, %cst_120 [0] : vector<8x64xf32> to vector<64xf32>
    %295 = vector.shape_cast %294 : vector<64xf32> to vector<1x64xf32>
    %cst_121 = arith.constant 8.000000e+00 : f32
    %296 = vector.broadcast %cst_121 : f32 to vector<1x64xf32>
    %297 = arith.divf %295, %296 : vector<1x64xf32>
    %298 = tpu.concatenate %292, %297 in 0 : vector<1x64xf32>, vector<1x64xf32> -> vector<2x64xf32>
    %cst_122 = arith.constant dense<0.000000e+00> : vector<2x64xf32>
    %299 = tpu.matmul %298, %8, %cst_122 {dimension_numbers = #tpu.dot_dimension_numbers<[1], [0], [0], [1], [0, 0, 1, 1], [], []>} : vector<2x64xf32>, vector<64x64xf32>, vector<2x64xf32> -> vector<2x64xf32>
    %cst_123 = arith.constant 0.000000e+00 : f32
    %300 = vector.broadcast %cst_123 : f32 to vector<2x64xf32>
    %301 = arith.maximumf %299, %300 : vector<2x64xf32>
    %cst_124 = arith.constant dense<0.000000e+00> : vector<2x64xf32>
    %302 = tpu.matmul %301, %9, %cst_124 {dimension_numbers = #tpu.dot_dimension_numbers<[1], [0], [0], [1], [0, 0, 1, 1], [], []>} : vector<2x64xf32>, vector<64x64xf32>, vector<2x64xf32> -> vector<2x64xf32>
    %303 = vector.extract_strided_slice %302 {offsets = [0, 0], sizes = [2, 1], strides = [1, 1]} : vector<2x64xf32> to vector<2x1xf32>
    %cst_125 = arith.constant 6.000000e+00 : f32
    %304 = vector.broadcast %cst_125 : f32 to vector<2x1xf32>
    %305 = arith.divf %303, %304 : vector<2x1xf32>
    %cst_126 = arith.constant 5.000000e-01 : f32
    %306 = vector.broadcast %cst_126 : f32 to vector<2x1xf32>
    %307 = arith.addf %305, %306 : vector<2x1xf32>
    %cst_127 = arith.constant 0.000000e+00 : f32
    %cst_128 = arith.constant 1.000000e+00 : f32
    %308 = vector.broadcast %cst_127 : f32 to vector<2x1xf32>
    %309 = arith.maximumf %308, %307 : vector<2x1xf32>
    %310 = vector.broadcast %cst_128 : f32 to vector<2x1xf32>
    %311 = arith.minimumf %310, %309 : vector<2x1xf32>
    %312 = vector.extract_strided_slice %254 {offsets = [0, 0], sizes = [8, 64], strides = [1, 1]} : vector<16x64xf32> to vector<8x64xf32>
    %313 = vector.extract_strided_slice %311 {offsets = [0, 0], sizes = [1, 1], strides = [1, 1]} : vector<2x1xf32> to vector<1x1xf32>
    %314 = vector.broadcast %313 : vector<1x1xf32> to vector<8x64xf32>
    %315 = arith.mulf %312, %314 : vector<8x64xf32>
    %316 = vector.extract_strided_slice %254 {offsets = [8, 0], sizes = [8, 64], strides = [1, 1]} : vector<16x64xf32> to vector<8x64xf32>
    %317 = vector.extract_strided_slice %311 {offsets = [1, 0], sizes = [1, 1], strides = [1, 1]} : vector<2x1xf32> to vector<1x1xf32>
    %318 = vector.broadcast %317 : vector<1x1xf32> to vector<8x64xf32>
    %319 = arith.mulf %316, %318 : vector<8x64xf32>
    %320 = tpu.concatenate %315, %319 in 0 : vector<8x64xf32>, vector<8x64xf32> -> vector<16x64xf32>
    %321 = arith.addf %287, %320 : vector<16x64xf32>
    %322 = arith.negf %321 : vector<16x64xf32>
    %323 = math.exp %322 : vector<16x64xf32>
    %cst_129 = arith.constant 1.000000e+00 : f32
    %324 = vector.broadcast %cst_129 : f32 to vector<16x64xf32>
    %325 = arith.addf %324, %323 : vector<16x64xf32>
    %326 = arith.divf %324, %325 : vector<16x64xf32>
    %327 = vector.extract_strided_slice %326 {offsets = [0, 0], sizes = [16, 32], strides = [1, 1]} : vector<16x64xf32> to vector<16x32xf32>
    %328 = vector.extract_strided_slice %326 {offsets = [0, 32], sizes = [16, 32], strides = [1, 1]} : vector<16x64xf32> to vector<16x32xf32>
    %329 = arith.mulf %327, %223 : vector<16x32xf32>
    %330 = tpu.concatenate %228, %329 in 1 : vector<16x4xf32>, vector<16x32xf32> -> vector<16x36xf32>
    %cst_130 = arith.constant dense<0.000000e+00> : vector<96x36xf32>
    %331 = tpu.matmul %20, %330, %cst_130 {dimension_numbers = #tpu.dot_dimension_numbers<[1], [0], [0], [1], [0, 0, 1, 1], [], []>} : vector<96x16xf32>, vector<16x36xf32>, vector<96x36xf32> -> vector<96x36xf32>
    %332 = vector.extract_strided_slice %331 {offsets = [0, 0], sizes = [16, 36], strides = [1, 1]} : vector<96x36xf32> to vector<16x36xf32>
    %333 = vector.extract_strided_slice %331 {offsets = [16, 0], sizes = [16, 36], strides = [1, 1]} : vector<96x36xf32> to vector<16x36xf32>
    %334 = vector.extract_strided_slice %331 {offsets = [32, 0], sizes = [16, 36], strides = [1, 1]} : vector<96x36xf32> to vector<16x36xf32>
    %335 = tpu.concatenate %332, %333, %334 in 1 : vector<16x36xf32>, vector<16x36xf32>, vector<16x36xf32> -> vector<16x108xf32>
    %336 = vector.extract_strided_slice %331 {offsets = [48, 0], sizes = [16, 36], strides = [1, 1]} : vector<96x36xf32> to vector<16x36xf32>
    %337 = vector.extract_strided_slice %331 {offsets = [64, 0], sizes = [16, 36], strides = [1, 1]} : vector<96x36xf32> to vector<16x36xf32>
    %338 = vector.extract_strided_slice %331 {offsets = [80, 0], sizes = [16, 36], strides = [1, 1]} : vector<96x36xf32> to vector<16x36xf32>
    %339 = tpu.concatenate %336, %337, %338 in 1 : vector<16x36xf32>, vector<16x36xf32>, vector<16x36xf32> -> vector<16x108xf32>
    %cst_131 = arith.constant dense<0.000000e+00> : vector<16x128xf32>
    %340 = tpu.matmul %335, %10, %cst_131 {dimension_numbers = #tpu.dot_dimension_numbers<[1], [0], [0], [1], [0, 0, 1, 1], [], []>} : vector<16x108xf32>, vector<108x128xf32>, vector<16x128xf32> -> vector<16x128xf32>
    %341 = arith.mulf %340, %11 : vector<16x128xf32>
    %cst_132 = arith.constant dense<0.000000e+00> : vector<16x32xf32>
    %342 = tpu.matmul %341, %12, %cst_132 {dimension_numbers = #tpu.dot_dimension_numbers<[1], [0], [0], [1], [0, 0, 1, 1], [], []>} : vector<16x128xf32>, vector<128x32xf32>, vector<16x32xf32> -> vector<16x32xf32>
    %343 = arith.addf %342, %13 : vector<16x32xf32>
    %cst_133 = arith.constant dense<0.000000e+00> : vector<16x32xf32>
    %344 = tpu.matmul %339, %14, %cst_133 {dimension_numbers = #tpu.dot_dimension_numbers<[1], [0], [0], [1], [0, 0, 1, 1], [], []>} : vector<16x108xf32>, vector<108x32xf32>, vector<16x32xf32> -> vector<16x32xf32>
    %345 = arith.addf %344, %15 : vector<16x32xf32>
    %cst_134 = arith.constant 0.000000e+00 : f32
    %346 = vector.broadcast %cst_134 : f32 to vector<16x32xf32>
    %347 = arith.cmpf oge, %343, %346 : vector<16x32xf32>
    %cst_135 = arith.constant 0.00999999977 : f32
    %348 = vector.broadcast %cst_135 : f32 to vector<16x32xf32>
    %349 = arith.mulf %348, %343 : vector<16x32xf32>
    %350 = arith.select %347, %343, %349 : vector<16x32xi1>, vector<16x32xf32>
    %cst_136 = arith.constant 0.000000e+00 : f32
    %351 = vector.broadcast %cst_136 : f32 to vector<16x32xf32>
    %352 = arith.cmpf oge, %345, %351 : vector<16x32xf32>
    %cst_137 = arith.constant 0.00999999977 : f32
    %353 = vector.broadcast %cst_137 : f32 to vector<16x32xf32>
    %354 = arith.mulf %353, %345 : vector<16x32xf32>
    %355 = arith.select %352, %345, %354 : vector<16x32xi1>, vector<16x32xf32>
    %356 = vector.extract_strided_slice %350 {offsets = [0, 0], sizes = [8, 32], strides = [1, 1]} : vector<16x32xf32> to vector<8x32xf32>
    %cst_138 = arith.constant dense<0.000000e+00> : vector<32xf32>
    %357 = vector.multi_reduction <add>, %356, %cst_138 [0] : vector<8x32xf32> to vector<32xf32>
    %358 = vector.shape_cast %357 : vector<32xf32> to vector<1x32xf32>
    %cst_139 = arith.constant 8.000000e+00 : f32
    %359 = vector.broadcast %cst_139 : f32 to vector<1x32xf32>
    %360 = arith.divf %358, %359 : vector<1x32xf32>
    %361 = vector.extract_strided_slice %350 {offsets = [8, 0], sizes = [8, 32], strides = [1, 1]} : vector<16x32xf32> to vector<8x32xf32>
    %cst_140 = arith.constant dense<0.000000e+00> : vector<32xf32>
    %362 = vector.multi_reduction <add>, %361, %cst_140 [0] : vector<8x32xf32> to vector<32xf32>
    %363 = vector.shape_cast %362 : vector<32xf32> to vector<1x32xf32>
    %cst_141 = arith.constant 8.000000e+00 : f32
    %364 = vector.broadcast %cst_141 : f32 to vector<1x32xf32>
    %365 = arith.divf %363, %364 : vector<1x32xf32>
    %366 = tpu.concatenate %360, %365 in 0 : vector<1x32xf32>, vector<1x32xf32> -> vector<2x32xf32>
    %cst_142 = arith.constant dense<0.000000e+00> : vector<2x32xf32>
    %367 = tpu.matmul %366, %16, %cst_142 {dimension_numbers = #tpu.dot_dimension_numbers<[1], [0], [0], [1], [0, 0, 1, 1], [], []>} : vector<2x32xf32>, vector<32x32xf32>, vector<2x32xf32> -> vector<2x32xf32>
    %cst_143 = arith.constant 0.000000e+00 : f32
    %368 = vector.broadcast %cst_143 : f32 to vector<2x32xf32>
    %369 = arith.maximumf %367, %368 : vector<2x32xf32>
    %cst_144 = arith.constant dense<0.000000e+00> : vector<2x32xf32>
    %370 = tpu.matmul %369, %17, %cst_144 {dimension_numbers = #tpu.dot_dimension_numbers<[1], [0], [0], [1], [0, 0, 1, 1], [], []>} : vector<2x32xf32>, vector<32x32xf32>, vector<2x32xf32> -> vector<2x32xf32>
    %371 = vector.extract_strided_slice %370 {offsets = [0, 0], sizes = [2, 1], strides = [1, 1]} : vector<2x32xf32> to vector<2x1xf32>
    %cst_145 = arith.constant 6.000000e+00 : f32
    %372 = vector.broadcast %cst_145 : f32 to vector<2x1xf32>
    %373 = arith.divf %371, %372 : vector<2x1xf32>
    %cst_146 = arith.constant 5.000000e-01 : f32
    %374 = vector.broadcast %cst_146 : f32 to vector<2x1xf32>
    %375 = arith.addf %373, %374 : vector<2x1xf32>
    %cst_147 = arith.constant 0.000000e+00 : f32
    %cst_148 = arith.constant 1.000000e+00 : f32
    %376 = vector.broadcast %cst_147 : f32 to vector<2x1xf32>
    %377 = arith.maximumf %376, %375 : vector<2x1xf32>
    %378 = vector.broadcast %cst_148 : f32 to vector<2x1xf32>
    %379 = arith.minimumf %378, %377 : vector<2x1xf32>
    %380 = vector.extract_strided_slice %350 {offsets = [0, 0], sizes = [8, 32], strides = [1, 1]} : vector<16x32xf32> to vector<8x32xf32>
    %381 = vector.extract_strided_slice %379 {offsets = [0, 0], sizes = [1, 1], strides = [1, 1]} : vector<2x1xf32> to vector<1x1xf32>
    %382 = vector.broadcast %381 : vector<1x1xf32> to vector<8x32xf32>
    %383 = arith.mulf %380, %382 : vector<8x32xf32>
    %384 = vector.extract_strided_slice %350 {offsets = [8, 0], sizes = [8, 32], strides = [1, 1]} : vector<16x32xf32> to vector<8x32xf32>
    %385 = vector.extract_strided_slice %379 {offsets = [1, 0], sizes = [1, 1], strides = [1, 1]} : vector<2x1xf32> to vector<1x1xf32>
    %386 = vector.broadcast %385 : vector<1x1xf32> to vector<8x32xf32>
    %387 = arith.mulf %384, %386 : vector<8x32xf32>
    %388 = tpu.concatenate %383, %387 in 0 : vector<8x32xf32>, vector<8x32xf32> -> vector<16x32xf32>
    %389 = vector.extract_strided_slice %355 {offsets = [0, 0], sizes = [8, 32], strides = [1, 1]} : vector<16x32xf32> to vector<8x32xf32>
    %cst_149 = arith.constant dense<0.000000e+00> : vector<32xf32>
    %390 = vector.multi_reduction <add>, %389, %cst_149 [0] : vector<8x32xf32> to vector<32xf32>
    %391 = vector.shape_cast %390 : vector<32xf32> to vector<1x32xf32>
    %cst_150 = arith.constant 8.000000e+00 : f32
    %392 = vector.broadcast %cst_150 : f32 to vector<1x32xf32>
    %393 = arith.divf %391, %392 : vector<1x32xf32>
    %394 = vector.extract_strided_slice %355 {offsets = [8, 0], sizes = [8, 32], strides = [1, 1]} : vector<16x32xf32> to vector<8x32xf32>
    %cst_151 = arith.constant dense<0.000000e+00> : vector<32xf32>
    %395 = vector.multi_reduction <add>, %394, %cst_151 [0] : vector<8x32xf32> to vector<32xf32>
    %396 = vector.shape_cast %395 : vector<32xf32> to vector<1x32xf32>
    %cst_152 = arith.constant 8.000000e+00 : f32
    %397 = vector.broadcast %cst_152 : f32 to vector<1x32xf32>
    %398 = arith.divf %396, %397 : vector<1x32xf32>
    %399 = tpu.concatenate %393, %398 in 0 : vector<1x32xf32>, vector<1x32xf32> -> vector<2x32xf32>
    %cst_153 = arith.constant dense<0.000000e+00> : vector<2x32xf32>
    %400 = tpu.matmul %399, %18, %cst_153 {dimension_numbers = #tpu.dot_dimension_numbers<[1], [0], [0], [1], [0, 0, 1, 1], [], []>} : vector<2x32xf32>, vector<32x32xf32>, vector<2x32xf32> -> vector<2x32xf32>
    %cst_154 = arith.constant 0.000000e+00 : f32
    %401 = vector.broadcast %cst_154 : f32 to vector<2x32xf32>
    %402 = arith.maximumf %400, %401 : vector<2x32xf32>
    %cst_155 = arith.constant dense<0.000000e+00> : vector<2x32xf32>
    %403 = tpu.matmul %402, %19, %cst_155 {dimension_numbers = #tpu.dot_dimension_numbers<[1], [0], [0], [1], [0, 0, 1, 1], [], []>} : vector<2x32xf32>, vector<32x32xf32>, vector<2x32xf32> -> vector<2x32xf32>
    %404 = vector.extract_strided_slice %403 {offsets = [0, 0], sizes = [2, 1], strides = [1, 1]} : vector<2x32xf32> to vector<2x1xf32>
    %cst_156 = arith.constant 6.000000e+00 : f32
    %405 = vector.broadcast %cst_156 : f32 to vector<2x1xf32>
    %406 = arith.divf %404, %405 : vector<2x1xf32>
    %cst_157 = arith.constant 5.000000e-01 : f32
    %407 = vector.broadcast %cst_157 : f32 to vector<2x1xf32>
    %408 = arith.addf %406, %407 : vector<2x1xf32>
    %cst_158 = arith.constant 0.000000e+00 : f32
    %cst_159 = arith.constant 1.000000e+00 : f32
    %409 = vector.broadcast %cst_158 : f32 to vector<2x1xf32>
    %410 = arith.maximumf %409, %408 : vector<2x1xf32>
    %411 = vector.broadcast %cst_159 : f32 to vector<2x1xf32>
    %412 = arith.minimumf %411, %410 : vector<2x1xf32>
    %413 = vector.extract_strided_slice %355 {offsets = [0, 0], sizes = [8, 32], strides = [1, 1]} : vector<16x32xf32> to vector<8x32xf32>
    %414 = vector.extract_strided_slice %412 {offsets = [0, 0], sizes = [1, 1], strides = [1, 1]} : vector<2x1xf32> to vector<1x1xf32>
    %415 = vector.broadcast %414 : vector<1x1xf32> to vector<8x32xf32>
    %416 = arith.mulf %413, %415 : vector<8x32xf32>
    %417 = vector.extract_strided_slice %355 {offsets = [8, 0], sizes = [8, 32], strides = [1, 1]} : vector<16x32xf32> to vector<8x32xf32>
    %418 = vector.extract_strided_slice %412 {offsets = [1, 0], sizes = [1, 1], strides = [1, 1]} : vector<2x1xf32> to vector<1x1xf32>
    %419 = vector.broadcast %418 : vector<1x1xf32> to vector<8x32xf32>
    %420 = arith.mulf %417, %419 : vector<8x32xf32>
    %421 = tpu.concatenate %416, %420 in 0 : vector<8x32xf32>, vector<8x32xf32> -> vector<16x32xf32>
    %422 = arith.addf %388, %421 : vector<16x32xf32>
    %423 = math.tanh %422 : vector<16x32xf32>
    %424 = arith.mulf %328, %223 : vector<16x32xf32>
    %cst_160 = arith.constant 1.000000e+00 : f32
    %425 = vector.broadcast %cst_160 : f32 to vector<16x32xf32>
    %426 = arith.subf %425, %328 : vector<16x32xf32>
    %427 = arith.mulf %426, %423 : vector<16x32xf32>
    %428 = arith.addf %424, %427 : vector<16x32xf32>
    %c1_161 = arith.constant 1 : index
    %c0_162 = arith.constant 0 : index
    %c0_163 = arith.constant 0 : index
    %429 = vector.load %arg8[%c1_161, %c0_162, %c0_163] : memref<3x16x32xf32, #tpu.memory_space<vmem>>, vector<1x16x32xf32>
    %430 = vector.shape_cast %429 : vector<1x16x32xf32> to vector<16x32xf32>
    %431 = vector.shape_cast %428 : vector<16x32xf32> to vector<1x16x32xf32>
    tpu.vector_store %arg8[%c1_161, %c0_162, %c0_163], %431 {strides = array<i32>} : memref<3x16x32xf32, #tpu.memory_space<vmem>>, vector<1x16x32xf32>,
    %c2 = arith.constant 2 : index
    %c0_164 = arith.constant 0 : index
    %c0_165 = arith.constant 0 : index
    %432 = vector.load %arg1[%c2, %c0_164, %c0_165] : memref<3x16x4xf32, #tpu.memory_space<vmem>>, vector<1x16x4xf32>
    %433 = vector.shape_cast %432 : vector<1x16x4xf32> to vector<16x4xf32>
    %434 = tpu.concatenate %433, %428 in 1 : vector<16x4xf32>, vector<16x32xf32> -> vector<16x36xf32>
    %cst_166 = arith.constant dense<0.000000e+00> : vector<96x36xf32>
    %435 = tpu.matmul %20, %434, %cst_166 {dimension_numbers = #tpu.dot_dimension_numbers<[1], [0], [0], [1], [0, 0, 1, 1], [], []>} : vector<96x16xf32>, vector<16x36xf32>, vector<96x36xf32> -> vector<96x36xf32>
    %436 = vector.extract_strided_slice %435 {offsets = [0, 0], sizes = [16, 36], strides = [1, 1]} : vector<96x36xf32> to vector<16x36xf32>
    %437 = vector.extract_strided_slice %435 {offsets = [16, 0], sizes = [16, 36], strides = [1, 1]} : vector<96x36xf32> to vector<16x36xf32>
    %438 = vector.extract_strided_slice %435 {offsets = [32, 0], sizes = [16, 36], strides = [1, 1]} : vector<96x36xf32> to vector<16x36xf32>
    %439 = tpu.concatenate %436, %437, %438 in 1 : vector<16x36xf32>, vector<16x36xf32>, vector<16x36xf32> -> vector<16x108xf32>
    %440 = vector.extract_strided_slice %435 {offsets = [48, 0], sizes = [16, 36], strides = [1, 1]} : vector<96x36xf32> to vector<16x36xf32>
    %441 = vector.extract_strided_slice %435 {offsets = [64, 0], sizes = [16, 36], strides = [1, 1]} : vector<96x36xf32> to vector<16x36xf32>
    %442 = vector.extract_strided_slice %435 {offsets = [80, 0], sizes = [16, 36], strides = [1, 1]} : vector<96x36xf32> to vector<16x36xf32>
    %443 = tpu.concatenate %440, %441, %442 in 1 : vector<16x36xf32>, vector<16x36xf32>, vector<16x36xf32> -> vector<16x108xf32>
    %cst_167 = arith.constant dense<0.000000e+00> : vector<16x256xf32>
    %444 = tpu.matmul %439, %0, %cst_167 {dimension_numbers = #tpu.dot_dimension_numbers<[1], [0], [0], [1], [0, 0, 1, 1], [], []>} : vector<16x108xf32>, vector<108x256xf32>, vector<16x256xf32> -> vector<16x256xf32>
    %445 = arith.mulf %444, %1 : vector<16x256xf32>
    %cst_168 = arith.constant dense<0.000000e+00> : vector<16x64xf32>
    %446 = tpu.matmul %445, %2, %cst_168 {dimension_numbers = #tpu.dot_dimension_numbers<[1], [0], [0], [1], [0, 0, 1, 1], [], []>} : vector<16x256xf32>, vector<256x64xf32>, vector<16x64xf32> -> vector<16x64xf32>
    %447 = arith.addf %446, %3 : vector<16x64xf32>
    %cst_169 = arith.constant dense<0.000000e+00> : vector<16x64xf32>
    %448 = tpu.matmul %443, %4, %cst_169 {dimension_numbers = #tpu.dot_dimension_numbers<[1], [0], [0], [1], [0, 0, 1, 1], [], []>} : vector<16x108xf32>, vector<108x64xf32>, vector<16x64xf32> -> vector<16x64xf32>
    %449 = arith.addf %448, %5 : vector<16x64xf32>
    %cst_170 = arith.constant 0.000000e+00 : f32
    %450 = vector.broadcast %cst_170 : f32 to vector<16x64xf32>
    %451 = arith.cmpf oge, %447, %450 : vector<16x64xf32>
    %cst_171 = arith.constant 0.00999999977 : f32
    %452 = vector.broadcast %cst_171 : f32 to vector<16x64xf32>
    %453 = arith.mulf %452, %447 : vector<16x64xf32>
    %454 = arith.select %451, %447, %453 : vector<16x64xi1>, vector<16x64xf32>
    %cst_172 = arith.constant 0.000000e+00 : f32
    %455 = vector.broadcast %cst_172 : f32 to vector<16x64xf32>
    %456 = arith.cmpf oge, %449, %455 : vector<16x64xf32>
    %cst_173 = arith.constant 0.00999999977 : f32
    %457 = vector.broadcast %cst_173 : f32 to vector<16x64xf32>
    %458 = arith.mulf %457, %449 : vector<16x64xf32>
    %459 = arith.select %456, %449, %458 : vector<16x64xi1>, vector<16x64xf32>
    %460 = vector.extract_strided_slice %454 {offsets = [0, 0], sizes = [8, 64], strides = [1, 1]} : vector<16x64xf32> to vector<8x64xf32>
    %cst_174 = arith.constant dense<0.000000e+00> : vector<64xf32>
    %461 = vector.multi_reduction <add>, %460, %cst_174 [0] : vector<8x64xf32> to vector<64xf32>
    %462 = vector.shape_cast %461 : vector<64xf32> to vector<1x64xf32>
    %cst_175 = arith.constant 8.000000e+00 : f32
    %463 = vector.broadcast %cst_175 : f32 to vector<1x64xf32>
    %464 = arith.divf %462, %463 : vector<1x64xf32>
    %465 = vector.extract_strided_slice %454 {offsets = [8, 0], sizes = [8, 64], strides = [1, 1]} : vector<16x64xf32> to vector<8x64xf32>
    %cst_176 = arith.constant dense<0.000000e+00> : vector<64xf32>
    %466 = vector.multi_reduction <add>, %465, %cst_176 [0] : vector<8x64xf32> to vector<64xf32>
    %467 = vector.shape_cast %466 : vector<64xf32> to vector<1x64xf32>
    %cst_177 = arith.constant 8.000000e+00 : f32
    %468 = vector.broadcast %cst_177 : f32 to vector<1x64xf32>
    %469 = arith.divf %467, %468 : vector<1x64xf32>
    %470 = tpu.concatenate %464, %469 in 0 : vector<1x64xf32>, vector<1x64xf32> -> vector<2x64xf32>
    %cst_178 = arith.constant dense<0.000000e+00> : vector<2x64xf32>
    %471 = tpu.matmul %470, %6, %cst_178 {dimension_numbers = #tpu.dot_dimension_numbers<[1], [0], [0], [1], [0, 0, 1, 1], [], []>} : vector<2x64xf32>, vector<64x64xf32>, vector<2x64xf32> -> vector<2x64xf32>
    %cst_179 = arith.constant 0.000000e+00 : f32
    %472 = vector.broadcast %cst_179 : f32 to vector<2x64xf32>
    %473 = arith.maximumf %471, %472 : vector<2x64xf32>
    %cst_180 = arith.constant dense<0.000000e+00> : vector<2x64xf32>
    %474 = tpu.matmul %473, %7, %cst_180 {dimension_numbers = #tpu.dot_dimension_numbers<[1], [0], [0], [1], [0, 0, 1, 1], [], []>} : vector<2x64xf32>, vector<64x64xf32>, vector<2x64xf32> -> vector<2x64xf32>
    %475 = vector.extract_strided_slice %474 {offsets = [0, 0], sizes = [2, 1], strides = [1, 1]} : vector<2x64xf32> to vector<2x1xf32>
    %cst_181 = arith.constant 6.000000e+00 : f32
    %476 = vector.broadcast %cst_181 : f32 to vector<2x1xf32>
    %477 = arith.divf %475, %476 : vector<2x1xf32>
    %cst_182 = arith.constant 5.000000e-01 : f32
    %478 = vector.broadcast %cst_182 : f32 to vector<2x1xf32>
    %479 = arith.addf %477, %478 : vector<2x1xf32>
    %cst_183 = arith.constant 0.000000e+00 : f32
    %cst_184 = arith.constant 1.000000e+00 : f32
    %480 = vector.broadcast %cst_183 : f32 to vector<2x1xf32>
    %481 = arith.maximumf %480, %479 : vector<2x1xf32>
    %482 = vector.broadcast %cst_184 : f32 to vector<2x1xf32>
    %483 = arith.minimumf %482, %481 : vector<2x1xf32>
    %484 = vector.extract_strided_slice %454 {offsets = [0, 0], sizes = [8, 64], strides = [1, 1]} : vector<16x64xf32> to vector<8x64xf32>
    %485 = vector.extract_strided_slice %483 {offsets = [0, 0], sizes = [1, 1], strides = [1, 1]} : vector<2x1xf32> to vector<1x1xf32>
    %486 = vector.broadcast %485 : vector<1x1xf32> to vector<8x64xf32>
    %487 = arith.mulf %484, %486 : vector<8x64xf32>
    %488 = vector.extract_strided_slice %454 {offsets = [8, 0], sizes = [8, 64], strides = [1, 1]} : vector<16x64xf32> to vector<8x64xf32>
    %489 = vector.extract_strided_slice %483 {offsets = [1, 0], sizes = [1, 1], strides = [1, 1]} : vector<2x1xf32> to vector<1x1xf32>
    %490 = vector.broadcast %489 : vector<1x1xf32> to vector<8x64xf32>
    %491 = arith.mulf %488, %490 : vector<8x64xf32>
    %492 = tpu.concatenate %487, %491 in 0 : vector<8x64xf32>, vector<8x64xf32> -> vector<16x64xf32>
    %493 = vector.extract_strided_slice %459 {offsets = [0, 0], sizes = [8, 64], strides = [1, 1]} : vector<16x64xf32> to vector<8x64xf32>
    %cst_185 = arith.constant dense<0.000000e+00> : vector<64xf32>
    %494 = vector.multi_reduction <add>, %493, %cst_185 [0] : vector<8x64xf32> to vector<64xf32>
    %495 = vector.shape_cast %494 : vector<64xf32> to vector<1x64xf32>
    %cst_186 = arith.constant 8.000000e+00 : f32
    %496 = vector.broadcast %cst_186 : f32 to vector<1x64xf32>
    %497 = arith.divf %495, %496 : vector<1x64xf32>
    %498 = vector.extract_strided_slice %459 {offsets = [8, 0], sizes = [8, 64], strides = [1, 1]} : vector<16x64xf32> to vector<8x64xf32>
    %cst_187 = arith.constant dense<0.000000e+00> : vector<64xf32>
    %499 = vector.multi_reduction <add>, %498, %cst_187 [0] : vector<8x64xf32> to vector<64xf32>
    %500 = vector.shape_cast %499 : vector<64xf32> to vector<1x64xf32>
    %cst_188 = arith.constant 8.000000e+00 : f32
    %501 = vector.broadcast %cst_188 : f32 to vector<1x64xf32>
    %502 = arith.divf %500, %501 : vector<1x64xf32>
    %503 = tpu.concatenate %497, %502 in 0 : vector<1x64xf32>, vector<1x64xf32> -> vector<2x64xf32>
    %cst_189 = arith.constant dense<0.000000e+00> : vector<2x64xf32>
    %504 = tpu.matmul %503, %8, %cst_189 {dimension_numbers = #tpu.dot_dimension_numbers<[1], [0], [0], [1], [0, 0, 1, 1], [], []>} : vector<2x64xf32>, vector<64x64xf32>, vector<2x64xf32> -> vector<2x64xf32>
    %cst_190 = arith.constant 0.000000e+00 : f32
    %505 = vector.broadcast %cst_190 : f32 to vector<2x64xf32>
    %506 = arith.maximumf %504, %505 : vector<2x64xf32>
    %cst_191 = arith.constant dense<0.000000e+00> : vector<2x64xf32>
    %507 = tpu.matmul %506, %9, %cst_191 {dimension_numbers = #tpu.dot_dimension_numbers<[1], [0], [0], [1], [0, 0, 1, 1], [], []>} : vector<2x64xf32>, vector<64x64xf32>, vector<2x64xf32> -> vector<2x64xf32>
    %508 = vector.extract_strided_slice %507 {offsets = [0, 0], sizes = [2, 1], strides = [1, 1]} : vector<2x64xf32> to vector<2x1xf32>
    %cst_192 = arith.constant 6.000000e+00 : f32
    %509 = vector.broadcast %cst_192 : f32 to vector<2x1xf32>
    %510 = arith.divf %508, %509 : vector<2x1xf32>
    %cst_193 = arith.constant 5.000000e-01 : f32
    %511 = vector.broadcast %cst_193 : f32 to vector<2x1xf32>
    %512 = arith.addf %510, %511 : vector<2x1xf32>
    %cst_194 = arith.constant 0.000000e+00 : f32
    %cst_195 = arith.constant 1.000000e+00 : f32
    %513 = vector.broadcast %cst_194 : f32 to vector<2x1xf32>
    %514 = arith.maximumf %513, %512 : vector<2x1xf32>
    %515 = vector.broadcast %cst_195 : f32 to vector<2x1xf32>
    %516 = arith.minimumf %515, %514 : vector<2x1xf32>
    %517 = vector.extract_strided_slice %459 {offsets = [0, 0], sizes = [8, 64], strides = [1, 1]} : vector<16x64xf32> to vector<8x64xf32>
    %518 = vector.extract_strided_slice %516 {offsets = [0, 0], sizes = [1, 1], strides = [1, 1]} : vector<2x1xf32> to vector<1x1xf32>
    %519 = vector.broadcast %518 : vector<1x1xf32> to vector<8x64xf32>
    %520 = arith.mulf %517, %519 : vector<8x64xf32>
    %521 = vector.extract_strided_slice %459 {offsets = [8, 0], sizes = [8, 64], strides = [1, 1]} : vector<16x64xf32> to vector<8x64xf32>
    %522 = vector.extract_strided_slice %516 {offsets = [1, 0], sizes = [1, 1], strides = [1, 1]} : vector<2x1xf32> to vector<1x1xf32>
    %523 = vector.broadcast %522 : vector<1x1xf32> to vector<8x64xf32>
    %524 = arith.mulf %521, %523 : vector<8x64xf32>
    %525 = tpu.concatenate %520, %524 in 0 : vector<8x64xf32>, vector<8x64xf32> -> vector<16x64xf32>
    %526 = arith.addf %492, %525 : vector<16x64xf32>
    %527 = arith.negf %526 : vector<16x64xf32>
    %528 = math.exp %527 : vector<16x64xf32>
    %cst_196 = arith.constant 1.000000e+00 : f32
    %529 = vector.broadcast %cst_196 : f32 to vector<16x64xf32>
    %530 = arith.addf %529, %528 : vector<16x64xf32>
    %531 = arith.divf %529, %530 : vector<16x64xf32>
    %532 = vector.extract_strided_slice %531 {offsets = [0, 0], sizes = [16, 32], strides = [1, 1]} : vector<16x64xf32> to vector<16x32xf32>
    %533 = vector.extract_strided_slice %531 {offsets = [0, 32], sizes = [16, 32], strides = [1, 1]} : vector<16x64xf32> to vector<16x32xf32>
    %534 = arith.mulf %532, %428 : vector<16x32xf32>
    %535 = tpu.concatenate %433, %534 in 1 : vector<16x4xf32>, vector<16x32xf32> -> vector<16x36xf32>
    %cst_197 = arith.constant dense<0.000000e+00> : vector<96x36xf32>
    %536 = tpu.matmul %20, %535, %cst_197 {dimension_numbers = #tpu.dot_dimension_numbers<[1], [0], [0], [1], [0, 0, 1, 1], [], []>} : vector<96x16xf32>, vector<16x36xf32>, vector<96x36xf32> -> vector<96x36xf32>
    %537 = vector.extract_strided_slice %536 {offsets = [0, 0], sizes = [16, 36], strides = [1, 1]} : vector<96x36xf32> to vector<16x36xf32>
    %538 = vector.extract_strided_slice %536 {offsets = [16, 0], sizes = [16, 36], strides = [1, 1]} : vector<96x36xf32> to vector<16x36xf32>
    %539 = vector.extract_strided_slice %536 {offsets = [32, 0], sizes = [16, 36], strides = [1, 1]} : vector<96x36xf32> to vector<16x36xf32>
    %540 = tpu.concatenate %537, %538, %539 in 1 : vector<16x36xf32>, vector<16x36xf32>, vector<16x36xf32> -> vector<16x108xf32>
    %541 = vector.extract_strided_slice %536 {offsets = [48, 0], sizes = [16, 36], strides = [1, 1]} : vector<96x36xf32> to vector<16x36xf32>
    %542 = vector.extract_strided_slice %536 {offsets = [64, 0], sizes = [16, 36], strides = [1, 1]} : vector<96x36xf32> to vector<16x36xf32>
    %543 = vector.extract_strided_slice %536 {offsets = [80, 0], sizes = [16, 36], strides = [1, 1]} : vector<96x36xf32> to vector<16x36xf32>
    %544 = tpu.concatenate %541, %542, %543 in 1 : vector<16x36xf32>, vector<16x36xf32>, vector<16x36xf32> -> vector<16x108xf32>
    %cst_198 = arith.constant dense<0.000000e+00> : vector<16x128xf32>
    %545 = tpu.matmul %540, %10, %cst_198 {dimension_numbers = #tpu.dot_dimension_numbers<[1], [0], [0], [1], [0, 0, 1, 1], [], []>} : vector<16x108xf32>, vector<108x128xf32>, vector<16x128xf32> -> vector<16x128xf32>
    %546 = arith.mulf %545, %11 : vector<16x128xf32>
    %cst_199 = arith.constant dense<0.000000e+00> : vector<16x32xf32>
    %547 = tpu.matmul %546, %12, %cst_199 {dimension_numbers = #tpu.dot_dimension_numbers<[1], [0], [0], [1], [0, 0, 1, 1], [], []>} : vector<16x128xf32>, vector<128x32xf32>, vector<16x32xf32> -> vector<16x32xf32>
    %548 = arith.addf %547, %13 : vector<16x32xf32>
    %cst_200 = arith.constant dense<0.000000e+00> : vector<16x32xf32>
    %549 = tpu.matmul %544, %14, %cst_200 {dimension_numbers = #tpu.dot_dimension_numbers<[1], [0], [0], [1], [0, 0, 1, 1], [], []>} : vector<16x108xf32>, vector<108x32xf32>, vector<16x32xf32> -> vector<16x32xf32>
    %550 = arith.addf %549, %15 : vector<16x32xf32>
    %cst_201 = arith.constant 0.000000e+00 : f32
    %551 = vector.broadcast %cst_201 : f32 to vector<16x32xf32>
    %552 = arith.cmpf oge, %548, %551 : vector<16x32xf32>
    %cst_202 = arith.constant 0.00999999977 : f32
    %553 = vector.broadcast %cst_202 : f32 to vector<16x32xf32>
    %554 = arith.mulf %553, %548 : vector<16x32xf32>
    %555 = arith.select %552, %548, %554 : vector<16x32xi1>, vector<16x32xf32>
    %cst_203 = arith.constant 0.000000e+00 : f32
    %556 = vector.broadcast %cst_203 : f32 to vector<16x32xf32>
    %557 = arith.cmpf oge, %550, %556 : vector<16x32xf32>
    %cst_204 = arith.constant 0.00999999977 : f32
    %558 = vector.broadcast %cst_204 : f32 to vector<16x32xf32>
    %559 = arith.mulf %558, %550 : vector<16x32xf32>
    %560 = arith.select %557, %550, %559 : vector<16x32xi1>, vector<16x32xf32>
    %561 = vector.extract_strided_slice %555 {offsets = [0, 0], sizes = [8, 32], strides = [1, 1]} : vector<16x32xf32> to vector<8x32xf32>
    %cst_205 = arith.constant dense<0.000000e+00> : vector<32xf32>
    %562 = vector.multi_reduction <add>, %561, %cst_205 [0] : vector<8x32xf32> to vector<32xf32>
    %563 = vector.shape_cast %562 : vector<32xf32> to vector<1x32xf32>
    %cst_206 = arith.constant 8.000000e+00 : f32
    %564 = vector.broadcast %cst_206 : f32 to vector<1x32xf32>
    %565 = arith.divf %563, %564 : vector<1x32xf32>
    %566 = vector.extract_strided_slice %555 {offsets = [8, 0], sizes = [8, 32], strides = [1, 1]} : vector<16x32xf32> to vector<8x32xf32>
    %cst_207 = arith.constant dense<0.000000e+00> : vector<32xf32>
    %567 = vector.multi_reduction <add>, %566, %cst_207 [0] : vector<8x32xf32> to vector<32xf32>
    %568 = vector.shape_cast %567 : vector<32xf32> to vector<1x32xf32>
    %cst_208 = arith.constant 8.000000e+00 : f32
    %569 = vector.broadcast %cst_208 : f32 to vector<1x32xf32>
    %570 = arith.divf %568, %569 : vector<1x32xf32>
    %571 = tpu.concatenate %565, %570 in 0 : vector<1x32xf32>, vector<1x32xf32> -> vector<2x32xf32>
    %cst_209 = arith.constant dense<0.000000e+00> : vector<2x32xf32>
    %572 = tpu.matmul %571, %16, %cst_209 {dimension_numbers = #tpu.dot_dimension_numbers<[1], [0], [0], [1], [0, 0, 1, 1], [], []>} : vector<2x32xf32>, vector<32x32xf32>, vector<2x32xf32> -> vector<2x32xf32>
    %cst_210 = arith.constant 0.000000e+00 : f32
    %573 = vector.broadcast %cst_210 : f32 to vector<2x32xf32>
    %574 = arith.maximumf %572, %573 : vector<2x32xf32>
    %cst_211 = arith.constant dense<0.000000e+00> : vector<2x32xf32>
    %575 = tpu.matmul %574, %17, %cst_211 {dimension_numbers = #tpu.dot_dimension_numbers<[1], [0], [0], [1], [0, 0, 1, 1], [], []>} : vector<2x32xf32>, vector<32x32xf32>, vector<2x32xf32> -> vector<2x32xf32>
    %576 = vector.extract_strided_slice %575 {offsets = [0, 0], sizes = [2, 1], strides = [1, 1]} : vector<2x32xf32> to vector<2x1xf32>
    %cst_212 = arith.constant 6.000000e+00 : f32
    %577 = vector.broadcast %cst_212 : f32 to vector<2x1xf32>
    %578 = arith.divf %576, %577 : vector<2x1xf32>
    %cst_213 = arith.constant 5.000000e-01 : f32
    %579 = vector.broadcast %cst_213 : f32 to vector<2x1xf32>
    %580 = arith.addf %578, %579 : vector<2x1xf32>
    %cst_214 = arith.constant 0.000000e+00 : f32
    %cst_215 = arith.constant 1.000000e+00 : f32
    %581 = vector.broadcast %cst_214 : f32 to vector<2x1xf32>
    %582 = arith.maximumf %581, %580 : vector<2x1xf32>
    %583 = vector.broadcast %cst_215 : f32 to vector<2x1xf32>
    %584 = arith.minimumf %583, %582 : vector<2x1xf32>
    %585 = vector.extract_strided_slice %555 {offsets = [0, 0], sizes = [8, 32], strides = [1, 1]} : vector<16x32xf32> to vector<8x32xf32>
    %586 = vector.extract_strided_slice %584 {offsets = [0, 0], sizes = [1, 1], strides = [1, 1]} : vector<2x1xf32> to vector<1x1xf32>
    %587 = vector.broadcast %586 : vector<1x1xf32> to vector<8x32xf32>
    %588 = arith.mulf %585, %587 : vector<8x32xf32>
    %589 = vector.extract_strided_slice %555 {offsets = [8, 0], sizes = [8, 32], strides = [1, 1]} : vector<16x32xf32> to vector<8x32xf32>
    %590 = vector.extract_strided_slice %584 {offsets = [1, 0], sizes = [1, 1], strides = [1, 1]} : vector<2x1xf32> to vector<1x1xf32>
    %591 = vector.broadcast %590 : vector<1x1xf32> to vector<8x32xf32>
    %592 = arith.mulf %589, %591 : vector<8x32xf32>
    %593 = tpu.concatenate %588, %592 in 0 : vector<8x32xf32>, vector<8x32xf32> -> vector<16x32xf32>
    %594 = vector.extract_strided_slice %560 {offsets = [0, 0], sizes = [8, 32], strides = [1, 1]} : vector<16x32xf32> to vector<8x32xf32>
    %cst_216 = arith.constant dense<0.000000e+00> : vector<32xf32>
    %595 = vector.multi_reduction <add>, %594, %cst_216 [0] : vector<8x32xf32> to vector<32xf32>
    %596 = vector.shape_cast %595 : vector<32xf32> to vector<1x32xf32>
    %cst_217 = arith.constant 8.000000e+00 : f32
    %597 = vector.broadcast %cst_217 : f32 to vector<1x32xf32>
    %598 = arith.divf %596, %597 : vector<1x32xf32>
    %599 = vector.extract_strided_slice %560 {offsets = [8, 0], sizes = [8, 32], strides = [1, 1]} : vector<16x32xf32> to vector<8x32xf32>
    %cst_218 = arith.constant dense<0.000000e+00> : vector<32xf32>
    %600 = vector.multi_reduction <add>, %599, %cst_218 [0] : vector<8x32xf32> to vector<32xf32>
    %601 = vector.shape_cast %600 : vector<32xf32> to vector<1x32xf32>
    %cst_219 = arith.constant 8.000000e+00 : f32
    %602 = vector.broadcast %cst_219 : f32 to vector<1x32xf32>
    %603 = arith.divf %601, %602 : vector<1x32xf32>
    %604 = tpu.concatenate %598, %603 in 0 : vector<1x32xf32>, vector<1x32xf32> -> vector<2x32xf32>
    %cst_220 = arith.constant dense<0.000000e+00> : vector<2x32xf32>
    %605 = tpu.matmul %604, %18, %cst_220 {dimension_numbers = #tpu.dot_dimension_numbers<[1], [0], [0], [1], [0, 0, 1, 1], [], []>} : vector<2x32xf32>, vector<32x32xf32>, vector<2x32xf32> -> vector<2x32xf32>
    %cst_221 = arith.constant 0.000000e+00 : f32
    %606 = vector.broadcast %cst_221 : f32 to vector<2x32xf32>
    %607 = arith.maximumf %605, %606 : vector<2x32xf32>
    %cst_222 = arith.constant dense<0.000000e+00> : vector<2x32xf32>
    %608 = tpu.matmul %607, %19, %cst_222 {dimension_numbers = #tpu.dot_dimension_numbers<[1], [0], [0], [1], [0, 0, 1, 1], [], []>} : vector<2x32xf32>, vector<32x32xf32>, vector<2x32xf32> -> vector<2x32xf32>
    %609 = vector.extract_strided_slice %608 {offsets = [0, 0], sizes = [2, 1], strides = [1, 1]} : vector<2x32xf32> to vector<2x1xf32>
    %cst_223 = arith.constant 6.000000e+00 : f32
    %610 = vector.broadcast %cst_223 : f32 to vector<2x1xf32>
    %611 = arith.divf %609, %610 : vector<2x1xf32>
    %cst_224 = arith.constant 5.000000e-01 : f32
    %612 = vector.broadcast %cst_224 : f32 to vector<2x1xf32>
    %613 = arith.addf %611, %612 : vector<2x1xf32>
    %cst_225 = arith.constant 0.000000e+00 : f32
    %cst_226 = arith.constant 1.000000e+00 : f32
    %614 = vector.broadcast %cst_225 : f32 to vector<2x1xf32>
    %615 = arith.maximumf %614, %613 : vector<2x1xf32>
    %616 = vector.broadcast %cst_226 : f32 to vector<2x1xf32>
    %617 = arith.minimumf %616, %615 : vector<2x1xf32>
    %618 = vector.extract_strided_slice %560 {offsets = [0, 0], sizes = [8, 32], strides = [1, 1]} : vector<16x32xf32> to vector<8x32xf32>
    %619 = vector.extract_strided_slice %617 {offsets = [0, 0], sizes = [1, 1], strides = [1, 1]} : vector<2x1xf32> to vector<1x1xf32>
    %620 = vector.broadcast %619 : vector<1x1xf32> to vector<8x32xf32>
    %621 = arith.mulf %618, %620 : vector<8x32xf32>
    %622 = vector.extract_strided_slice %560 {offsets = [8, 0], sizes = [8, 32], strides = [1, 1]} : vector<16x32xf32> to vector<8x32xf32>
    %623 = vector.extract_strided_slice %617 {offsets = [1, 0], sizes = [1, 1], strides = [1, 1]} : vector<2x1xf32> to vector<1x1xf32>
    %624 = vector.broadcast %623 : vector<1x1xf32> to vector<8x32xf32>
    %625 = arith.mulf %622, %624 : vector<8x32xf32>
    %626 = tpu.concatenate %621, %625 in 0 : vector<8x32xf32>, vector<8x32xf32> -> vector<16x32xf32>
    %627 = arith.addf %593, %626 : vector<16x32xf32>
    %628 = math.tanh %627 : vector<16x32xf32>
    %629 = arith.mulf %533, %428 : vector<16x32xf32>
    %cst_227 = arith.constant 1.000000e+00 : f32
    %630 = vector.broadcast %cst_227 : f32 to vector<16x32xf32>
    %631 = arith.subf %630, %533 : vector<16x32xf32>
    %632 = arith.mulf %631, %628 : vector<16x32xf32>
    %633 = arith.addf %629, %632 : vector<16x32xf32>
    %c2_228 = arith.constant 2 : index
    %c0_229 = arith.constant 0 : index
    %c0_230 = arith.constant 0 : index
    %634 = vector.load %arg8[%c2_228, %c0_229, %c0_230] : memref<3x16x32xf32, #tpu.memory_space<vmem>>, vector<1x16x32xf32>
    %635 = vector.shape_cast %634 : vector<1x16x32xf32> to vector<16x32xf32>
    %636 = vector.shape_cast %633 : vector<16x32xf32> to vector<1x16x32xf32>
    tpu.vector_store %arg8[%c2_228, %c0_229, %c0_230], %636 {strides = array<i32>} : memref<3x16x32xf32, #tpu.memory_space<vmem>>, vector<1x16x32xf32>,
    return
  }
  func.func @transform_0(%arg0: i32) -> (i32, i32, i32) {
    %c0_i32 = arith.constant 0 : i32
    %c0_i32_0 = arith.constant 0 : i32
    %c0_i32_1 = arith.constant 0 : i32
    %c0_i32_2 = arith.constant 0 : i32
    return %c0_i32, %c0_i32_0, %c0_i32_1 : i32, i32, i32
  }
  func.func @transform_1(%arg0: i32) -> (i32, i32) {
    %c0_i32 = arith.constant 0 : i32
    %c0_i32_0 = arith.constant 0 : i32
    %c0_i32_1 = arith.constant 0 : i32
    return %c0_i32, %c0_i32_0 : i32, i32
  }
  func.func @transform_2(%arg0: i32) -> (i32, i32) {
    %c0_i32 = arith.constant 0 : i32
    %c0_i32_0 = arith.constant 0 : i32
    %c0_i32_1 = arith.constant 0 : i32
    return %c0_i32, %c0_i32_0 : i32, i32
  }
  func.func @transform_3(%arg0: i32) -> (i32, i32) {
    %c0_i32 = arith.constant 0 : i32
    %c0_i32_0 = arith.constant 0 : i32
    %c0_i32_1 = arith.constant 0 : i32
    return %c0_i32, %c0_i32_0 : i32, i32
  }
  func.func @transform_4(%arg0: i32) -> (i32, i32) {
    %c0_i32 = arith.constant 0 : i32
    %c0_i32_0 = arith.constant 0 : i32
    %c0_i32_1 = arith.constant 0 : i32
    return %c0_i32, %c0_i32_0 : i32, i32
  }
  func.func @transform_5(%arg0: i32) -> (i32, i32) {
    %c0_i32 = arith.constant 0 : i32
    %c0_i32_0 = arith.constant 0 : i32
    %c0_i32_1 = arith.constant 0 : i32
    return %c0_i32, %c0_i32_0 : i32, i32
  }
  func.func @transform_6(%arg0: i32) -> (i32, i32) {
    %c0_i32 = arith.constant 0 : i32
    %c0_i32_0 = arith.constant 0 : i32
    %c0_i32_1 = arith.constant 0 : i32
    return %c0_i32, %c0_i32_0 : i32, i32
  }
  func.func @transform_7(%arg0: i32) -> (i32, i32, i32) {
    %c0_i32 = arith.constant 0 : i32
    %c0_i32_0 = arith.constant 0 : i32
    %c0_i32_1 = arith.constant 0 : i32
    %c0_i32_2 = arith.constant 0 : i32
    return %c0_i32, %c0_i32_0, %c0_i32_1 : i32, i32, i32
  }
}

</mosaic_0001>

<bundles_post_ra>
// kernel: rgcn_forward_pallas.1
= control target key start
LH: loop header
LB: loop body
LE: loop exit
PB: predicated region body
PF: predicated region fallthrough
CT: control target
= control target key end

     0   :  { %vm233_vm0 = vcmask 130048   ;;  %s7699_s30 = smov 4   ;;  %vm230_vm1 = vcmask 31744   ;;  %vm444_vm2 = vcmask 1043456   ;;  %vm7700_vm3 = vmmov 1   ;;  %s7702_s28 = smov 36   ;;  %s9853_s1 = inlined_call_operand.vmem [shape: f32[16,32], index: 1, kind: input, shape index: {}]   ;;  %s9854_s2 = inlined_call_operand.vmem [shape: f32[96,16], index: 2, kind: input, shape index: {}]   ;;  %s9855_s0 = inlined_call_operand.vmem [shape: f32[3,16,4], index: 0, kind: input, shape index: {}]   ;;  %s9856_s3 = inlined_call_operand.vmem [shape: f32[128,256], index: 3, kind: input, shape index: {}]   ;;  %s9857_s4 = inlined_call_operand.vmem [shape: f32[656,64], index: 4, kind: input, shape index: {}]   ;;  %s9858_s5 = inlined_call_operand.vmem [shape: f32[128,128], index: 5, kind: input, shape index: {}]   ;;  %s9859_s6 = inlined_call_operand.vmem [shape: f32[400,32], index: 6, kind: input, shape index: {}]   ;;  %s9860_s7 = inlined_call_operand.vmem [shape: f32[3,16,32], index: 7, kind: output, shape index: {}]  }
   0x1   :  { %v7752_v0 = vld [vmem:[%s9853_s1] sm:$0xff]  ;;  %v7757_v1 = vld [vmem:[%s9853_s1 + $0x8] sm:$0xff]  ;;  %v7791_v13 = vld [vmem:[%s9854_s2 + $0x10] sm:$0xff]  ;;  %s7703_s29 = smov 72   ;;  %vm411_vm5 = vcmask 293888   ;;  %vm414_vm6 = vcmask 588800  }
   0x2   :  { %v7579_v2 = vpack.i.bf16 %v7757_v1, %v7752_v0  ;;  %v7764_v3 = vld [vmem:[%s9854_s2] sm:$0xff]  ;;  %v7777_v6 = vld [vmem:[%s9855_s0 + $0x8] sm:$0xff]  ;;  %v7800_v14 = vld [vmem:[%s9854_s2 + $0x18] sm:$0xff]  ;;  %vm437_vm7 = vcmask 883712   ;;  %vm7705_vm8 = vmmov 0   ;;  %vm703_vm10 = vcmask 523264  }
   0x3   :  { %5857 = vmatprep.mubr.msk.f32.mxu0 %vm233_vm0, %v7764_v3  ;;  %v7772_v5 = vld [vmem:[%s9855_s0] sm:$0xff]  ;;  %v7786_v12 = vld [vmem:[%s9854_s2 + $0x8] sm:$0xff]  ;;  %v7819_v17 = vld [vmem:[%s9854_s2 + $0x30] sm:$0xff]  ;;  %vm721_vm12 = vcmask 1040384   ;;  %s7706_s26 = smov 32   ;;  %s7707_s22 = smov 100  }
   0x4   :  { %7580 = vrot.lane.b32.xlu0 %v7579_v2, %s7699_s30  ;;  %v7805_v15 = vld [vmem:[%s9854_s2 + $0x20] sm:$0xff]  ;;  %v7814_v16 = vld [vmem:[%s9854_s2 + $0x28] sm:$0xff]  ;;  %v7828_v18 = vld [vmem:[%s9854_s2 + $0x38] sm:$0xff]  ;;  %s7708_s11 = smov 96  }
   0x5   :  { %v7833_v19 = vld [vmem:[%s9854_s2 + $0x40] sm:$0xff]  ;;  %v7842_v20 = vld [vmem:[%s9854_s2 + $0x48] sm:$0xff]  ;;  %v7847_v21 = vld [vmem:[%s9854_s2 + $0x50] sm:$0xff] }
   0x6   :  { %v7856_v22 = vld [vmem:[%s9854_s2 + $0x58] sm:$0xff]  ;;  %v27_v23 = vld [vmem:[%s9856_s3 + $0x8] sm:$0xff]  ;;  %v26_v25 = vld [vmem:[%s9856_s3] sm:$0xff] }
   0x7   :  { %v29_v24 = vld [vmem:[%s9856_s3 + $0x18] sm:$0xff]  ;;  %v28_v27 = vld [vmem:[%s9856_s3 + $0x10] sm:$0xff]  ;;  %v31_v28 = vld [vmem:[%s9856_s3 + $0x28] sm:$0xff] }
   0x8   :  { %v7869_v26 = vpack.c.bf16 %v29_v24, %v27_v23  ;;  %v33_v29 = vld [vmem:[%s9856_s3 + $0x38] sm:$0xff]  ;;  %v7880_v30 = vpack.c.bf16 %v28_v27, %v26_v25  ;;  %v30_v32 = vld [vmem:[%s9856_s3 + $0x20] sm:$0xff]  ;;  %v32_v33 = vld [vmem:[%s9856_s3 + $0x30] sm:$0xff] }
   0x9   :  { %v7882_v31 = vpack.c.bf16 %v33_v29, %v31_v28  ;;  %v35_v34 = vld [vmem:[%s9856_s3 + $0x48] sm:$0xff]  ;;  %v37_v35 = vld [vmem:[%s9856_s3 + $0x58] sm:$0xff]  ;;  %v7898_v36 = vpack.c.bf16 %v32_v33, %v30_v32  ;;  %v34_v38 = vld [vmem:[%s9856_s3 + $0x40] sm:$0xff] }
   0xa   :  { %6734 = vmatprep.subr.bf16.mxu1 %v7869_v26  ;;  %v7901_v37 = vpack.c.bf16 %v37_v35, %v35_v34  ;;  %v36_v39 = vld [vmem:[%s9856_s3 + $0x50] sm:$0xff]  ;;  %v39_v40 = vld [vmem:[%s9856_s3 + $0x68] sm:$0xff]  ;;  %v41_v41 = vld [vmem:[%s9856_s3 + $0x78] sm:$0xff] }
   0xb   :  { %6736 = vmatpush1.bf16.msra.mxu1 %v7880_v30  ;;  %v7916_v42 = vpack.c.bf16 %v36_v39, %v34_v38  ;;  %v7919_v43 = vpack.c.bf16 %v41_v41, %v39_v40  ;;  %v38_v44 = vld [vmem:[%s9856_s3 + $0x60] sm:$0xff]  ;;  %v40_v45 = vld [vmem:[%s9856_s3 + $0x70] sm:$0xff]  ;;  %v43_v46 = vld [vmem:[%s9856_s3 + $0x88] sm:$0xff] }
   0xc   :  { %6738 = vmatprep.subr.bf16.mxu1 %v7882_v31  ;;  %v45_v47 = vld [vmem:[%s9856_s3 + $0x98] sm:$0xff]  ;;  %v7934_v48 = vpack.c.bf16 %v40_v45, %v38_v44  ;;  %v42_v50 = vld [vmem:[%s9856_s3 + $0x80] sm:$0xff]  ;;  %v44_v51 = vld [vmem:[%s9856_s3 + $0x90] sm:$0xff] }
   0xd   :  { %9993 = vst [vmem:[#allocation2_spill] sm:$0xff] %v7919_v43  ;;  %v7937_v49 = vpack.c.bf16 %v45_v47, %v43_v46  ;;  %v47_v52 = vld [vmem:[%s9856_s3 + $0xa8] sm:$0xff]  ;;  %v49_v53 = vld [vmem:[%s9856_s3 + $0xb8] sm:$0xff]  ;;  %v7952_v54 = vpack.c.bf16 %v44_v51, %v42_v50  ;;  %v46_v56 = vld [vmem:[%s9856_s3 + $0xa0] sm:$0xff] }
   0xe   :  { %9994 = vst [vmem:[#allocation3_spill] sm:$0xff] %v7934_v48  ;;  %v7955_v55 = vpack.c.bf16 %v49_v53, %v47_v52  ;;  %v48_v57 = vld [vmem:[%s9856_s3 + $0xb0] sm:$0xff]  ;;  %v51_v59 = vld [vmem:[%s9856_s3 + $0xc8] sm:$0xff]  ;;  %v53_v60 = vld [vmem:[%s9856_s3 + $0xd8] sm:$0xf] }
   0xf   :  { %6740 = vmatpush1.bf16.msra.mxu1 %v7898_v36  ;;  %9995 = vst [vmem:[#allocation4_spill] sm:$0xff] %v7937_v49  ;;  %9996 = vst [vmem:[#allocation5_spill] sm:$0xff] %v7952_v54  ;;  %v7964_v58 = vpack.c.bf16 %v48_v57, %v46_v56  ;;  %v7974_v61 = vpack.c.bf16 %v53_v60, %v51_v59  ;;  %v50_v62 = vld [vmem:[%s9856_s3 + $0xc0] sm:$0xff]  ;;  %v52_v63 = vld [vmem:[%s9856_s3 + $0xd0] sm:$0xf] }
  0x10   :  { %6742 = vmatprep.subr.bf16.mxu1 %v7901_v37  ;;  %9997 = vst [vmem:[#allocation6_spill] sm:$0xff] %v7955_v55  ;;  %vm7982_vm4 = vmpackc.low %vm444_vm2, %vm7700_vm3  ;;  %v93_v23 = vld [vmem:[%s9857_s4 + $0x118] sm:$0xff]  ;;  %v74_v39 = vld [vmem:[%s9857_s4 + $0x80] sm:$0xff]  ;;  %vm1511_vm3 = vcmask 261120  }
  0x11   :  { %9998 = vst [vmem:[#allocation7_spill] sm:$0xff] %v7964_v58  ;;  %9999 = vst [vmem:[#allocation8_spill] sm:$0xff] %v7974_v61  ;;  %v75_v40 = vld [vmem:[%s9857_s4 + $0x88] sm:$0xff]  ;;  %v58_v41 = vld [vmem:[%s9857_s4] sm:$0xff] }
  0x12   :  { %v8029_v44 = vpack.c.bf16 %v75_v40, %v74_v39  ;;  %v59_v45 = vld [vmem:[%s9857_s4 + $0x8] sm:$0xff]  ;;  %v76_v46 = vld [vmem:[%s9857_s4 + $0x90] sm:$0xff]  ;;  %v77_v47 = vld [vmem:[%s9857_s4 + $0x98] sm:$0xff] }
  0x13   :  { %6744 = vmatpush1.bf16.msra.mxu1 %v7916_v42  ;;  %v8040_v50 = vpack.c.bf16 %v59_v45, %v58_v41  ;;  %v8042_v51 = vpack.c.bf16 %v77_v47, %v76_v46  ;;  %v60_v52 = vld [vmem:[%s9857_s4 + $0x10] sm:$0xff]  ;;  %v61_v53 = vld [vmem:[%s9857_s4 + $0x18] sm:$0xff]  ;;  %v78_v56 = vld [vmem:[%s9857_s4 + $0xa0] sm:$0xff] }
  0x14   :  { %6746 = vmatprep.subr.bf16.mxu1 %v7919_v43  ;;  %10004 = vst [vmem:[#allocation11_spill] sm:$0xff] %v8029_v44  ;;  %v79_v57 = vld [vmem:[%s9857_s4 + $0xa8] sm:$0xff]  ;;  %v8058_v59 = vpack.c.bf16 %v61_v53, %v60_v52  ;;  %v66_v39 = vld [vmem:[%s9857_s4 + $0x40] sm:$0xff]  ;;  %v84_v41 = vld [vmem:[%s9857_s4 + $0xd0] sm:$0xff] }
  0x15   :  { %10005 = vst [vmem:[#allocation12_spill] sm:$0xff] %v8040_v50  ;;  %10006 = vst [vmem:[#allocation13_spill] sm:$0xff] %v8042_v51  ;;  %v8061_v60 = vpack.c.bf16 %v79_v57, %v78_v56  ;;  %v67_v40 = vld [vmem:[%s9857_s4 + $0x48] sm:$0xff]  ;;  %v85_v45 = vld [vmem:[%s9857_s4 + $0xd8] sm:$0xff] }
  0x16   :  { %10007 = vst [vmem:[#allocation14_spill] sm:$0xff] %v8058_v59  ;;  %v8112_v46 = vpack.c.bf16 %v67_v40, %v66_v39  ;;  %v8115_v47 = vpack.c.bf16 %v85_v45, %v84_v41  ;;  %v68_v52 = vld [vmem:[%s9857_s4 + $0x50] sm:$0xff]  ;;  %v69_v53 = vld [vmem:[%s9857_s4 + $0x58] sm:$0xff]  ;;  %v86_v56 = vld [vmem:[%s9857_s4 + $0xe0] sm:$0xff] }
  0x17   :  { %6748 = vmatpush1.bf16.msra.mxu1 %v7934_v48  ;;  %10008 = vst [vmem:[#allocation15_spill] sm:$0xff] %v8061_v60  ;;  %v87_v57 = vld [vmem:[%s9857_s4 + $0xe8] sm:$0xff]  ;;  %v7693_v2 = vld [vmem:[%s9858_s5 + $0x70] sm:$0xff] }
  0x18   :  { %6750 = vmatprep.subr.bf16.mxu1 %v7937_v49  ;;  %10013 = vst [vmem:[#allocation20_spill] sm:$0xff] %v8112_v46  ;;  %10014 = vst [vmem:[#allocation21_spill] sm:$0xff] %v8115_v47 }
  0x1b   :  { %6752 = vmatpush1.bf16.msra.mxu1 %v7952_v54 }
  0x1c   :  { %6754 = vmatprep.subr.bf16.mxu1 %v7955_v55 }
  0x1f   :  { %6756 = vmatpush1.bf16.msra.mxu1 %v7964_v58 }
  0x20   :  { %6759 = vmatprep.subr.msk.bf16.mxu1 %vm7982_vm4, %v7974_v61 }
  0x76   :  { %v7581_v4 = vpop.permute.xlu0 %7580 }
  0x77   :  { %v7583_v7 = vunpack.i.h.bf16 %v7581_v4  ;;  %v7582_v8 = vunpack.i.l.bf16 %v7581_v4  ;;  %v7986_v4 = vpack.c.bf16 %v52_v63, %v50_v62  ;;  %v62_v62 = vld [vmem:[%s9857_s4 + $0x20] sm:$0xff]  ;;  %v63_v63 = vld [vmem:[%s9857_s4 + $0x28] sm:$0xff] }
  0x79   :  { %v231_v9 = vsel %vm230_vm1, %v7772_v5, %v7582_v8  ;;  %v232_v10 = vsel %vm230_vm1, %v7777_v6, %v7583_v7  ;;  %10002 = vst [vmem:[#allocation9_spill] sm:$0xff] %v7986_v4  ;;  %6762 = vmatpush1.bf16.msk.msra.mxu1 %vm7982_vm4, %v7986_v4  ;;  %v9861_v7 = vmov 0.0  }
  0x7a   :  { %v6729_v11 = vpack.c.bf16 %v232_v10, %v231_v9  ;;  %515 = vmatprep.mubr.f32.mxu1 %v9861_v7 }
  0x7c   :  { %6730 = vmatprep.subr.bf16.mxu0 %v6729_v11 }
  0x7d   :  { %6732 = vmatpush3.bf16.msra.mxu0 %v6729_v11  ;;  %v92_v11 = vld [vmem:[%s9857_s4 + $0x110] sm:$0xff] }
  0x7e   :  { %v8005_v25 = vpack.c.bf16 %v93_v23, %v92_v11  ;;  %6764 = vmatprep.subr.bf16.mxu0 %v8029_v44  ;;  %v81_v11 = vld [vmem:[%s9857_s4 + $0xb8] sm:$0xff]  ;;  %v8076_v23 = vpack.c.bf16 %v63_v63, %v62_v62  ;;  %v8130_v62 = vpack.c.bf16 %v69_v53, %v68_v52  ;;  %v8133_v63 = vpack.c.bf16 %v87_v57, %v86_v56  ;;  %v96_v52 = vld [vmem:[%s9857_s4 + $0x130] sm:$0xff] }
  0x7f   :  { %v97_v53 = vld [vmem:[%s9857_s4 + $0x138] sm:$0xff] }
  0x80   :  { %5858 = vmatmul.mubr.msk.f32.vlgmr.msra.gmra.mrb[0].mxu0 %vm233_vm0, %v7786_v12  ;;  %10003 = vst [vmem:[#allocation10_spill] sm:$0xff] %v8005_v25  ;;  %6796 = vmatprep.subr.bf16.mxu1 %v8005_v25  ;;  %10009 = vst [vmem:[#allocation16_spill] sm:$0xff] %v8076_v23 }
  0x81   :  { %5860 = vmatprep.mubr.msk.f32.mxu0 %vm233_vm0, %v7791_v13  ;;  %6766 = vmatpush3.bf16.msra.mxu0 %v8040_v50  ;;  %10015 = vst [vmem:[#allocation22_spill] sm:$0xff] %v8130_v62  ;;  %10016 = vst [vmem:[#allocation23_spill] sm:$0xff] %v8133_v63 }
  0x82   :  { %6768 = vmatprep.subr.bf16.mxu0 %v8042_v51 }
  0x84   :  { %5861 = vmatmul.mubr.msk.f32.gmra.mrb[2].mxu0 %vm233_vm0, %v7800_v14 }
  0x85   :  { %5863 = vmatprep.mubr.msk.f32.mxu0 %vm233_vm0, %v7805_v15  ;;  %6770 = vmatpush3.bf16.msra.mxu0 %v8058_v59 }
  0x86   :  { %6772 = vmatprep.subr.bf16.mxu0 %v8061_v60 }
  0x88   :  { %5864 = vmatmul.mubr.msk.f32.gmra.mrb[4].mxu0 %vm233_vm0, %v7814_v16 }
  0x89   :  { %5866 = vmatprep.mubr.msk.f32.mxu0 %vm233_vm0, %v7819_v17  ;;  %6774 = vmatpush3.bf16.msra.mxu0 %v8076_v23 }
  0x8c   :  { %5867 = vmatmul.mubr.msk.f32.gmra.mrb[6].mxu0 %vm233_vm0, %v7828_v18 }
  0x8d   :  { %5869 = vmatprep.mubr.msk.f32.mxu0 %vm233_vm0, %v7833_v19 }
  0x90   :  { %5870 = vmatmul.mubr.msk.f32.gmra.mrb[8].mxu0 %vm233_vm0, %v7842_v20 }
  0x91   :  { %5872 = vmatprep.mubr.msk.f32.mxu0 %vm233_vm0, %v7847_v21 }
  0x94   :  { %5873 = vmatmul.mubr.msk.f32.gmra.mrb[10].mxu0 %vm233_vm0, %v7856_v22 }
 0x153   :  { %v7995_v8 = vpop.f32.mrb[0].mxu0 }
 0x154   :  { %v7997_v9 = vpop.f32.mrb[1].mxu0 }
 0x157   :  { %v5862_v10 = vpop.f32.mrb[2].mxu0 }
 0x158   :  { %v346_v24 = vpop.f32.mrb[3].mxu0 }
 0x159   :  { %397 = vrot.lane.b32.xlu0 %v346_v24, %s7702_s28 }
 0x15b   :  { %v5865_v27 = vpop.f32.mrb[4].mxu0 }
 0x15c   :  { %v356_v28 = vpop.f32.mrb[5].mxu0 }
 0x15d   :  { %407 = vrot.lane.b32.xlu0 %v5865_v27, %s7703_s29  ;;  %405 = vrot.lane.b32.xlu1 %v356_v28, %s7703_s29  ;;  %v64_v27 = vld [vmem:[%s9857_s4 + $0x30] sm:$0xff]  ;;  %v65_v28 = vld [vmem:[%s9857_s4 + $0x38] sm:$0xff] }
 0x15f   :  { %v8011_v29 = vpop.f32.mrb[6].mxu0 }
 0x160   :  { %v8013_v32 = vpop.f32.mrb[7].mxu0 }
 0x161   :  { %399 = vrot.lane.b32.xlu1 %v5862_v10, %s7702_s28  ;;  %v80_v10 = vld [vmem:[%s9857_s4 + $0xb0] sm:$0xff] }
 0x162   :  { %v8079_v24 = vpack.c.bf16 %v81_v11, %v80_v10  ;;  %v70_v10 = vld [vmem:[%s9857_s4 + $0x60] sm:$0xff]  ;;  %v71_v11 = vld [vmem:[%s9857_s4 + $0x68] sm:$0xff] }
 0x163   :  { %v5871_v33 = vpop.f32.mrb[8].mxu0 }
 0x164   :  { %v376_v34 = vpop.f32.mrb[9].mxu0  ;;  %421 = vrot.lane.b32.xlu0 %v5871_v33, %s7702_s28  ;;  %10010 = vst [vmem:[#allocation17_spill] sm:$0xff] %v8079_v24  ;;  %v82_v33 = vld [vmem:[%s9857_s4 + $0xc0] sm:$0xff]  ;;  %6776 = vmatprep.subr.bf16.mxu0 %v8079_v24 }
 0x165   :  { %419 = vrot.lane.b32.xlu1 %v376_v34, %s7702_s28  ;;  %v83_v34 = vld [vmem:[%s9857_s4 + $0xc8] sm:$0xff] }
 0x167   :  { %v5874_v35 = vpop.f32.mrb[10].mxu0 }
 0x168   :  { %v386_v38 = vpop.f32.mrb[11].mxu0  ;;  %429 = vrot.lane.b32.xlu0 %v5874_v35, %s7703_s29  ;;  %v8094_v35 = vpack.c.bf16 %v65_v28, %v64_v27  ;;  %v8142_v27 = vpack.c.bf16 %v71_v11, %v70_v10  ;;  %v8169_v10 = vpack.c.bf16 %v97_v53, %v96_v52 }
 0x169   :  { %427 = vrot.lane.b32.xlu1 %v386_v38, %s7703_s29  ;;  %v8097_v38 = vpack.c.bf16 %v83_v34, %v82_v33  ;;  %v94_v33 = vld [vmem:[%s9857_s4 + $0x120] sm:$0xff]  ;;  %v95_v34 = vld [vmem:[%s9857_s4 + $0x128] sm:$0xff] }
 0x16a   :  { %10011 = vst [vmem:[#allocation18_spill] sm:$0xff] %v8094_v35  ;;  %6778 = vmatpush3.bf16.msra.mxu0 %v8094_v35  ;;  %10017 = vst [vmem:[#allocation24_spill] sm:$0xff] %v8142_v27  ;;  %v8154_v41 = vpack.c.bf16 %v95_v34, %v94_v33  ;;  %v99_v33 = vld [vmem:[%s9857_s4 + $0x148] sm:$0xff] }
 0x16b   :  { %10012 = vst [vmem:[#allocation19_spill] sm:$0xff] %v8097_v38  ;;  %6780 = vmatprep.subr.bf16.mxu0 %v8097_v38  ;;  %10019 = vst [vmem:[#allocation26_spill] sm:$0xff] %v8169_v10 }
 0x16c   :  { %10018 = vst [vmem:[#allocation25_spill] sm:$0xff] %v8154_v41 }
 0x16e   :  { %6782 = vmatpush3.bf16.msra.mxu0 %v8112_v46 }
 0x16f   :  { %6784 = vmatprep.subr.bf16.mxu0 %v8115_v47 }
 0x172   :  { %6786 = vmatpush3.bf16.msra.mxu0 %v8130_v62 }
 0x173   :  { %6788 = vmatprep.subr.bf16.mxu0 %v8133_v63 }
 0x176   :  { %6790 = vmatpush3.bf16.msra.mxu0 %v8142_v27 }
 0x1cb   :  { %v398_v28 = vpop.permute.xlu0 %397 }
 0x1cc   :  { %v412_v39 = vsel %vm411_vm5, %v7997_v9, %v398_v28  ;;  %v98_v28 = vld [vmem:[%s9857_s4 + $0x140] sm:$0xff] }
 0x1cf   :  { %v406_v40 = vpop.permute.xlu1 %405  ;;  %v408_v56 = vpop.permute.xlu0 %407 }
 0x1d0   :  { %v415_v45 = vsel %vm414_vm6, %v412_v39, %v406_v40  ;;  %v100_v39 = vld [vmem:[%s9857_s4 + $0x150] sm:$0xff]  ;;  %v101_v40 = vld [vmem:[%s9857_s4 + $0x158] sm:$0xff] }
 0x1d1   :  { %5154 = vmatmul.mubr.msk.f32.vlgmr.msra.gmra.mrb[0].mxu1 %vm437_vm7, %v415_v45  ;;  %v8193_v53 = vpack.c.bf16 %v101_v40, %v100_v39 }
 0x1d2   :  { %521 = vmatprep.mubr.f32.mxu1 %v9861_v7  ;;  %6798 = vmatpush3.bf16.msra.mxu1 %v8005_v25 }
 0x1d3   :  { %v400_v9 = vpop.permute.xlu1 %399  ;;  %6800 = vmatprep.subr.bf16.mxu1 %v8154_v41  ;;  %10021 = vst [vmem:[#allocation28_spill] sm:$0xff] %v8193_v53 }
 0x1d4   :  { %v413_v57 = vsel %vm411_vm5, %v7995_v8, %v400_v9  ;;  %v8181_v8 = vpack.c.bf16 %v99_v33, %v98_v28  ;;  %v105_v28 = vld [vmem:[%s9857_s4 + $0x178] sm:$0xf] }
 0x1d5   :  { %v416_v11 = vsel %vm414_vm6, %v413_v57, %v408_v56  ;;  %v102_v56 = vld [vmem:[%s9857_s4 + $0x160] sm:$0xff]  ;;  %v103_v57 = vld [vmem:[%s9857_s4 + $0x168] sm:$0xff] }
 0x1d6   :  { %5155 = vmatmul.mubr.msk.f32.gmra.mrb[2].mxu1 %vm437_vm7, %v416_v11  ;;  %10020 = vst [vmem:[#allocation27_spill] sm:$0xff] %v8181_v8  ;;  %v104_v11 = vld [vmem:[%s9857_s4 + $0x170] sm:$0xff]  ;;  %v422_v33 = vpop.permute.xlu0 %421 }
 0x1d7   :  { %6802 = vmatpush3.bf16.msra.mxu1 %v8154_v41  ;;  %v420_v34 = vpop.permute.xlu1 %419  ;;  %v434_v39 = vsel %vm411_vm5, %v8011_v29, %v422_v33  ;;  %v89_v29 = vld [vmem:[%s9857_s4 + $0xf8] sm:$0xff] }
 0x1d8   :  { %6804 = vmatprep.subr.bf16.mxu1 %v8169_v10  ;;  %v433_v45 = vsel %vm411_vm5, %v8013_v32, %v420_v34  ;;  %v8205_v32 = vpack.c.bf16 %v103_v57, %v102_v56  ;;  %v8215_v34 = vpack.c.bf16 %v105_v28, %v104_v11  ;;  %v72_v56 = vld [vmem:[%s9857_s4 + $0x70] sm:$0xff]  ;;  %v73_v57 = vld [vmem:[%s9857_s4 + $0x78] sm:$0xff] }
 0x1d9   :  { %v8242_v11 = vpack.c.bf16 %v73_v57, %v72_v56  ;;  %v124_v28 = vld [vmem:[%s9857_s4 + $0x210] sm:$0xff]  ;;  %v125_v33 = vld [vmem:[%s9857_s4 + $0x218] sm:$0xff] }
 0x1da   :  { %10022 = vst [vmem:[#allocation29_spill] sm:$0xff] %v8205_v32  ;;  %10023 = vst [vmem:[#allocation30_spill] sm:$0xff] %v8215_v34  ;;  %v430_v40 = vpop.permute.xlu0 %429  ;;  %v128_v56 = vld [vmem:[%s9857_s4 + $0x230] sm:$0xff]  ;;  %v129_v57 = vld [vmem:[%s9857_s4 + $0x238] sm:$0xff] }
 0x1db   :  { %6806 = vmatpush3.bf16.msra.mxu1 %v8169_v10  ;;  %v428_v52 = vpop.permute.xlu1 %427  ;;  %10025 = vst [vmem:[#allocation32_spill] sm:$0xff] %v8242_v11 }
 0x1dc   :  { %6808 = vmatprep.subr.bf16.mxu1 %v8181_v8  ;;  %v435_v9 = vsel %vm414_vm6, %v433_v45, %v428_v52  ;;  %v436_v45 = vsel %vm414_vm6, %v434_v39, %v430_v40  ;;  %v88_v52 = vld [vmem:[%s9857_s4 + $0xf0] sm:$0xff]  ;;  %v126_v39 = vld [vmem:[%s9857_s4 + $0x220] sm:$0xff]  ;;  %v9869_v40 = vmov 0.0|0.0  }
 0x1dd   :  { %5903 = vmatprep.mubr.msk.f32.mxu1 %vm437_vm7, %v435_v9  ;;  %v8234_v9 = vpack.c.bf16 %v89_v29, %v88_v52  ;;  %v127_v52 = vld [vmem:[%s9857_s4 + $0x228] sm:$0xff] }
 0x1de   :  { %v8265_v29 = vpack.c.bf16 %v127_v52, %v126_v39  ;;  %v131_v39 = vld [vmem:[%s9857_s4 + $0x248] sm:$0xff] }
 0x1df   :  { %6810 = vmatpush3.bf16.msra.mxu1 %v8181_v8  ;;  %10024 = vst [vmem:[#allocation31_spill] sm:$0xff] %v8234_v9  ;;  %6792 = vmatprep.subr.bf16.mxu0 %v8234_v9 }
 0x1e0   :  { %6812 = vmatprep.subr.bf16.mxu1 %v8193_v53  ;;  %6794 = vmatpush3.bf16.msra.mxu0 %v8242_v11  ;;  %10027 = vst [vmem:[#allocation34_spill] sm:$0xff] %v8265_v29 }
 0x1e1   :  { %6825 = vmatprep.subr.bf16.mxu0 %v9869_v40 }
 0x1e3   :  { %6814 = vmatpush3.bf16.msra.mxu1 %v8193_v53  ;;  %v10030_v53 = vmov 0.0  }
 0x1e4   :  { %6816 = vmatprep.subr.bf16.mxu1 %v8205_v32 }
 0x1e7   :  { %6818 = vmatpush3.bf16.msra.mxu1 %v8205_v32 }
 0x1e8   :  { %6821 = vmatprep.subr.msk.bf16.mxu1 %vm7982_vm4, %v8215_v34 }
 0x1eb   :  { %6824 = vmatpush3.bf16.msk.msra.mxu1 %vm7982_vm4, %v8215_v34 }
 0x1ec   :  { %6849 = vmatprep.subr.bf16.mxu1 %v9869_v40 }
 0x1ee   :  { %5904 = vmatmul.mubr.msk.f32.vlgmr.msra.gmra.mrb[4].mxu1 %vm437_vm7, %v436_v45  ;;  %v8256_v45 = vpack.c.bf16 %v125_v33, %v124_v28  ;;  %v8275_v28 = vpack.c.bf16 %v129_v57, %v128_v56  ;;  %v130_v33 = vld [vmem:[%s9857_s4 + $0x240] sm:$0xff]  ;;  %v55_v56 = vld [vmem:[%s9856_s3 + $0xe8] sm:$0xff] }
 0x1ef   :  { %5960 = vmatprep.mubr.msk.f32.mxu1 %vm7705_vm8, %v9861_v7  ;;  %v8285_v52 = vpack.c.bf16 %v131_v39, %v130_v33  ;;  %v54_v57 = vld [vmem:[%s9856_s3 + $0xe0] sm:$0xff]  ;;  %v57_v33 = vld [vmem:[%s9856_s3 + $0xf8] sm:$0xff]  ;;  %v56_v39 = vld [vmem:[%s9856_s3 + $0xf0] sm:$0xff] }
 0x1f0   :  { %10026 = vst [vmem:[#allocation33_spill] sm:$0xff] %v8256_v45  ;;  %6851 = vmatpush3.bf16.msra.mxu1 %v8256_v45  ;;  %10028 = vst [vmem:[#allocation35_spill] sm:$0xff] %v8275_v28 }
 0x1f1   :  { %6852 = vmatprep.subr.bf16.mxu1 %v9869_v40  ;;  %10029 = vst [vmem:[#allocation36_spill] sm:$0xff] %v8285_v52 }
 0x1f4   :  { %6854 = vmatpush3.bf16.msra.mxu1 %v8265_v29 }
 0x1f5   :  { %6855 = vmatprep.subr.bf16.mxu1 %v9869_v40 }
 0x1f8   :  { %6857 = vmatpush3.bf16.msra.mxu1 %v8275_v28 }
 0x1f9   :  { %6858 = vmatprep.subr.bf16.mxu1 %v9869_v40 }
 0x1fc   :  { %6860 = vmatpush3.bf16.msra.mxu1 %v8285_v52 }
 0x2a4   :  { %v517_v7 = vpop.f32.mrb[0].mxu1 }
 0x2a5   :  { %v519_v29 = vpop.f32.mrb[1].mxu1  ;;  %v528_v34 = vmul.f32 %v517_v7, %v54_v57  ;;  %v107_v7 = vld [vmem:[%s9857_s4 + $0x188] sm:$0xff] }
 0x2a6   :  { %v529_v45 = vmul.f32 %v519_v29, %v55_v56 }
 0x2a8   :  { %596 = vmatprep.mubr.f32.mxu0 %v529_v45  ;;  %v106_v45 = vld [vmem:[%s9857_s4 + $0x180] sm:$0xff] }
 0x2a9   :  { %v523_v40 = vpop.f32.mrb[2].mxu1  ;;  %597 = vmatmul.mubr.f32.vlgmr.msra.gmra.mrb[12].mxu0 %v528_v34 }
 0x2aa   :  { %v525_v52 = vpop.f32.mrb[3].mxu1  ;;  %v530_v32 = vmul.f32 %v523_v40, %v56_v39 }
 0x2ab   :  { %v531_v28 = vmul.f32 %v525_v52, %v57_v33 }
 0x2ad   :  { %601 = vmatprep.mubr.f32.mxu0 %v531_v28 }
 0x2ae   :  { %602 = vmatmul.mubr.f32.gmra.mrb[14].mxu0 %v530_v32 }
 0x2af   :  { %5922 = vmatprep.mubr.msk.f32.mxu0 %vm7705_vm8, %v10030_v53 }
 0x2c1   :  { %v5905_v29 = vpop.f32.mrb[4].mxu1 }
 0x2c2   :  { %v688_v56 = vadd.f32 %v5905_v29, %v107_v7  ;;  %v682_v57 = vpop.f32.mrb[5].mxu1 }
 0x2c3   :  { %v683_v34 = vadd.f32 %v682_v57, %v106_v45 }
 0x2c4   :  { %vm698_vm9 = vcmp.ge.f32.partialorder %v688_v56, 0.0  ;;  %v700_v52 = vmul.f32 0.01, %v688_v56 }
 0x2c5   :  { %vm697_vm11 = vcmp.ge.f32.partialorder %v683_v34, 0.0  ;;  %v699_v32 = vmul.f32 0.01, %v683_v34 }
 0x2c6   :  { %v8309_v40 = vsel %vm698_vm9, %v688_v56, %v700_v52 }
 0x2c7   :  { %v893_v28 = vsel %vm703_vm10, %v8309_v40, 0.0  ;;  %v8313_v33 = vsel %vm697_vm11, %v683_v34, %v699_v32 }
 0x2c8   :  { %v894_v39 = vrot.slane %v893_v28, 4  ;;  %v885_v8 = vsel %vm703_vm10, %v8313_v33, 0.0 }
 0x2c9   :  { %v886_v10 = vrot.slane %v885_v8, 4 }
 0x2ca   :  { %v895_v7 = vadd.f32 %v894_v39, %v893_v28  ;;  %v114_v28 = vld [vmem:[%s9857_s4 + $0x1c0] sm:$0xff]  ;;  %v115_v39 = vld [vmem:[%s9857_s4 + $0x1c8] sm:$0xff] }
 0x2cb   :  { %v887_v29 = vadd.f32 %v886_v10, %v885_v8  ;;  %v108_v10 = vld [vmem:[%s9857_s4 + $0x190] sm:$0xff]  ;;  %v109_v8 = vld [vmem:[%s9857_s4 + $0x198] sm:$0xff] }
 0x2cc   :  { %v896_v45 = vrot.slane %v895_v7, 2 }
 0x2cd   :  { %v888_v57 = vrot.slane %v887_v29, 2 }
 0x2ce   :  { %v897_v41 = vadd.f32 %v896_v45, %v895_v7  ;;  %v8357_v7 = vpack.c.bf16 %v115_v39, %v114_v28  ;;  %v90_v45 = vld [vmem:[%s9857_s4 + $0x100] sm:$0xff] }
 0x2cf   :  { %v889_v11 = vadd.f32 %v888_v57, %v887_v29 }
 0x2d0   :  { %v898_v9 = vrot.slane %v897_v41, 1  ;;  %10035 = vst [vmem:[#allocation40_spill] sm:$0xff] %v8357_v7 }
 0x2d1   :  { %v890_v27 = vrot.slane %v889_v11, 1 }
 0x2d2   :  { %v899_v56 = vadd.f32 %v898_v9, %v897_v41  ;;  %v8327_v41 = vpack.c.bf16 %v109_v8, %v108_v10  ;;  %v112_v9 = vld [vmem:[%s9857_s4 + $0x1b0] sm:$0xff]  ;;  %v91_v8 = vld [vmem:[%s9857_s4 + $0x108] sm:$0xff] }
 0x2d3   :  { %v891_v52 = vadd.f32 %v890_v27, %v889_v11  ;;  %v10032_v27 = vmov 0.0|0.0   ;;  %v113_v11 = vld [vmem:[%s9857_s4 + $0x1b8] sm:$0xff] }
 0x2d4   :  { %v900_v63 = vmul.f32 0.125, %v899_v56  ;;  %10031 = vst [vmem:[#allocation37_spill] sm:$0xff] %v8327_v41  ;;  %6827 = vmatpush3.bf16.msra.mxu0 %v8327_v41  ;;  %v8347_v32 = vpack.c.bf16 %v113_v11, %v112_v9 }
 0x2d5   :  { %v892_v62 = vmul.f32 0.125, %v891_v52  ;;  %6828 = vmatprep.subr.bf16.mxu0 %v10032_v27 }
 0x2d6   :  { %10034 = vst [vmem:[#allocation39_spill] sm:$0xff] %v8347_v32 }
 0x2d7   :  { %v901_v34 = vsel %vm721_vm12, %v892_v62, %v900_v63  ;;  %v110_v62 = vld [vmem:[%s9857_s4 + $0x1a0] sm:$0xff] }
 0x2d8   :  { %5961 = vmatmul.mubr.msk.f32.vlgmr.msra.gmra.mrb[6].mxu1 %vm703_vm10, %v901_v34 }
 0x2d9   :  { %5986 = vmatprep.mubr.msk.f32.mxu1 %vm233_vm0, %v7764_v3  ;;  %v111_v3 = vld [vmem:[%s9857_s4 + $0x1a8] sm:$0xff] }
 0x2da   :  { %v8337_v63 = vpack.c.bf16 %v111_v3, %v110_v62 }
 0x2dc   :  { %10033 = vst [vmem:[#allocation38_spill] sm:$0xff] %v8337_v63  ;;  %6830 = vmatpush3.bf16.msra.mxu0 %v8337_v63 }
 0x2dd   :  { %6831 = vmatprep.subr.bf16.mxu0 %v10032_v27 }
 0x2e0   :  { %6833 = vmatpush3.bf16.msra.mxu0 %v8347_v32 }
 0x2e1   :  { %6834 = vmatprep.subr.bf16.mxu0 %v10032_v27 }
 0x2e4   :  { %6836 = vmatpush3.bf16.msra.mxu0 %v8357_v7 }
 0x2e5   :  { %6837 = vmatprep.subr.bf16.mxu0 %v10032_v27 }
 0x37c   :  { %v5335_v29 = vpop.f32.mrb[12].mxu0 }
 0x37d   :  { %v5336_v57 = vpop.f32.mrb[13].mxu0 }
 0x37e   :  { %v5337_v56 = vadd.f32 %v5336_v57, %v5335_v29 }
 0x380   :  { %v599_v52 = vadd.f32 %v5337_v56, %v90_v45 }
 0x381   :  { %v5338_v34 = vpop.f32.mrb[14].mxu0 }
 0x382   :  { %vm691_vm13 = vcmp.ge.f32.partialorder %v599_v52, 0.0  ;;  %v693_v10 = vmul.f32 0.01, %v599_v52  ;;  %v5339_v62 = vpop.f32.mrb[15].mxu0 }
 0x383   :  { %v5340_v3 = vadd.f32 %v5339_v62, %v5338_v34 }
 0x384   :  { %v8367_v9 = vsel %vm691_vm13, %v599_v52, %v693_v10 }
 0x385   :  { %v704_v11 = vsel %vm703_vm10, %v8367_v9, 0.0  ;;  %v604_v28 = vadd.f32 %v5340_v3, %v91_v8  ;;  %v116_v8 = vld [vmem:[%s9857_s4 + $0x1d0] sm:$0xff] }
 0x386   :  { %v705_v39 = vrot.slane %v704_v11, 4 }
 0x387   :  { %vm692_vm14 = vcmp.ge.f32.partialorder %v604_v28, 0.0  ;;  %v694_v7 = vmul.f32 0.01, %v604_v28 }
 0x388   :  { %v706_v29 = vadd.f32 %v705_v39, %v704_v11 }
 0x389   :  { %v8371_v45 = vsel %vm692_vm14, %v604_v28, %v694_v7  ;;  %v117_v7 = vld [vmem:[%s9857_s4 + $0x1d8] sm:$0xff] }
 0x38a   :  { %v707_v57 = vrot.slane %v706_v29, 2  ;;  %v713_v56 = vsel %vm703_vm10, %v8371_v45, 0.0  ;;  %v8381_v39 = vpack.c.bf16 %v117_v7, %v116_v8  ;;  %v132_v7 = vld [vmem:[%s9857_s4 + $0x250] sm:$0xff] }
 0x38b   :  { %v714_v32 = vrot.slane %v713_v56, 4 }
 0x38c   :  { %v708_v63 = vadd.f32 %v707_v57, %v706_v29  ;;  %v121_v57 = vld [vmem:[%s9857_s4 + $0x1f8] sm:$0xff] }
 0x38d   :  { %v715_v41 = vadd.f32 %v714_v32, %v713_v56  ;;  %v118_v32 = vld [vmem:[%s9857_s4 + $0x1e0] sm:$0xff] }
 0x38e   :  { %v709_v34 = vrot.slane %v708_v63, 1 }
 0x38f   :  { %v716_v52 = vrot.slane %v715_v41, 2 }
 0x390   :  { %v710_v62 = vadd.f32 %v709_v34, %v708_v63  ;;  %v122_v34 = vld [vmem:[%s9857_s4 + $0x200] sm:$0xff] }
 0x391   :  { %v717_v10 = vadd.f32 %v716_v52, %v715_v41  ;;  %v119_v41 = vld [vmem:[%s9857_s4 + $0x1e8] sm:$0xff] }
 0x392   :  { %v712_v11 = vmul.f32 0.125, %v710_v62  ;;  %v8392_v29 = vpack.c.bf16 %v119_v41, %v118_v32  ;;  %v123_v52 = vld [vmem:[%s9857_s4 + $0x208] sm:$0xff] }
 0x393   :  { %v718_v47 = vrot.slane %v717_v10, 1 }
 0x394   :  { %10036 = vst [vmem:[#allocation41_spill] sm:$0xff] %v8392_v29 }
 0x395   :  { %v719_v3 = vadd.f32 %v718_v47, %v717_v10  ;;  %v120_v47 = vld [vmem:[%s9857_s4 + $0x1f0] sm:$0xff]  ;;  %v8414_v10 = vpack.c.bf16 %v123_v52, %v122_v34  ;;  %v137_v52 = vld [vmem:[%s9857_s4 + $0x278] sm:$0xff] }
 0x396   :  { %v8404_v56 = vpack.c.bf16 %v121_v57, %v120_v47  ;;  %v135_v47 = vld [vmem:[%s9857_s4 + $0x268] sm:$0xff]  ;;  %v136_v34 = vld [vmem:[%s9857_s4 + $0x270] sm:$0xff] }
 0x397   :  { %v720_v28 = vmul.f32 0.125, %v719_v3  ;;  %10038 = vst [vmem:[#allocation43_spill] sm:$0xff] %v8414_v10  ;;  %v133_v3 = vld [vmem:[%s9857_s4 + $0x258] sm:$0xff] }
 0x398   :  { %10037 = vst [vmem:[#allocation42_spill] sm:$0xff] %v8404_v56 }
 0x399   :  { %v722_v63 = vsel %vm721_vm12, %v712_v11, %v720_v28  ;;  %v8425_v28 = vpack.c.bf16 %v133_v3, %v132_v7  ;;  %v138_v7 = vld [vmem:[%s9857_s4 + $0x280] sm:$0xff]  ;;  %v139_v3 = vld [vmem:[%s9857_s4 + $0x288] sm:$0xff] }
 0x39a   :  { %5923 = vmatmul.mubr.msk.f32.vlgmr.msra.gmra.mrb[16].mxu0 %vm703_vm10, %v722_v63  ;;  %v134_v63 = vld [vmem:[%s9857_s4 + $0x260] sm:$0xff] }
 0x39b   :  { %6839 = vmatpush3.bf16.msra.mxu0 %v8381_v39  ;;  %5941 = vmatprep.mubr.msk.f32.mxu0 %vm7705_vm8, %v10030_v53  ;;  %10039 = vst [vmem:[#allocation44_spill] sm:$0xff] %v8425_v28  ;;  %v8435_v57 = vpack.c.bf16 %v135_v47, %v134_v63 }
 0x39c   :  { %6840 = vmatprep.subr.bf16.mxu0 %v10032_v27 }
 0x39d   :  { %10040 = vst [vmem:[#allocation45_spill] sm:$0xff] %v8435_v57 }
 0x39f   :  { %6842 = vmatpush3.bf16.msra.mxu0 %v8392_v29 }
 0x3a0   :  { %6843 = vmatprep.subr.bf16.mxu0 %v10032_v27 }
 0x3a3   :  { %6845 = vmatpush3.bf16.msra.mxu0 %v8404_v56 }
 0x3a4   :  { %6846 = vmatprep.subr.bf16.mxu0 %v10032_v27 }
 0x3a7   :  { %6848 = vmatpush3.bf16.msra.mxu0 %v8414_v10 }
 0x3a8   :  { %6861 = vmatprep.subr.bf16.mxu0 %v10032_v27 }
 0x3ab   :  { %v971_v62 = vpop.f32.mrb[6].mxu1 }
 0x3ac   :  { %v5962_v8 = vpop.f32.mrb[7].mxu1 }
 0x3ad   :  { %v8447_v8 = vpack.c.bf16 %v137_v52, %v136_v34 }
 0x3af   :  { %10041 = vst [vmem:[#allocation46_spill] sm:$0xff] %v8447_v8 }
 0x46d   :  { %v792_v11 = vpop.f32.mrb[16].mxu0 }
 0x46e   :  { %v796_v32 = vmax.f32 %v792_v11, 0.0  ;;  %v5924_v41 = vpop.f32.mrb[17].mxu0  ;;  %v8457_v11 = vpack.c.bf16 %v139_v3, %v138_v7 }
 0x470   :  { %5942 = vmatmul.mubr.msk.f32.vlgmr.msra.gmra.mrb[18].mxu0 %vm703_vm10, %v796_v32  ;;  %10042 = vst [vmem:[#allocation47_spill] sm:$0xff] %v8457_v11  ;;  %v975_v32 = vmax.f32 %v971_v62, 0.0 }
 0x471   :  { %6863 = vmatpush3.bf16.msra.mxu0 %v8425_v28  ;;  %5979 = vmatprep.mubr.msk.f32.mxu0 %vm7705_vm8, %v10030_v53 }
 0x472   :  { %6864 = vmatprep.subr.bf16.mxu0 %v10032_v27 }
 0x475   :  { %6866 = vmatpush3.bf16.msra.mxu0 %v8435_v57 }
 0x476   :  { %6867 = vmatprep.subr.bf16.mxu0 %v10032_v27 }
 0x479   :  { %6869 = vmatpush3.bf16.msra.mxu0 %v8447_v8 }
 0x47a   :  { %6870 = vmatprep.subr.bf16.mxu0 %v10032_v27 }
 0x47d   :  { %6872 = vmatpush3.bf16.msra.mxu0 %v8457_v11 }
 0x480   :  { %5980 = vmatmul.mubr.msk.f32.vlgmr.msra.gmra.mrb[20].mxu0 %vm703_vm10, %v975_v32 }
 0x543   :  { %v866_v41 = vpop.f32.mrb[18].mxu0 }
 0x544   :  { %v871_v63 = vmul.f32 0.16666667, %v866_v41  ;;  %v5943_v47 = vpop.f32.mrb[19].mxu0 }
 0x546   :  { %v872_v34 = vadd.f32 0.5, %v871_v63 }
 0x548   :  { %v873_v52 = vmax.f32 %v872_v34, 0.0 }
 0x54a   :  { %v874_v57 = vmin.f32 %v873_v52, 1.0 }
 0x54c   :  { %7521 = vpush %v874_v57  ;;  %v880_v28 = vrot.slane %v874_v57, 1 }
 0x54e   :  { %7523 = vpush %v880_v28 }
 0x553   :  { %v1045_v10 = vpop.f32.mrb[20].mxu0 }
 0x554   :  { %v1049_v8 = vmul.f32 0.16666667, %v1045_v10  ;;  %v5981_v7 = vpop.f32.mrb[21].mxu0 }
 0x556   :  { %v1050_v3 = vadd.f32 0.5, %v1049_v8 }
 0x558   :  { %v1051_v56 = vmax.f32 %v1050_v3, 0.0 }
 0x55a   :  { %v1052_v29 = vmin.f32 %v1051_v56, 1.0 }
 0x55c   :  { %7525 = vpush %v1052_v29  ;;  %v1058_v11 = vrot.slane %v1052_v29, 1 }
 0x55e   :  { %7527 = vpush %v1058_v11 }
 0x57d   :  { %s7522_s16 = spop %7521 }
 0x57e   :  { %v877_v62 = vstv %s7522_s16 }
 0x57f   :  { %s7524_s17 = spop %7523  ;;  %v879_v63 = vmul.f32 %v877_v62, %v8367_v9 }
 0x580   :  { %v882_v32 = vstv %s7524_s17 }
 0x581   :  { %v884_v10 = vmul.f32 %v882_v32, %v8371_v45 }
 0x58d   :  { %s7526_s18 = spop %7525 }
 0x58e   :  { %v1055_v41 = vstv %s7526_s18 }
 0x58f   :  { %v1057_v57 = vmul.f32 %v1055_v41, %v8313_v33  ;;  %s7528_s19 = spop %7527 }
 0x590   :  { %v1060_v28 = vstv %s7528_s19 }
 0x591   :  { %v1063_v8 = vadd.f32 %v1057_v57, %v879_v63  ;;  %v1062_v56 = vmul.f32 %v1060_v28, %v8309_v40 }
 0x593   :  { %v5163_v47 = vmul.f32 -1.442695, %v1063_v8  ;;  %v1064_v29 = vadd.f32 %v1062_v56, %v884_v10  ;;  %v150_v8 = vld [vmem:[%s9858_s5 + $0x50] sm:$0xff]  ;;  %v151_v56 = vld [vmem:[%s9858_s5 + $0x58] sm:$0xff] }
 0x595   :  { %7609 = vpow2.f32 %v5163_v47  ;;  %v5164_v11 = vmul.f32 -1.442695, %v1064_v29  ;;  %v8556_v47 = vpack.c.bf16 %v151_v56, %v150_v8  ;;  %v152_v29 = vld [vmem:[%s9858_s5 + $0x60] sm:$0xff]  ;;  %v161_v8 = vld [vmem:[%s9859_s6 + $0x28] sm:$0xff] }
 0x596   :  { %v7645_v56 = vld [vmem:[%s9853_s1 + $0x8] sm:$0xff] }
 0x597   :  { %7611 = vpow2.f32 %v5164_v11  ;;  %10045 = vst [vmem:[#allocation50_spill] sm:$0xff] %v8556_v47  ;;  %v153_v11 = vld [vmem:[%s9858_s5 + $0x68] sm:$0xf] }
 0x59f   :  { %v7610_v34 = vpop.eup %7609 }
 0x5a0   :  { %v1071_v52 = vadd.f32 1.0, %v7610_v34  ;;  %v8567_v34 = vpack.c.bf16 %v153_v11, %v152_v29  ;;  %v7646_v11 = vld [vmem:[%s9853_s1] sm:$0xff] }
 0x5a1   :  { %v7612_v7 = vpop.eup %7611 }
 0x5a2   :  { %7613 = vrcp.f32 %v1071_v52  ;;  %v1072_v3 = vadd.f32 1.0, %v7612_v7  ;;  %10046 = vst [vmem:[#allocation51_spill] sm:$0xff] %v8567_v34 }
 0x5a4   :  { %7615 = vrcp.f32 %v1072_v3 }
 0x5ac   :  { %v8466_v9 = vpop.eup %7613 }
 0x5ad   :  { %v1077_v45 = vmul.f32 %v8466_v9, %v7752_v0  ;;  %v140_v0 = vld [vmem:[%s9858_s5] sm:$0xff] }
 0x5ae   :  { %v8468_v33 = vpop.eup %7615 }
 0x5af   :  { %v1078_v40 = vmul.f32 %v8468_v33, %v7757_v1  ;;  %v141_v1 = vld [vmem:[%s9858_s5 + $0x8] sm:$0xff] }
 0x5b1   :  { %v7584_v62 = vpack.i.bf16 %v1078_v40, %v1077_v45 }
 0x5b3   :  { %7585 = vrot.lane.b32.xlu1 %v7584_v62, %s7699_s30 }
 0x625   :  { %v7586_v32 = vpop.permute.xlu1 %7585 }
 0x626   :  { %v7588_v41 = vunpack.i.h.bf16 %v7586_v32  ;;  %v7587_v63 = vunpack.i.l.bf16 %v7586_v32 }
 0x628   :  { %v1087_v57 = vsel %vm230_vm1, %v7772_v5, %v7587_v63  ;;  %v1088_v28 = vsel %vm230_vm1, %v7777_v6, %v7588_v41  ;;  %v142_v5 = vld [vmem:[%s9858_s5 + $0x10] sm:$0xff]  ;;  %v8510_v6 = vpack.c.bf16 %v141_v1, %v140_v0  ;;  %v156_v1 = vld [vmem:[%s9859_s6] sm:$0xff] }
 0x629   :  { %v6873_v10 = vpack.c.bf16 %v1088_v28, %v1087_v57  ;;  %v174_v63 = vld [vmem:[%s9859_s6 + $0x90] sm:$0xff]  ;;  %v175_v57 = vld [vmem:[%s9859_s6 + $0x98] sm:$0xff] }
 0x62a   :  { %v8593_v28 = vpack.c.bf16 %v175_v57, %v174_v63  ;;  %v165_v63 = vld [vmem:[%s9859_s6 + $0x48] sm:$0xff] }
 0x62b   :  { %6874 = vmatprep.subr.bf16.mxu1 %v6873_v10 }
 0x62c   :  { %6876 = vmatpush3.bf16.msra.mxu1 %v6873_v10  ;;  %10047 = vst [vmem:[#allocation52_spill] sm:$0xff] %v8593_v28 }
 0x62d   :  { %6878 = vmatprep.subr.bf16.mxu1 %v8510_v6 }
 0x62f   :  { %5987 = vmatmul.mubr.msk.f32.vlgmr.msra.gmra.mrb[8].mxu1 %vm233_vm0, %v7786_v12  ;;  %v143_v12 = vld [vmem:[%s9858_s5 + $0x18] sm:$0xff] }
 0x630   :  { %5989 = vmatprep.mubr.msk.f32.mxu1 %vm233_vm0, %v7791_v13  ;;  %v8515_v13 = vpack.c.bf16 %v143_v12, %v142_v5  ;;  %6880 = vmatpush3.bf16.msra.mxu1 %v8510_v6  ;;  %v157_v5 = vld [vmem:[%s9859_s6 + $0x8] sm:$0xff] }
 0x631   :  { %v8604_v12 = vpack.c.bf16 %v157_v5, %v156_v1  ;;  %v168_v5 = vld [vmem:[%s9859_s6 + $0x60] sm:$0xff] }
 0x632   :  { %6882 = vmatprep.subr.bf16.mxu1 %v8515_v13 }
 0x633   :  { %5990 = vmatmul.mubr.msk.f32.gmra.mrb[10].mxu1 %vm233_vm0, %v7800_v14  ;;  %v144_v14 = vld [vmem:[%s9858_s5 + $0x20] sm:$0xff]  ;;  %6908 = vmatprep.subr.bf16.mxu0 %v8604_v12 }
 0x634   :  { %5992 = vmatprep.mubr.msk.f32.mxu1 %vm233_vm0, %v7805_v15  ;;  %v145_v15 = vld [vmem:[%s9858_s5 + $0x28] sm:$0xff]  ;;  %6884 = vmatpush3.bf16.msra.mxu1 %v8515_v13 }
 0x635   :  { %6910 = vmatpush3.bf16.msra.mxu0 %v8604_v12 }
 0x637   :  { %5993 = vmatmul.mubr.msk.f32.gmra.mrb[12].mxu1 %vm233_vm0, %v7814_v16  ;;  %v8526_v16 = vpack.c.bf16 %v145_v15, %v144_v14  ;;  %v158_v15 = vld [vmem:[%s9859_s6 + $0x10] sm:$0xff] }
 0x638   :  { %5995 = vmatprep.mubr.msk.f32.mxu1 %vm233_vm0, %v7819_v17  ;;  %v146_v17 = vld [vmem:[%s9858_s5 + $0x30] sm:$0xff] }
 0x639   :  { %6886 = vmatprep.subr.bf16.mxu1 %v8526_v16 }
 0x63a   :  { %6888 = vmatpush3.bf16.msra.mxu1 %v8526_v16 }
 0x63b   :  { %5996 = vmatmul.mubr.msk.f32.gmra.mrb[14].mxu1 %vm233_vm0, %v7828_v18  ;;  %v147_v18 = vld [vmem:[%s9858_s5 + $0x38] sm:$0xff] }
 0x63c   :  { %5998 = vmatprep.mubr.msk.f32.mxu1 %vm233_vm0, %v7833_v19  ;;  %v8536_v19 = vpack.c.bf16 %v147_v18, %v146_v17  ;;  %v159_v17 = vld [vmem:[%s9859_s6 + $0x18] sm:$0xff] }
 0x63e   :  { %10043 = vst [vmem:[#allocation48_spill] sm:$0xff] %v8536_v19  ;;  %6890 = vmatprep.subr.bf16.mxu1 %v8536_v19 }
 0x63f   :  { %5999 = vmatmul.mubr.msk.f32.gmra.mrb[16].mxu1 %vm233_vm0, %v7842_v20  ;;  %v148_v20 = vld [vmem:[%s9858_s5 + $0x40] sm:$0xff] }
 0x640   :  { %6001 = vmatprep.mubr.msk.f32.mxu1 %vm233_vm0, %v7847_v21  ;;  %v149_v21 = vld [vmem:[%s9858_s5 + $0x48] sm:$0xff]  ;;  %6892 = vmatpush3.bf16.msra.mxu1 %v8536_v19 }
 0x643   :  { %6002 = vmatmul.mubr.msk.f32.gmra.mrb[18].mxu1 %vm233_vm0, %v7856_v22  ;;  %v8546_v22 = vpack.c.bf16 %v149_v21, %v148_v20  ;;  %v8615_v20 = vpack.c.bf16 %v159_v17, %v158_v15  ;;  %v160_v21 = vld [vmem:[%s9859_s6 + $0x20] sm:$0xff] }
 0x644   :  { %v8630_v29 = vpack.c.bf16 %v161_v8, %v160_v21  ;;  %v176_v21 = vld [vmem:[%s9859_s6 + $0xa0] sm:$0xff]  ;;  %v177_v8 = vld [vmem:[%s9859_s6 + $0xa8] sm:$0xff] }
 0x645   :  { %10044 = vst [vmem:[#allocation49_spill] sm:$0xff] %v8546_v22  ;;  %6894 = vmatprep.subr.bf16.mxu1 %v8546_v22  ;;  %6912 = vmatprep.subr.bf16.mxu0 %v8615_v20 }
 0x646   :  { %6896 = vmatpush3.bf16.msra.mxu1 %v8546_v22  ;;  %6914 = vmatpush3.bf16.msra.mxu0 %v8615_v20 }
 0x647   :  { %6898 = vmatprep.subr.bf16.mxu1 %v8556_v47  ;;  %6916 = vmatprep.subr.bf16.mxu0 %v8630_v29 }
 0x64a   :  { %6900 = vmatpush3.bf16.msra.mxu1 %v8556_v47  ;;  %6918 = vmatpush3.bf16.msra.mxu0 %v8630_v29 }
 0x64b   :  { %6903 = vmatprep.subr.msk.bf16.mxu1 %vm7982_vm4, %v8567_v34 }
 0x64e   :  { %6906 = vmatpush3.bf16.msk.msra.mxu1 %vm7982_vm4, %v8567_v34 }
 0x64f   :  { %6940 = vmatprep.subr.bf16.mxu1 %v8593_v28 }
 0x702   :  { %v8575_v52 = vpop.f32.mrb[8].mxu1 }
 0x703   :  { %v8577_v7 = vpop.f32.mrb[9].mxu1 }
 0x706   :  { %v5991_v3 = vpop.f32.mrb[10].mxu1 }
 0x707   :  { %1218 = vrot.lane.b32.xlu1 %v5991_v3, %s7702_s28  ;;  %v1165_v45 = vpop.f32.mrb[11].mxu1  ;;  %v162_v3 = vld [vmem:[%s9859_s6 + $0x30] sm:$0xff] }
 0x708   :  { %1216 = vrot.lane.b32.xlu0 %v1165_v45, %s7702_s28  ;;  %v163_v45 = vld [vmem:[%s9859_s6 + $0x38] sm:$0xff] }
 0x70a   :  { %v5994_v40 = vpop.f32.mrb[12].mxu1 }
 0x70b   :  { %1226 = vrot.lane.b32.xlu1 %v5994_v40, %s7703_s29  ;;  %v1175_v62 = vpop.f32.mrb[13].mxu1  ;;  %v164_v40 = vld [vmem:[%s9859_s6 + $0x40] sm:$0xff] }
 0x70c   :  { %1224 = vrot.lane.b32.xlu0 %v1175_v62, %s7703_s29  ;;  %v8646_v62 = vpack.c.bf16 %v163_v45, %v162_v3  ;;  %v8653_v57 = vpack.c.bf16 %v165_v63, %v164_v40  ;;  %v8689_v63 = vpack.c.bf16 %v177_v8, %v176_v21  ;;  %v182_v8 = vld [vmem:[%s9859_s6 + $0xd0] sm:$0xff] }
 0x70e   :  { %v8583_v32 = vpop.f32.mrb[14].mxu1  ;;  %6920 = vmatprep.subr.bf16.mxu0 %v8646_v62  ;;  %10048 = vst [vmem:[#allocation53_spill] sm:$0xff] %v8653_v57  ;;  %10051 = vst [vmem:[#allocation56_spill] sm:$0xff] %v8689_v63 }
 0x70f   :  { %v8585_v41 = vpop.f32.mrb[15].mxu1  ;;  %6922 = vmatpush3.bf16.msra.mxu0 %v8646_v62 }
 0x710   :  { %6924 = vmatprep.subr.bf16.mxu0 %v8653_v57 }
 0x712   :  { %v6000_v10 = vpop.f32.mrb[16].mxu1 }
 0x713   :  { %1238 = vrot.lane.b32.xlu1 %v6000_v10, %s7702_s28  ;;  %v1195_v0 = vpop.f32.mrb[17].mxu1  ;;  %v166_v10 = vld [vmem:[%s9859_s6 + $0x50] sm:$0xff]  ;;  %6926 = vmatpush3.bf16.msra.mxu0 %v8653_v57 }
 0x714   :  { %1236 = vrot.lane.b32.xlu0 %v1195_v0, %s7702_s28  ;;  %v167_v0 = vld [vmem:[%s9859_s6 + $0x58] sm:$0xff] }
 0x715   :  { %v8663_v1 = vpack.c.bf16 %v167_v0, %v166_v10  ;;  %v178_v0 = vld [vmem:[%s9859_s6 + $0xb0] sm:$0xff] }
 0x716   :  { %v6003_v14 = vpop.f32.mrb[18].mxu1 }
 0x717   :  { %1246 = vrot.lane.b32.xlu1 %v6003_v14, %s7703_s29  ;;  %v1205_v18 = vpop.f32.mrb[19].mxu1  ;;  %10049 = vst [vmem:[#allocation54_spill] sm:$0xff] %v8663_v1  ;;  %v169_v14 = vld [vmem:[%s9859_s6 + $0x68] sm:$0xff]  ;;  %6928 = vmatprep.subr.bf16.mxu0 %v8663_v1 }
 0x718   :  { %1244 = vrot.lane.b32.xlu0 %v1205_v18, %s7703_s29  ;;  %v8673_v15 = vpack.c.bf16 %v169_v14, %v168_v5  ;;  %6930 = vmatpush3.bf16.msra.mxu0 %v8663_v1  ;;  %v180_v5 = vld [vmem:[%s9859_s6 + $0xc0] sm:$0xff]  ;;  %v181_v14 = vld [vmem:[%s9859_s6 + $0xc8] sm:$0xff] }
 0x71a   :  { %10050 = vst [vmem:[#allocation55_spill] sm:$0xff] %v8673_v15  ;;  %6932 = vmatprep.subr.bf16.mxu0 %v8673_v15 }
 0x71b   :  { %1874 = vrot.lane.b32.xlu1 %v7645_v56, %s7706_s26 }
 0x71c   :  { %1872 = vrot.lane.b32.xlu0 %v7646_v11, %s7706_s26  ;;  %6934 = vmatpush3.bf16.msra.mxu0 %v8673_v15 }
 0x779   :  { %v1219_v17 = vpop.permute.xlu1 %1218 }
 0x77a   :  { %v1217_v18 = vpop.permute.xlu0 %1216  ;;  %v1231_v45 = vsel %vm411_vm5, %v8575_v52, %v1219_v17 }
 0x77b   :  { %v1230_v11 = vsel %vm411_vm5, %v8577_v7, %v1217_v18  ;;  %v179_v7 = vld [vmem:[%s9859_s6 + $0xb8] sm:$0xff]  ;;  %v8712_v18 = vpack.c.bf16 %v181_v14, %v180_v5 }
 0x77c   :  { %v8702_v52 = vpack.c.bf16 %v179_v7, %v178_v0  ;;  %v186_v0 = vld [vmem:[%s9859_s6 + $0xf0] sm:$0xff]  ;;  %v187_v7 = vld [vmem:[%s9859_s6 + $0xf8] sm:$0xf] }
 0x77d   :  { %v1227_v56 = vpop.permute.xlu1 %1226  ;;  %10053 = vst [vmem:[#allocation58_spill] sm:$0xff] %v8712_v18  ;;  %v8746_v14 = vpack.c.bf16 %v187_v7, %v186_v0 }
 0x77e   :  { %v1225_v3 = vpop.permute.xlu0 %1224  ;;  %v1233_v10 = vsel %vm414_vm6, %v1231_v45, %v1227_v56  ;;  %10052 = vst [vmem:[#allocation57_spill] sm:$0xff] %v8702_v52  ;;  %v183_v56 = vld [vmem:[%s9859_s6 + $0xd8] sm:$0xff] }
 0x77f   :  { %v1232_v40 = vsel %vm414_vm6, %v1230_v11, %v1225_v3  ;;  %v8725_v45 = vpack.c.bf16 %v183_v56, %v182_v8  ;;  %10056 = vst [vmem:[#allocation61_spill] sm:$0xff] %v8746_v14  ;;  %v171_v56 = vld [vmem:[%s9859_s6 + $0x78] sm:$0xff] }
 0x780   :  { %6032 = vmatprep.mubr.msk.f32.mxu1 %vm437_vm7, %v1232_v40  ;;  %v185_v40 = vld [vmem:[%s9859_s6 + $0xe8] sm:$0xff] }
 0x781   :  { %6033 = vmatmul.mubr.msk.f32.vlgmr.msra.gmra.mrb[20].mxu1 %vm437_vm7, %v1233_v10  ;;  %10054 = vst [vmem:[#allocation59_spill] sm:$0xff] %v8725_v45 }
 0x782   :  { %6942 = vmatpush3.bf16.msra.mxu1 %v8593_v28 }
 0x783   :  { %6944 = vmatprep.subr.bf16.mxu1 %v8689_v63 }
 0x785   :  { %v1239_v5 = vpop.permute.xlu1 %1238 }
 0x786   :  { %v1237_v17 = vpop.permute.xlu0 %1236  ;;  %6946 = vmatpush3.bf16.msra.mxu1 %v8689_v63 }
 0x787   :  { %6948 = vmatprep.subr.bf16.mxu1 %v8702_v52  ;;  %v1250_v21 = vsel %vm411_vm5, %v8585_v41, %v1237_v17  ;;  %v184_v41 = vld [vmem:[%s9859_s6 + $0xe0] sm:$0xff]  ;;  %v1251_v17 = vsel %vm411_vm5, %v8583_v32, %v1239_v5  ;;  %v170_v32 = vld [vmem:[%s9859_s6 + $0x70] sm:$0xff] }
 0x788   :  { %v8736_v10 = vpack.c.bf16 %v185_v40, %v184_v41  ;;  %v155_v41 = vld [vmem:[%s9858_s5 + $0x78] sm:$0xff] }
 0x78a   :  { %v1245_v11 = vpop.permute.xlu0 %1244  ;;  %6950 = vmatpush3.bf16.msra.mxu1 %v8702_v52  ;;  %10055 = vst [vmem:[#allocation60_spill] sm:$0xff] %v8736_v10 }
 0x78b   :  { %v1252_v3 = vsel %vm414_vm6, %v1250_v21, %v1245_v11  ;;  %6952 = vmatprep.subr.bf16.mxu1 %v8712_v18  ;;  %v1247_v21 = vpop.permute.xlu1 %1246  ;;  %v8768_v11 = vpack.c.bf16 %v171_v56, %v170_v32  ;;  %v191_v32 = vld [vmem:[%s9859_s6 + $0x118] sm:$0xff] }
 0x78c   :  { %6098 = vmatprep.mubr.msk.f32.mxu1 %vm437_vm7, %v1252_v3  ;;  %v1253_v8 = vsel %vm414_vm6, %v1251_v17, %v1247_v21  ;;  %v154_v3 = vld [vmem:[%s9858_s5 + $0x70] sm:$0xff] }
 0x78d   :  { %10057 = vst [vmem:[#allocation62_spill] sm:$0xff] %v8768_v11  ;;  %6936 = vmatprep.subr.bf16.mxu0 %v8768_v11 }
 0x78e   :  { %6954 = vmatpush3.bf16.msra.mxu1 %v8712_v18  ;;  %6938 = vmatpush3.bf16.msra.mxu0 %v8768_v11 }
 0x78f   :  { %6956 = vmatprep.subr.bf16.mxu1 %v8725_v45  ;;  %6969 = vmatprep.subr.bf16.mxu0 %v10032_v27 }
 0x792   :  { %6958 = vmatpush3.bf16.msra.mxu1 %v8725_v45 }
 0x793   :  { %6960 = vmatprep.subr.bf16.mxu1 %v8736_v10 }
 0x796   :  { %6962 = vmatpush3.bf16.msra.mxu1 %v8736_v10 }
 0x797   :  { %6965 = vmatprep.subr.msk.bf16.mxu1 %vm7982_vm4, %v8746_v14 }
 0x79a   :  { %6968 = vmatpush3.bf16.msk.msra.mxu1 %vm7982_vm4, %v8746_v14 }
 0x79b   :  { %6987 = vmatprep.subr.bf16.mxu1 %v10032_v27 }
 0x79d   :  { %6099 = vmatmul.mubr.msk.f32.vlgmr.msra.gmra.mrb[22].mxu1 %vm437_vm7, %v1253_v8  ;;  %v190_v8 = vld [vmem:[%s9859_s6 + $0x110] sm:$0xff] }
 0x79e   :  { %6142 = vmatprep.mubr.msk.f32.mxu1 %vm7705_vm8, %v10030_v53  ;;  %v8787_v56 = vpack.c.bf16 %v191_v32, %v190_v8 }
 0x7a0   :  { %10058 = vst [vmem:[#allocation63_spill] sm:$0xff] %v8787_v56 }
 0x854   :  { %v6034_v40 = vpop.f32.mrb[20].mxu1 }
 0x855   :  { %v1329_v0 = vpop.f32.mrb[21].mxu1  ;;  %v1339_v5 = vmul.f32 %v6034_v40, %v155_v41  ;;  %v193_v41 = vld [vmem:[%s9859_s6 + $0x128] sm:$0xff] }
 0x856   :  { %v1338_v7 = vmul.f32 %v1329_v0, %v154_v3  ;;  %v192_v3 = vld [vmem:[%s9859_s6 + $0x120] sm:$0xff]  ;;  %v173_v0 = vld [vmem:[%s9859_s6 + $0x88] sm:$0xff] }
 0x857   :  { %v8797_v40 = vpack.c.bf16 %v193_v41, %v192_v3 }
 0x858   :  { %6067 = vmatprep.mubr.f32.mxu0 %v1338_v7  ;;  %v172_v7 = vld [vmem:[%s9859_s6 + $0x80] sm:$0xff] }
 0x859   :  { %6068 = vmatmul.mubr.f32.vlgmr.msra.gmra.mrb[22].mxu0 %v1339_v5  ;;  %10059 = vst [vmem:[#allocation64_spill] sm:$0xff] %v8797_v40 }
 0x85a   :  { %6109 = vmatprep.mubr.msk.f32.mxu0 %vm7705_vm8, %v10030_v53  ;;  %6971 = vmatpush3.bf16.msra.mxu0 %v8787_v56 }
 0x85b   :  { %6972 = vmatprep.subr.bf16.mxu0 %v10032_v27 }
 0x85e   :  { %6974 = vmatpush3.bf16.msra.mxu0 %v8797_v40 }
 0x85f   :  { %6975 = vmatprep.subr.bf16.mxu0 %v10032_v27 }
 0x870   :  { %v6100_v17 = vpop.f32.mrb[22].mxu1 }
 0x871   :  { %v1490_v21 = vpop.f32.mrb[23].mxu1 }
 0x92c   :  { %v6069_v5 = vpop.f32.mrb[22].mxu0 }
 0x92d   :  { %v1412_v8 = vadd.f32 %v6069_v5, %v173_v0  ;;  %v1406_v32 = vpop.f32.mrb[23].mxu0 }
 0x92e   :  { %v1407_v56 = vadd.f32 %v1406_v32, %v172_v7 }
 0x92f   :  { %vm1500_vm15 = vcmp.ge.f32.partialorder %v1412_v8, 0.0  ;;  %v1502_v14 = vmul.f32 0.01, %v1412_v8 }
 0x930   :  { %vm1499_vm2 = vcmp.ge.f32.partialorder %v1407_v56, 0.0  ;;  %v1501_v3 = vmul.f32 0.01, %v1407_v56 }
 0x931   :  { %v8807_v41 = vsel %vm1500_vm15, %v1412_v8, %v1502_v14  ;;  %v194_v8 = vld [vmem:[%s9859_s6 + $0x130] sm:$0xff] }
 0x932   :  { %v1520_v40 = vsel %vm1511_vm3, %v8807_v41, 0.0  ;;  %v8811_v10 = vsel %vm1499_vm2, %v1407_v56, %v1501_v3  ;;  %v195_v56 = vld [vmem:[%s9859_s6 + $0x138] sm:$0xff] }
 0x933   :  { %v1521_v45 = vrot.slane %v1520_v40, 4  ;;  %v1512_v18 = vsel %vm1511_vm3, %v8811_v10, 0.0 }
 0x934   :  { %v1513_v52 = vrot.slane %v1512_v18, 4 }
 0x935   :  { %v1522_v0 = vadd.f32 %v1521_v45, %v1520_v40  ;;  %v8821_v45 = vpack.c.bf16 %v195_v56, %v194_v8 }
 0x936   :  { %v1514_v5 = vadd.f32 %v1513_v52, %v1512_v18  ;;  %v196_v52 = vld [vmem:[%s9859_s6 + $0x140] sm:$0xff] }
 0x937   :  { %v1523_v7 = vrot.slane %v1522_v0, 2  ;;  %10060 = vst [vmem:[#allocation65_spill] sm:$0xff] %v8821_v45 }
 0x938   :  { %v1515_v32 = vrot.slane %v1514_v5, 2 }
 0x939   :  { %v1524_v63 = vadd.f32 %v1523_v7, %v1522_v0 }
 0x93a   :  { %v1516_v28 = vadd.f32 %v1515_v32, %v1514_v5 }
 0x93b   :  { %v1525_v34 = vrot.slane %v1524_v63, 1 }
 0x93c   :  { %v1517_v47 = vrot.slane %v1516_v28, 1 }
 0x93d   :  { %v1526_v14 = vadd.f32 %v1525_v34, %v1524_v63  ;;  %v197_v34 = vld [vmem:[%s9859_s6 + $0x148] sm:$0xff] }
 0x93e   :  { %v1518_v3 = vadd.f32 %v1517_v47, %v1516_v28  ;;  %v8832_v18 = vpack.c.bf16 %v197_v34, %v196_v52  ;;  %v189_v47 = vld [vmem:[%s9859_s6 + $0x108] sm:$0xff] }
 0x93f   :  { %v1527_v22 = vmul.f32 0.125, %v1526_v14 }
 0x940   :  { %v1519_v19 = vmul.f32 0.125, %v1518_v3  ;;  %10061 = vst [vmem:[#allocation66_spill] sm:$0xff] %v8832_v18 }
 0x942   :  { %v1528_v63 = vsel %vm721_vm12, %v1519_v19, %v1527_v22  ;;  %v188_v19 = vld [vmem:[%s9859_s6 + $0x100] sm:$0xff]  ;;  %v1496_v22 = vadd.f32 %v6100_v17, %v189_v47  ;;  %v198_v47 = vld [vmem:[%s9859_s6 + $0x150] sm:$0xff] }
 0x943   :  { %6110 = vmatmul.mubr.msk.f32.vlgmr.msra.gmra.mrb[24].mxu0 %vm1511_vm3, %v1528_v63  ;;  %v1491_v28 = vadd.f32 %v1490_v21, %v188_v19  ;;  %v199_v19 = vld [vmem:[%s9859_s6 + $0x158] sm:$0xff] }
 0x944   :  { %6977 = vmatpush3.bf16.msra.mxu0 %v8821_v45  ;;  %6120 = vmatprep.mubr.msk.f32.mxu0 %vm7705_vm8, %v10030_v53  ;;  %v1508_v40 = vmul.f32 0.01, %v1496_v22  ;;  %vm1506_vm9 = vcmp.ge.f32.partialorder %v1496_v22, 0.0 }
 0x945   :  { %6978 = vmatprep.subr.bf16.mxu0 %v10032_v27  ;;  %v1507_v0 = vmul.f32 0.01, %v1491_v28  ;;  %vm1505_vm11 = vcmp.ge.f32.partialorder %v1491_v28, 0.0 }
 0x946   :  { %v8845_v5 = vsel %vm1506_vm9, %v1496_v22, %v1508_v40 }
 0x947   :  { %v8847_v7 = vsel %vm1505_vm11, %v1491_v28, %v1507_v0  ;;  %v1698_v32 = vsel %vm1511_vm3, %v8845_v5, 0.0  ;;  %v8859_v0 = vpack.c.bf16 %v199_v19, %v198_v47 }
 0x948   :  { %6980 = vmatpush3.bf16.msra.mxu0 %v8832_v18  ;;  %v1690_v14 = vsel %vm1511_vm3, %v8847_v7, 0.0  ;;  %v1699_v8 = vrot.slane %v1698_v32, 4 }
 0x949   :  { %6981 = vmatprep.subr.bf16.mxu0 %v10032_v27  ;;  %v1691_v56 = vrot.slane %v1690_v14, 4  ;;  %10062 = vst [vmem:[#allocation67_spill] sm:$0xff] %v8859_v0 }
 0x94a   :  { %v1700_v3 = vadd.f32 %v1699_v8, %v1698_v32  ;;  %v201_v8 = vld [vmem:[%s9859_s6 + $0x168] sm:$0xff] }
 0x94b   :  { %v1692_v52 = vadd.f32 %v1691_v56, %v1690_v14  ;;  %v200_v14 = vld [vmem:[%s9859_s6 + $0x160] sm:$0xff] }
 0x94c   :  { %v1701_v17 = vrot.slane %v1700_v3, 2 }
 0x94d   :  { %v1693_v21 = vrot.slane %v1692_v52, 2 }
 0x94e   :  { %v1702_v34 = vadd.f32 %v1701_v17, %v1700_v3 }
 0x94f   :  { %v1694_v63 = vadd.f32 %v1693_v21, %v1692_v52  ;;  %v8869_v52 = vpack.c.bf16 %v201_v8, %v200_v14 }
 0x950   :  { %v1703_v22 = vrot.slane %v1702_v34, 1 }
 0x951   :  { %v1695_v28 = vrot.slane %v1694_v63, 1  ;;  %10063 = vst [vmem:[#allocation68_spill] sm:$0xff] %v8869_v52 }
 0x952   :  { %v1704_v3 = vadd.f32 %v1703_v22, %v1702_v34  ;;  %v202_v34 = vld [vmem:[%s9859_s6 + $0x170] sm:$0xff]  ;;  %v204_v22 = vld [vmem:[%s9859_s6 + $0x180] sm:$0xff] }
 0x953   :  { %v1696_v56 = vadd.f32 %v1695_v28, %v1694_v63  ;;  %v203_v63 = vld [vmem:[%s9859_s6 + $0x178] sm:$0xff]  ;;  %v205_v28 = vld [vmem:[%s9859_s6 + $0x188] sm:$0xff] }
 0x954   :  { %v1705_v21 = vmul.f32 0.125, %v1704_v3  ;;  %v8890_v19 = vpack.c.bf16 %v203_v63, %v202_v34 }
 0x955   :  { %v1697_v17 = vmul.f32 0.125, %v1696_v56 }
 0x956   :  { %10064 = vst [vmem:[#allocation69_spill] sm:$0xff] %v8890_v19  ;;  %6989 = vmatpush3.bf16.msra.mxu1 %v8890_v19 }
 0x957   :  { %v1706_v47 = vsel %vm721_vm12, %v1697_v17, %v1705_v21  ;;  %6990 = vmatprep.subr.bf16.mxu1 %v10032_v27 }
 0xa16   :  { %v1598_v40 = vpop.f32.mrb[24].mxu0 }
 0xa17   :  { %v1602_v18 = vmax.f32 %v1598_v40, 0.0  ;;  %v6111_v32 = vpop.f32.mrb[25].mxu0  ;;  %v8900_v40 = vpack.c.bf16 %v205_v28, %v204_v22 }
 0xa19   :  { %6121 = vmatmul.mubr.msk.f32.vlgmr.msra.gmra.mrb[26].mxu0 %vm1511_vm3, %v1602_v18  ;;  %v8880_v18 = vld [vmem:[%s9854_s2] sm:$0xff]  ;;  %10065 = vst [vmem:[#allocation70_spill] sm:$0xff] %v8900_v40  ;;  %6992 = vmatpush3.bf16.msra.mxu1 %v8900_v40 }
 0xa1a   :  { %6983 = vmatpush3.bf16.msra.mxu0 %v8859_v0  ;;  %6131 = vmatprep.mubr.msk.f32.mxu0 %vm7705_vm8, %v10030_v53 }
 0xa1b   :  { %6984 = vmatprep.subr.bf16.mxu0 %v10032_v27  ;;  %6998 = vmatprep.subr.bf16.mxu1 %v7869_v26 }
 0xa1e   :  { %6986 = vmatpush3.bf16.msra.mxu0 %v8869_v52 }
 0xa21   :  { %6132 = vmatmul.mubr.msk.f32.vlgmr.msra.gmra.mrb[28].mxu0 %vm1511_vm3, %v1706_v47 }
 0xa22   :  { %6149 = vmatprep.mubr.msk.f32.mxu0 %vm233_vm0, %v8880_v18 }
 0xaec   :  { %v1672_v32 = vpop.f32.mrb[26].mxu0 }
 0xaed   :  { %v1676_v14 = vmul.f32 0.16666667, %v1672_v32  ;;  %v6122_v8 = vpop.f32.mrb[27].mxu0 }
 0xaef   :  { %v1677_v56 = vadd.f32 0.5, %v1676_v14 }
 0xaf1   :  { %v1678_v3 = vmax.f32 %v1677_v56, 0.0 }
 0xaf3   :  { %v1679_v17 = vmin.f32 %v1678_v3, 1.0 }
 0xaf4   :  { %v1776_v21 = vpop.f32.mrb[28].mxu0 }
 0xaf5   :  { %v1780_v47 = vmax.f32 %v1776_v21, 0.0  ;;  %v6133_v34 = vpop.f32.mrb[29].mxu0  ;;  %7529 = vpush %v1679_v17  ;;  %v1685_v63 = vrot.slane %v1679_v17, 1 }
 0xaf7   :  { %6143 = vmatmul.mubr.msk.f32.vlgmr.msra.gmra.mrb[24].mxu1 %vm1511_vm3, %v1780_v47  ;;  %7531 = vpush %v1685_v63 }
 0xaf8   :  { %7000 = vmatpush1.bf16.msra.mxu1 %v7880_v30  ;;  %2150 = vmatprep.mubr.f32.mxu1 %v10030_v53 }
 0xaf9   :  { %7002 = vmatprep.subr.bf16.mxu1 %v7882_v31 }
 0xafc   :  { %7004 = vmatpush1.bf16.msra.mxu1 %v7898_v36 }
 0xafd   :  { %7006 = vmatprep.subr.bf16.mxu1 %v7901_v37 }
 0xb00   :  { %7008 = vmatpush1.bf16.msra.mxu1 %v7916_v42 }
 0xb01   :  { %7010 = vmatprep.subr.bf16.mxu1 %v7919_v43 }
 0xb04   :  { %7012 = vmatpush1.bf16.msra.mxu1 %v7934_v48 }
 0xb05   :  { %7014 = vmatprep.subr.bf16.mxu1 %v7937_v49 }
 0xb08   :  { %7016 = vmatpush1.bf16.msra.mxu1 %v7952_v54 }
 0xb09   :  { %7018 = vmatprep.subr.bf16.mxu1 %v7955_v55 }
 0xb0c   :  { %7020 = vmatpush1.bf16.msra.mxu1 %v7964_v58 }
 0xb0d   :  { %7023 = vmatprep.subr.msk.bf16.mxu1 %vm7982_vm4, %v7974_v61 }
 0xb10   :  { %7026 = vmatpush1.bf16.msk.msra.mxu1 %vm7982_vm4, %v7986_v4 }
 0xb11   :  { %7060 = vmatprep.subr.bf16.mxu1 %v8005_v25 }
 0xb26   :  { %s7530_s18 = spop %7529 }
 0xb27   :  { %v1682_v17 = vstv %s7530_s18 }
 0xb28   :  { %s7532_s19 = spop %7531  ;;  %v1684_v34 = vmul.f32 %v1682_v17, %v8811_v10  ;;  %v1875_v10 = vpop.permute.xlu1 %1874 }
 0xb29   :  { %v1687_v21 = vstv %s7532_s19 }
 0xbca   :  { %v1850_v22 = vpop.f32.mrb[24].mxu1 }
 0xbcb   :  { %v1854_v28 = vmul.f32 0.16666667, %v1850_v22  ;;  %v6144_v32 = vpop.f32.mrb[25].mxu1  ;;  %v1689_v22 = vmul.f32 %v1687_v21, %v8807_v41  ;;  %v1881_v41 = vsub.f32 1.0, %v8468_v33 }
 0xbcd   :  { %v1855_v14 = vadd.f32 0.5, %v1854_v28 }
 0xbcf   :  { %v1856_v8 = vmax.f32 %v1855_v14, 0.0 }
 0xbd1   :  { %v1857_v56 = vmin.f32 %v1856_v8, 1.0 }
 0xbd3   :  { %7533 = vpush %v1857_v56  ;;  %v1863_v3 = vrot.slane %v1857_v56, 1 }
 0xbd5   :  { %7535 = vpush %v1863_v3  ;;  %v1873_v3 = vpop.permute.xlu0 %1872 }
 0xc04   :  { %s7534_s20 = spop %7533 }
 0xc05   :  { %v1860_v47 = vstv %s7534_s20 }
 0xc06   :  { %v1862_v63 = vmul.f32 %v1860_v47, %v8847_v7  ;;  %s7536_s21 = spop %7535  ;;  %v1880_v7 = vsub.f32 1.0, %v8466_v9 }
 0xc07   :  { %v1865_v4 = vstv %s7536_s21 }
 0xc08   :  { %v1868_v28 = vadd.f32 %v1862_v63, %v1684_v34  ;;  %v1867_v32 = vmul.f32 %v1865_v4, %v8845_v5  ;;  %v1879_v4 = vmul.f32 %v8468_v33, %v1875_v10  ;;  %v1878_v5 = vmul.f32 %v8466_v9, %v1873_v3  ;;  %v8949_v9 = vld [vmem:[%s9855_s0 + $0x18] sm:$0xff] }
 0xc0a   :  { %7617 = vtanh.f32 %v1868_v28  ;;  %v1869_v14 = vadd.f32 %v1867_v32, %v1689_v22 }
 0xc0c   :  { %7619 = vtanh.f32 %v1869_v14  ;;  %v8944_v14 = vld [vmem:[%s9855_s0 + $0x10] sm:$0xff] }
 0xc14   :  { %v7618_v8 = vpop.eup %7617 }
 0xc15   :  { %1884 = vrot.lane.b32.xlu0 %v7618_v8, %s7706_s26 }
 0xc16   :  { %v7620_v56 = vpop.eup %7619 }
 0xc17   :  { %1886 = vrot.lane.b32.xlu1 %v7620_v56, %s7706_s26 }
 0xc87   :  { %v1885_v17 = vpop.permute.xlu0 %1884 }
 0xc88   :  { %v1890_v47 = vmul.f32 %v1885_v17, %v1880_v7  ;;  %v8959_v7 = vld [vmem:[%s9854_s2 + $0x8] sm:$0xff]  ;;  %v8966_v17 = vld [vmem:[%s9854_s2 + $0x10] sm:$0xff] }
 0xc89   :  { %v1887_v21 = vpop.permute.xlu1 %1886 }
 0xc8a   :  { %v1891_v34 = vmul.f32 %v1887_v21, %v1881_v41  ;;  %v8934_v63 = vadd.f32 %v1890_v47, %v1878_v5  ;;  %v8975_v47 = vld [vmem:[%s9854_s2 + $0x18] sm:$0xff]  ;;  %v8982_v41 = vld [vmem:[%s9854_s2 + $0x20] sm:$0xff]  ;;  %v8991_v21 = vld [vmem:[%s9854_s2 + $0x28] sm:$0xff] }
 0xc8b   :  { %v9007_v5 = vld [vmem:[%s9854_s2 + $0x38] sm:$0xff] }
 0xc8c   :  { %10066 = vst [vmem:[#allocation71_spill] sm:$0xff] %v8934_v63  ;;  %v8936_v22 = vadd.f32 %v1891_v34, %v1879_v4  ;;  %v8998_v4 = vld [vmem:[%s9854_s2 + $0x30] sm:$0xff]  ;;  %v9014_v34 = vld [vmem:[%s9854_s2 + $0x40] sm:$0xff] }
 0xc8e   :  { %10067 = vst [vmem:[#allocation72_spill] sm:$0xff] %v8936_v22  ;;  %v7589_v28 = vpack.i.bf16 %v8936_v22, %v8934_v63 }
 0xc90   :  { %7590 = vrot.lane.b32.xlu0 %v7589_v28, %s7707_s22  ;;  %v9023_v28 = vld [vmem:[%s9854_s2 + $0x48] sm:$0xff] }
 0xd02   :  { %v7591_v32 = vpop.permute.xlu0 %7590 }
 0xd03   :  { %v7593_v33 = vunpack.i.h.bf16 %v7591_v32  ;;  %v7592_v8 = vunpack.i.l.bf16 %v7591_v32  ;;  %v9030_v32 = vld [vmem:[%s9854_s2 + $0x50] sm:$0xff] }
 0xd05   :  { %v1913_v56 = vsel %vm230_vm1, %v8944_v14, %v7592_v8  ;;  %v1914_v3 = vsel %vm230_vm1, %v8949_v9, %v7593_v33  ;;  %v10068_v33 = vld [vmem:[#allocation21_spill] sm:$0xff] }
 0xd06   :  { %v6993_v10 = vpack.c.bf16 %v1914_v3, %v1913_v56  ;;  %v9039_v8 = vld [vmem:[%s9854_s2 + $0x58] sm:$0xff]  ;;  %v10069_v56 = vld [vmem:[#allocation22_spill] sm:$0xff]  ;;  %v10070_v3 = vld [vmem:[#allocation23_spill] sm:$0xff] }
 0xd08   :  { %6994 = vmatprep.subr.bf16.mxu0 %v6993_v10 }
 0xd09   :  { %6996 = vmatpush3.bf16.msra.mxu0 %v6993_v10  ;;  %v10071_v10 = vld [vmem:[#allocation24_spill] sm:$0xff] }
 0xd0a   :  { %7028 = vmatprep.subr.bf16.mxu0 %v8029_v44 }
 0xd0c   :  { %6150 = vmatmul.mubr.msk.f32.vlgmr.msra.gmra.mrb[30].mxu0 %vm233_vm0, %v8959_v7 }
 0xd0d   :  { %6152 = vmatprep.mubr.msk.f32.mxu0 %vm233_vm0, %v8966_v17  ;;  %7030 = vmatpush3.bf16.msra.mxu0 %v8040_v50 }
 0xd0e   :  { %7032 = vmatprep.subr.bf16.mxu0 %v8042_v51 }
 0xd10   :  { %6153 = vmatmul.mubr.msk.f32.gmra.mrb[32].mxu0 %vm233_vm0, %v8975_v47 }
 0xd11   :  { %6155 = vmatprep.mubr.msk.f32.mxu0 %vm233_vm0, %v8982_v41  ;;  %7034 = vmatpush3.bf16.msra.mxu0 %v8058_v59 }
 0xd12   :  { %7036 = vmatprep.subr.bf16.mxu0 %v8061_v60 }
 0xd14   :  { %6156 = vmatmul.mubr.msk.f32.gmra.mrb[34].mxu0 %vm233_vm0, %v8991_v21 }
 0xd15   :  { %6158 = vmatprep.mubr.msk.f32.mxu0 %vm233_vm0, %v8998_v4  ;;  %7038 = vmatpush3.bf16.msra.mxu0 %v8076_v23 }
 0xd16   :  { %7040 = vmatprep.subr.bf16.mxu0 %v8079_v24 }
 0xd18   :  { %6159 = vmatmul.mubr.msk.f32.gmra.mrb[36].mxu0 %vm233_vm0, %v9007_v5 }
 0xd19   :  { %6161 = vmatprep.mubr.msk.f32.mxu0 %vm233_vm0, %v9014_v34  ;;  %7042 = vmatpush3.bf16.msra.mxu0 %v8094_v35  ;;  %v10073_v35 = vld [vmem:[#allocation32_spill] sm:$0xff] }
 0xd1a   :  { %7044 = vmatprep.subr.bf16.mxu0 %v8097_v38  ;;  %v10072_v38 = vld [vmem:[#allocation31_spill] sm:$0xff] }
 0xd1c   :  { %6162 = vmatmul.mubr.msk.f32.gmra.mrb[38].mxu0 %vm233_vm0, %v9023_v28 }
 0xd1d   :  { %6164 = vmatprep.mubr.msk.f32.mxu0 %vm233_vm0, %v9030_v32  ;;  %7046 = vmatpush3.bf16.msra.mxu0 %v8112_v46 }
 0xd1e   :  { %7048 = vmatprep.subr.bf16.mxu0 %v10068_v33 }
 0xd20   :  { %6165 = vmatmul.mubr.msk.f32.gmra.mrb[40].mxu0 %vm233_vm0, %v9039_v8 }
 0xd21   :  { %7050 = vmatpush3.bf16.msra.mxu0 %v10069_v56 }
 0xd22   :  { %7052 = vmatprep.subr.bf16.mxu0 %v10070_v3 }
 0xd25   :  { %7054 = vmatpush3.bf16.msra.mxu0 %v10071_v10 }
 0xd26   :  { %7056 = vmatprep.subr.bf16.mxu0 %v10072_v38 }
 0xd29   :  { %7058 = vmatpush3.bf16.msra.mxu0 %v10073_v35 }
 0xd2a   :  { %7089 = vmatprep.subr.bf16.mxu0 %v10032_v27 }
 0xddf   :  { %v6151_v33 = vpop.f32.mrb[30].mxu0 }
 0xde0   :  { %v1981_v46 = vpop.f32.mrb[31].mxu0 }
 0xde3   :  { %v6154_v24 = vpop.f32.mrb[32].mxu0 }
 0xde4   :  { %v1991_v23 = vpop.f32.mrb[33].mxu0 }
 0xde5   :  { %2042 = vrot.lane.b32.xlu1 %v1991_v23, %s7702_s28 }
 0xde7   :  { %v6157_v60 = vpop.f32.mrb[34].mxu0 }
 0xde8   :  { %v2001_v59 = vpop.f32.mrb[35].mxu0 }
 0xde9   :  { %2044 = vrot.lane.b32.xlu1 %v6154_v24, %s7702_s28  ;;  %2050 = vrot.lane.b32.xlu0 %v2001_v59, %s7703_s29 }
 0xdeb   :  { %v6160_v3 = vpop.f32.mrb[36].mxu0 }
 0xdec   :  { %v2011_v10 = vpop.f32.mrb[37].mxu0 }
 0xded   :  { %2052 = vrot.lane.b32.xlu0 %v6157_v60, %s7703_s29 }
 0xdef   :  { %v6163_v38 = vpop.f32.mrb[38].mxu0 }
 0xdf0   :  { %v2021_v35 = vpop.f32.mrb[39].mxu0 }
 0xdf1   :  { %2064 = vrot.lane.b32.xlu0 %v6163_v38, %s7702_s28  ;;  %2062 = vrot.lane.b32.xlu1 %v2021_v35, %s7702_s28 }
 0xdf3   :  { %v6166_v56 = vpop.f32.mrb[40].mxu0 }
 0xdf4   :  { %v2031_v51 = vpop.f32.mrb[41].mxu0 }
 0xdf5   :  { %2072 = vrot.lane.b32.xlu0 %v6166_v56, %s7703_s29  ;;  %2070 = vrot.lane.b32.xlu1 %v2031_v51, %s7703_s29  ;;  %v10074_v56 = vld [vmem:[#allocation25_spill] sm:$0xff] }
 0xdf9   :  { %1898 = vrot.lane.b32.xlu0 %v8936_v22, %s7708_s11  ;;  %1896 = vrot.lane.b32.xlu1 %v8934_v63, %s7708_s11 }
 0xe57   :  { %v2043_v59 = vpop.permute.xlu1 %2042 }
 0xe58   :  { %v2056_v60 = vsel %vm411_vm5, %v1981_v46, %v2043_v59 }
 0xe5b   :  { %v2051_v23 = vpop.permute.xlu0 %2050  ;;  %v2045_v24 = vpop.permute.xlu1 %2044 }
 0xe5c   :  { %v2058_v35 = vsel %vm414_vm6, %v2056_v60, %v2051_v23  ;;  %v2057_v51 = vsel %vm411_vm5, %v6151_v33, %v2045_v24  ;;  %v10075_v60 = vld [vmem:[#allocation26_spill] sm:$0xff]  ;;  %v10076_v33 = vld [vmem:[#allocation27_spill] sm:$0xff] }
 0xe5d   :  { %5203 = vmatmul.mubr.msk.f32.vlgmr.msra.gmra.mrb[26].mxu1 %vm437_vm7, %v2058_v35 }
 0xe5e   :  { %2156 = vmatprep.mubr.f32.mxu1 %v10030_v53  ;;  %7062 = vmatpush3.bf16.msra.mxu1 %v8005_v25 }
 0xe5f   :  { %v2053_v38 = vpop.permute.xlu0 %2052  ;;  %7064 = vmatprep.subr.bf16.mxu1 %v10074_v56 }
 0xe60   :  { %v2059_v50 = vsel %vm414_vm6, %v2057_v51, %v2053_v38  ;;  %v10077_v38 = vld [vmem:[#allocation28_spill] sm:$0xff] }
 0xe61   :  { %5204 = vmatmul.mubr.msk.f32.gmra.mrb[28].mxu1 %vm437_vm7, %v2059_v50 }
 0xe62   :  { %7066 = vmatpush3.bf16.msra.mxu1 %v10074_v56 }
 0xe63   :  { %v2065_v46 = vpop.permute.xlu0 %2064  ;;  %v2063_v59 = vpop.permute.xlu1 %2062  ;;  %7068 = vmatprep.subr.bf16.mxu1 %v10075_v60 }
 0xe64   :  { %v2076_v23 = vsel %vm411_vm5, %v2011_v10, %v2063_v59  ;;  %v2077_v10 = vsel %vm411_vm5, %v6160_v3, %v2065_v46  ;;  %v10079_v59 = vld [vmem:[#allocation30_spill] sm:$0xff]  ;;  %v10082_v46 = vld [vmem:[#allocation35_spill] sm:$0xff] }
 0xe65   :  { %v10081_v3 = vld [vmem:[#allocation34_spill] sm:$0xff] }
 0xe66   :  { %7070 = vmatpush3.bf16.msra.mxu1 %v10075_v60  ;;  %v10084_v60 = vld [vmem:[#allocation37_spill] sm:$0xff] }
 0xe67   :  { %v2073_v35 = vpop.permute.xlu0 %2072  ;;  %v2071_v44 = vpop.permute.xlu1 %2070  ;;  %7072 = vmatprep.subr.bf16.mxu1 %v10076_v33 }
 0xe68   :  { %v2078_v24 = vsel %vm414_vm6, %v2076_v23, %v2071_v44  ;;  %v10078_v44 = vld [vmem:[#allocation29_spill] sm:$0xff]  ;;  %v2079_v23 = vsel %vm414_vm6, %v2077_v10, %v2073_v35  ;;  %v10083_v35 = vld [vmem:[#allocation36_spill] sm:$0xff] }
 0xe69   :  { %6195 = vmatprep.mubr.msk.f32.mxu1 %vm437_vm7, %v2078_v24  ;;  %v10080_v24 = vld [vmem:[#allocation33_spill] sm:$0xff] }
 0xe6a   :  { %7074 = vmatpush3.bf16.msra.mxu1 %v10076_v33 }
 0xe6b   :  { %v9078_v50 = vpop.permute.xlu0 %1898  ;;  %v9080_v51 = vpop.permute.xlu1 %1896  ;;  %7076 = vmatprep.subr.bf16.mxu1 %v10077_v38 }
 0xe6c   :  { %1903 = vst.msk [vmem:[%s9860_s7 + $0x8] sm:$0xff] %vm1511_vm3, %v9078_v50  ;;  %1902 = vst.msk [vmem:[%s9860_s7] sm:$0xff] %vm1511_vm3, %v9080_v51 }
 0xe6e   :  { %7078 = vmatpush3.bf16.msra.mxu1 %v10077_v38 }
 0xe6f   :  { %7080 = vmatprep.subr.bf16.mxu1 %v10078_v44 }
 0xe72   :  { %7082 = vmatpush3.bf16.msra.mxu1 %v10078_v44  ;;  %v7660_v44 = vld [vmem:[%s9856_s3 + $0xe0] sm:$0xff] }
 0xe73   :  { %7085 = vmatprep.subr.msk.bf16.mxu1 %vm7982_vm4, %v10079_v59 }
 0xe76   :  { %7088 = vmatpush3.bf16.msk.msra.mxu1 %vm7982_vm4, %v10079_v59 }
 0xe77   :  { %7113 = vmatprep.subr.bf16.mxu1 %v10032_v27 }
 0xe79   :  { %6196 = vmatmul.mubr.msk.f32.vlgmr.msra.gmra.mrb[30].mxu1 %vm437_vm7, %v2079_v23  ;;  %v7659_v23 = vld [vmem:[%s9856_s3 + $0xe8] sm:$0xff] }
 0xe7a   :  { %7115 = vmatpush3.bf16.msra.mxu1 %v10080_v24  ;;  %6252 = vmatprep.mubr.msk.f32.mxu1 %vm7705_vm8, %v10030_v53 }
 0xe7b   :  { %7116 = vmatprep.subr.bf16.mxu1 %v10032_v27 }
 0xe7e   :  { %7118 = vmatpush3.bf16.msra.mxu1 %v10081_v3 }
 0xe7f   :  { %7119 = vmatprep.subr.bf16.mxu1 %v10032_v27 }
 0xe82   :  { %7121 = vmatpush3.bf16.msra.mxu1 %v10082_v46 }
 0xe83   :  { %7122 = vmatprep.subr.bf16.mxu1 %v10032_v27 }
 0xe86   :  { %7124 = vmatpush3.bf16.msra.mxu1 %v10083_v35  ;;  %v7661_v35 = vld [vmem:[%s9856_s3 + $0xf8] sm:$0xff] }
 0xf30   :  { %v2152_v10 = vpop.f32.mrb[26].mxu1 }
 0xf31   :  { %v2154_v59 = vpop.f32.mrb[27].mxu1  ;;  %v2163_v3 = vmul.f32 %v7660_v44, %v2152_v10  ;;  %v10085_v44 = vld [vmem:[#allocation38_spill] sm:$0xff] }
 0xf32   :  { %v2164_v24 = vmul.f32 %v7659_v23, %v2154_v59  ;;  %v7662_v59 = vld [vmem:[%s9856_s3 + $0xf0] sm:$0xff]  ;;  %v7664_v10 = vld [vmem:[%s9857_s4 + $0x180] sm:$0xff] }
 0xf34   :  { %v2158_v38 = vpop.f32.mrb[28].mxu1  ;;  %2231 = vmatprep.mubr.f32.mxu0 %v2164_v24  ;;  %v10086_v24 = vld [vmem:[#allocation39_spill] sm:$0xff] }
 0xf35   :  { %v2160_v33 = vpop.f32.mrb[29].mxu1  ;;  %2232 = vmatmul.mubr.f32.vlgmr.msra.gmra.mrb[42].mxu0 %v2163_v3  ;;  %v2165_v23 = vmul.f32 %v7662_v59, %v2158_v38  ;;  %v7663_v3 = vld [vmem:[%s9857_s4 + $0x188] sm:$0xff] }
 0xf36   :  { %v2166_v46 = vmul.f32 %v7661_v35, %v2160_v33  ;;  %7091 = vmatpush3.bf16.msra.mxu0 %v10084_v60  ;;  %v10087_v33 = vld [vmem:[#allocation40_spill] sm:$0xff] }
 0xf37   :  { %7092 = vmatprep.subr.bf16.mxu0 %v10032_v27 }
 0xf38   :  { %2236 = vmatprep.mubr.f32.mxu0 %v2166_v46 }
 0xf39   :  { %2237 = vmatmul.mubr.f32.gmra.mrb[44].mxu0 %v2165_v23 }
 0xf3a   :  { %7094 = vmatpush3.bf16.msra.mxu0 %v10085_v44  ;;  %6214 = vmatprep.mubr.msk.f32.mxu0 %vm7705_vm8, %v10030_v53 }
 0xf3b   :  { %7095 = vmatprep.subr.bf16.mxu0 %v10032_v27 }
 0xf3e   :  { %7097 = vmatpush3.bf16.msra.mxu0 %v10086_v24 }
 0xf3f   :  { %7098 = vmatprep.subr.bf16.mxu0 %v10032_v27 }
 0xf42   :  { %7100 = vmatpush3.bf16.msra.mxu0 %v10087_v33 }
 0xf43   :  { %7101 = vmatprep.subr.bf16.mxu0 %v10032_v27 }
 0xf4c   :  { %v6197_v38 = vpop.f32.mrb[30].mxu1 }
 0xf4d   :  { %v2320_v46 = vadd.f32 %v7663_v3, %v6197_v38  ;;  %v2314_v35 = vpop.f32.mrb[31].mxu1 }
 0xf4e   :  { %v2315_v59 = vadd.f32 %v7664_v10, %v2314_v35 }
 0xf4f   :  { %vm2330_vm13 = vcmp.ge.f32.partialorder %v2320_v46, 0.0  ;;  %v2332_v23 = vmul.f32 0.01, %v2320_v46 }
 0xf50   :  { %vm2329_vm14 = vcmp.ge.f32.partialorder %v2315_v59, 0.0  ;;  %v2331_v24 = vmul.f32 0.01, %v2315_v59 }
 0xf51   :  { %v9143_v44 = vsel %vm2330_vm13, %v2320_v46, %v2332_v23 }
 0xf52   :  { %v2521_v33 = vsel %vm703_vm10, %v9143_v44, 0.0  ;;  %v9147_v60 = vsel %vm2329_vm14, %v2315_v59, %v2331_v24 }
 0xf53   :  { %v2522_v56 = vrot.slane %v2521_v33, 4  ;;  %v2513_v38 = vsel %vm703_vm10, %v9147_v60, 0.0 }
 0xf54   :  { %v2514_v3 = vrot.slane %v2513_v38, 4 }
 0xf55   :  { %v2523_v22 = vadd.f32 %v2522_v56, %v2521_v33 }
 0xf56   :  { %v2515_v63 = vadd.f32 %v2514_v3, %v2513_v38 }
 0xf57   :  { %v2524_v25 = vrot.slane %v2523_v22, 2 }
 0xf58   :  { %v2516_v35 = vrot.slane %v2515_v63, 2 }
 0xf59   :  { %v2525_v10 = vadd.f32 %v2524_v25, %v2523_v22  ;;  %v7665_v25 = vld [vmem:[%s9857_s4 + $0x100] sm:$0xff] }
 0xf5a   :  { %v2517_v61 = vadd.f32 %v2516_v35, %v2515_v63 }
 0xf5b   :  { %v2526_v58 = vrot.slane %v2525_v10, 1 }
 0xf5c   :  { %v2518_v55 = vrot.slane %v2517_v61, 1 }
 0xf5d   :  { %v2527_v46 = vadd.f32 %v2526_v58, %v2525_v10 }
 0xf5e   :  { %v2519_v23 = vadd.f32 %v2518_v55, %v2517_v61 }
 0xf5f   :  { %v2528_v54 = vmul.f32 0.125, %v2527_v46 }
 0xf60   :  { %v2520_v49 = vmul.f32 0.125, %v2519_v23 }
 0xf62   :  { %v2529_v24 = vsel %vm721_vm12, %v2520_v49, %v2528_v54  ;;  %v7666_v49 = vld [vmem:[%s9857_s4 + $0x108] sm:$0xff] }
 0xf63   :  { %6253 = vmatmul.mubr.msk.f32.vlgmr.msra.gmra.mrb[32].mxu1 %vm703_vm10, %v2529_v24 }
 0xf64   :  { %6278 = vmatprep.mubr.msk.f32.mxu1 %vm233_vm0, %v8880_v18 }
0x1008   :  { %v5523_v59 = vpop.f32.mrb[42].mxu0 }
0x1009   :  { %v5524_v56 = vpop.f32.mrb[43].mxu0 }
0x100a   :  { %v5525_v33 = vadd.f32 %v5524_v56, %v5523_v59 }
0x100c   :  { %v2234_v63 = vadd.f32 %v7665_v25, %v5525_v33  ;;  %v5526_v22 = vpop.f32.mrb[44].mxu0 }
0x100d   :  { %v5527_v58 = vpop.f32.mrb[45].mxu0 }
0x100e   :  { %vm2323_vm15 = vcmp.ge.f32.partialorder %v2234_v63, 0.0  ;;  %v2325_v55 = vmul.f32 0.01, %v2234_v63  ;;  %v5528_v61 = vadd.f32 %v5527_v58, %v5526_v22 }
0x1010   :  { %v9158_v38 = vsel %vm2323_vm15, %v2234_v63, %v2325_v55  ;;  %v2239_v54 = vadd.f32 %v7666_v49, %v5528_v61 }
0x1011   :  { %v2335_v18 = vsel %vm703_vm10, %v9158_v38, 0.0 }
0x1012   :  { %v2336_v3 = vrot.slane %v2335_v18, 4  ;;  %vm2324_vm2 = vcmp.ge.f32.partialorder %v2239_v54, 0.0  ;;  %v2326_v35 = vmul.f32 0.01, %v2239_v54 }
0x1014   :  { %v2337_v10 = vadd.f32 %v2336_v3, %v2335_v18  ;;  %v9165_v46 = vsel %vm2324_vm2, %v2239_v54, %v2326_v35  ;;  %v10088_v54 = vld [vmem:[#allocation41_spill] sm:$0xff]  ;;  %v10089_v18 = vld [vmem:[#allocation42_spill] sm:$0xff]  ;;  %v10090_v3 = vld [vmem:[#allocation43_spill] sm:$0xff] }
0x1015   :  { %v2343_v23 = vsel %vm703_vm10, %v9165_v46, 0.0 }
0x1016   :  { %v2338_v24 = vrot.slane %v2337_v10, 2  ;;  %v2344_v59 = vrot.slane %v2343_v23, 4 }
0x1018   :  { %v2339_v56 = vadd.f32 %v2338_v24, %v2337_v10  ;;  %v2345_v33 = vadd.f32 %v2344_v59, %v2343_v23  ;;  %v10091_v24 = vld [vmem:[#allocation44_spill] sm:$0xff]  ;;  %v10092_v59 = vld [vmem:[#allocation45_spill] sm:$0xff] }
0x101a   :  { %v2340_v25 = vrot.slane %v2339_v56, 1  ;;  %v2346_v63 = vrot.slane %v2345_v33, 2 }
0x101c   :  { %v2347_v22 = vadd.f32 %v2346_v63, %v2345_v33  ;;  %v2341_v58 = vadd.f32 %v2340_v25, %v2339_v56  ;;  %v10093_v56 = vld [vmem:[#allocation46_spill] sm:$0xff]  ;;  %v10094_v33 = vld [vmem:[#allocation47_spill] sm:$0xff] }
0x101e   :  { %v2348_v55 = vrot.slane %v2347_v22, 1  ;;  %v2342_v49 = vmul.f32 0.125, %v2341_v58 }
0x1020   :  { %v2349_v61 = vadd.f32 %v2348_v55, %v2347_v22 }
0x1022   :  { %v2350_v48 = vmul.f32 0.125, %v2349_v61 }
0x1024   :  { %v2351_v43 = vsel %vm721_vm12, %v2342_v49, %v2350_v48 }
0x1025   :  { %6215 = vmatmul.mubr.msk.f32.vlgmr.msra.gmra.mrb[46].mxu0 %vm703_vm10, %v2351_v43 }
0x1026   :  { %7103 = vmatpush3.bf16.msra.mxu0 %v8381_v39  ;;  %6233 = vmatprep.mubr.msk.f32.mxu0 %vm7705_vm8, %v10030_v53 }
0x1027   :  { %7104 = vmatprep.subr.bf16.mxu0 %v10032_v27 }
0x102a   :  { %7106 = vmatpush3.bf16.msra.mxu0 %v10088_v54 }
0x102b   :  { %7107 = vmatprep.subr.bf16.mxu0 %v10032_v27 }
0x102e   :  { %7109 = vmatpush3.bf16.msra.mxu0 %v10089_v18 }
0x102f   :  { %7110 = vmatprep.subr.bf16.mxu0 %v10032_v27 }
0x1032   :  { %7112 = vmatpush3.bf16.msra.mxu0 %v10090_v3 }
0x1033   :  { %7125 = vmatprep.subr.bf16.mxu0 %v10032_v27 }
0x1036   :  { %v2599_v43 = vpop.f32.mrb[32].mxu1 }
0x1037   :  { %v6254_v48 = vpop.f32.mrb[33].mxu1  ;;  %v2603_v25 = vmax.f32 %v2599_v43, 0.0 }
0x10f8   :  { %v2421_v35 = vpop.f32.mrb[46].mxu0 }
0x10f9   :  { %v2425_v10 = vmax.f32 %v2421_v35, 0.0  ;;  %v6216_v23 = vpop.f32.mrb[47].mxu0 }
0x10fb   :  { %6234 = vmatmul.mubr.msk.f32.vlgmr.msra.gmra.mrb[48].mxu0 %vm703_vm10, %v2425_v10 }
0x10fc   :  { %7127 = vmatpush3.bf16.msra.mxu0 %v10091_v24  ;;  %6271 = vmatprep.mubr.msk.f32.mxu0 %vm7705_vm8, %v10030_v53 }
0x10fd   :  { %7128 = vmatprep.subr.bf16.mxu0 %v10032_v27 }
0x1100   :  { %7130 = vmatpush3.bf16.msra.mxu0 %v10092_v59 }
0x1101   :  { %7131 = vmatprep.subr.bf16.mxu0 %v10032_v27 }
0x1104   :  { %7133 = vmatpush3.bf16.msra.mxu0 %v10093_v56 }
0x1105   :  { %7134 = vmatprep.subr.bf16.mxu0 %v10032_v27 }
0x1108   :  { %7136 = vmatpush3.bf16.msra.mxu0 %v10094_v33 }
0x1109   :  { %7172 = vmatprep.subr.bf16.mxu0 %v8604_v12 }
0x110b   :  { %6272 = vmatmul.mubr.msk.f32.vlgmr.msra.gmra.mrb[50].mxu0 %vm703_vm10, %v2603_v25 }
0x110c   :  { %7174 = vmatpush3.bf16.msra.mxu0 %v8604_v12 }
0x110d   :  { %7176 = vmatprep.subr.bf16.mxu0 %v8615_v20 }
0x1110   :  { %7178 = vmatpush3.bf16.msra.mxu0 %v8615_v20 }
0x1111   :  { %7180 = vmatprep.subr.bf16.mxu0 %v8630_v29 }
0x1114   :  { %7182 = vmatpush3.bf16.msra.mxu0 %v8630_v29 }
0x1115   :  { %7184 = vmatprep.subr.bf16.mxu0 %v8646_v62 }
0x1118   :  { %7186 = vmatpush3.bf16.msra.mxu0 %v8646_v62 }
0x1119   :  { %7188 = vmatprep.subr.bf16.mxu0 %v8653_v57 }
0x111c   :  { %7190 = vmatpush3.bf16.msra.mxu0 %v8653_v57 }
0x111d   :  { %7192 = vmatprep.subr.bf16.mxu0 %v8663_v1 }
0x1120   :  { %7194 = vmatpush3.bf16.msra.mxu0 %v8663_v1 }
0x1121   :  { %7196 = vmatprep.subr.bf16.mxu0 %v8673_v15 }
0x1124   :  { %7198 = vmatpush3.bf16.msra.mxu0 %v8673_v15 }
0x1125   :  { %7200 = vmatprep.subr.bf16.mxu0 %v8768_v11 }
0x1128   :  { %7202 = vmatpush3.bf16.msra.mxu0 %v8768_v11 }
0x1129   :  { %7233 = vmatprep.subr.bf16.mxu0 %v10032_v27 }
0x11ce   :  { %v2495_v63 = vpop.f32.mrb[48].mxu0 }
0x11cf   :  { %v2499_v22 = vmul.f32 0.16666667, %v2495_v63  ;;  %v6235_v58 = vpop.f32.mrb[49].mxu0 }
0x11d1   :  { %v2500_v55 = vadd.f32 0.5, %v2499_v22 }
0x11d3   :  { %v2501_v61 = vmax.f32 %v2500_v55, 0.0 }
0x11d5   :  { %v2502_v49 = vmin.f32 %v2501_v61, 1.0 }
0x11d7   :  { %7537 = vpush %v2502_v49  ;;  %v2508_v43 = vrot.slane %v2502_v49, 1 }
0x11d9   :  { %7539 = vpush %v2508_v43 }
0x11de   :  { %v2673_v48 = vpop.f32.mrb[50].mxu0 }
0x11df   :  { %v2677_v35 = vmul.f32 0.16666667, %v2673_v48  ;;  %v6273_v10 = vpop.f32.mrb[51].mxu0 }
0x11e1   :  { %v2678_v23 = vadd.f32 0.5, %v2677_v35 }
0x11e3   :  { %v2679_v25 = vmax.f32 %v2678_v23, 0.0 }
0x11e5   :  { %v2680_v15 = vmin.f32 %v2679_v25, 1.0 }
0x11e7   :  { %7541 = vpush %v2680_v15  ;;  %v2686_v1 = vrot.slane %v2680_v15, 1 }
0x11e9   :  { %7543 = vpush %v2686_v1 }
0x1208   :  { %s7538_s14 = spop %7537 }
0x1209   :  { %v2505_v11 = vstv %s7538_s14 }
0x120a   :  { %s7540_s15 = spop %7539  ;;  %v2507_v58 = vmul.f32 %v2505_v11, %v9158_v38 }
0x120b   :  { %v2510_v63 = vstv %s7540_s15 }
0x120c   :  { %v2512_v49 = vmul.f32 %v2510_v63, %v9165_v46 }
0x1218   :  { %s7542_s1 = spop %7541 }
0x1219   :  { %v2683_v22 = vstv %s7542_s1 }
0x121a   :  { %v2685_v55 = vmul.f32 %v2683_v22, %v9147_v60  ;;  %s7544_s16 = spop %7543 }
0x121b   :  { %v2688_v61 = vstv %s7544_s16 }
0x121c   :  { %v2691_v43 = vadd.f32 %v2685_v55, %v2507_v58  ;;  %v2690_v48 = vmul.f32 %v2688_v61, %v9143_v44 }
0x121e   :  { %v5212_v35 = vmul.f32 -1.442695, %v2691_v43  ;;  %v2692_v15 = vadd.f32 %v2690_v48, %v2512_v49 }
0x1220   :  { %7621 = vpow2.f32 %v5212_v35  ;;  %v5213_v1 = vmul.f32 -1.442695, %v2692_v15 }
0x1222   :  { %7623 = vpow2.f32 %v5213_v1 }
0x122a   :  { %v7622_v10 = vpop.eup %7621 }
0x122b   :  { %v2699_v23 = vadd.f32 1.0, %v7622_v10 }
0x122c   :  { %v7624_v25 = vpop.eup %7623 }
0x122d   :  { %7625 = vrcp.f32 %v2699_v23  ;;  %v2700_v57 = vadd.f32 1.0, %v7624_v25 }
0x122f   :  { %7627 = vrcp.f32 %v2700_v57 }
0x1237   :  { %v9213_v11 = vpop.eup %7625 }
0x1238   :  { %v2705_v38 = vmul.f32 %v9213_v11, %v9080_v51 }
0x1239   :  { %v9215_v60 = vpop.eup %7627 }
0x123a   :  { %v2706_v44 = vmul.f32 %v9215_v60, %v9078_v50 }
0x123c   :  { %v7594_v46 = vpack.i.bf16 %v2706_v44, %v2705_v38  ;;  %v10100_v44 = vld [vmem:[#allocation56_spill] sm:$0xff] }
0x123e   :  { %7595 = vrot.lane.b32.xlu1 %v7594_v46, %s7699_s30 }
0x12b0   :  { %v7596_v63 = vpop.permute.xlu1 %7595 }
0x12b1   :  { %v7598_v22 = vunpack.i.h.bf16 %v7596_v63  ;;  %v7597_v58 = vunpack.i.l.bf16 %v7596_v63  ;;  %v10101_v63 = vld [vmem:[#allocation57_spill] sm:$0xff] }
0x12b3   :  { %v2715_v55 = vsel %vm230_vm1, %v8944_v14, %v7597_v58  ;;  %v2716_v57 = vsel %vm230_vm1, %v8949_v9, %v7598_v22  ;;  %v10095_v14 = vld [vmem:[#allocation48_spill] sm:$0xff]  ;;  %v10096_v9 = vld [vmem:[#allocation49_spill] sm:$0xff] }
0x12b4   :  { %v7137_v61 = vpack.c.bf16 %v2716_v57, %v2715_v55  ;;  %v10102_v55 = vld [vmem:[#allocation58_spill] sm:$0xff] }
0x12b6   :  { %7138 = vmatprep.subr.bf16.mxu1 %v7137_v61 }
0x12b7   :  { %7140 = vmatpush3.bf16.msra.mxu1 %v7137_v61  ;;  %v10103_v61 = vld [vmem:[#allocation59_spill] sm:$0xff] }
0x12b8   :  { %7142 = vmatprep.subr.bf16.mxu1 %v8510_v6 }
0x12ba   :  { %6279 = vmatmul.mubr.msk.f32.vlgmr.msra.gmra.mrb[34].mxu1 %vm233_vm0, %v8959_v7  ;;  %v10097_v7 = vld [vmem:[#allocation50_spill] sm:$0xff] }
0x12bb   :  { %6281 = vmatprep.mubr.msk.f32.mxu1 %vm233_vm0, %v8966_v17  ;;  %7144 = vmatpush3.bf16.msra.mxu1 %v8510_v6  ;;  %v10098_v17 = vld [vmem:[#allocation51_spill] sm:$0xff] }
0x12bc   :  { %7146 = vmatprep.subr.bf16.mxu1 %v8515_v13 }
0x12be   :  { %6282 = vmatmul.mubr.msk.f32.gmra.mrb[36].mxu1 %vm233_vm0, %v8975_v47  ;;  %v10099_v47 = vld [vmem:[#allocation52_spill] sm:$0xff] }
0x12bf   :  { %6284 = vmatprep.mubr.msk.f32.mxu1 %vm233_vm0, %v8982_v41  ;;  %7148 = vmatpush3.bf16.msra.mxu1 %v8515_v13 }
0x12c0   :  { %7150 = vmatprep.subr.bf16.mxu1 %v8526_v16 }
0x12c2   :  { %6285 = vmatmul.mubr.msk.f32.gmra.mrb[38].mxu1 %vm233_vm0, %v8991_v21 }
0x12c3   :  { %6287 = vmatprep.mubr.msk.f32.mxu1 %vm233_vm0, %v8998_v4  ;;  %7152 = vmatpush3.bf16.msra.mxu1 %v8526_v16 }
0x12c4   :  { %7154 = vmatprep.subr.bf16.mxu1 %v10095_v14 }
0x12c6   :  { %6288 = vmatmul.mubr.msk.f32.gmra.mrb[40].mxu1 %vm233_vm0, %v9007_v5 }
0x12c7   :  { %6290 = vmatprep.mubr.msk.f32.mxu1 %vm233_vm0, %v9014_v34  ;;  %7156 = vmatpush3.bf16.msra.mxu1 %v10095_v14 }
0x12c8   :  { %7158 = vmatprep.subr.bf16.mxu1 %v10096_v9 }
0x12ca   :  { %6291 = vmatmul.mubr.msk.f32.gmra.mrb[42].mxu1 %vm233_vm0, %v9023_v28 }
0x12cb   :  { %6293 = vmatprep.mubr.msk.f32.mxu1 %vm233_vm0, %v9030_v32  ;;  %7160 = vmatpush3.bf16.msra.mxu1 %v10096_v9 }
0x12cc   :  { %7162 = vmatprep.subr.bf16.mxu1 %v10097_v7 }
0x12ce   :  { %6294 = vmatmul.mubr.msk.f32.gmra.mrb[44].mxu1 %vm233_vm0, %v9039_v8 }
0x12cf   :  { %7164 = vmatpush3.bf16.msra.mxu1 %v10097_v7 }
0x12d0   :  { %7167 = vmatprep.subr.msk.bf16.mxu1 %vm7982_vm4, %v10098_v17 }
0x12d3   :  { %7170 = vmatpush3.bf16.msk.msra.mxu1 %vm7982_vm4, %v10098_v17 }
0x12d4   :  { %7204 = vmatprep.subr.bf16.mxu1 %v10099_v47 }
0x138d   :  { %v6280_v41 = vpop.f32.mrb[34].mxu1 }
0x138e   :  { %v2783_v21 = vpop.f32.mrb[35].mxu1 }
0x1391   :  { %v6283_v4 = vpop.f32.mrb[36].mxu1 }
0x1392   :  { %2846 = vrot.lane.b32.xlu1 %v6283_v4, %s7702_s28  ;;  %v2793_v5 = vpop.f32.mrb[37].mxu1 }
0x1393   :  { %2844 = vrot.lane.b32.xlu0 %v2793_v5, %s7702_s28  ;;  %v10105_v5 = vld [vmem:[#allocation61_spill] sm:$0xff] }
0x1395   :  { %v6286_v34 = vpop.f32.mrb[38].mxu1 }
0x1396   :  { %2854 = vrot.lane.b32.xlu1 %v6286_v34, %s7703_s29  ;;  %v2803_v28 = vpop.f32.mrb[39].mxu1 }
0x1397   :  { %2852 = vrot.lane.b32.xlu0 %v2803_v28, %s7703_s29 }
0x1399   :  { %v6289_v32 = vpop.f32.mrb[40].mxu1 }
0x139a   :  { %v2813_v8 = vpop.f32.mrb[41].mxu1 }
0x139d   :  { %v6292_v50 = vpop.f32.mrb[42].mxu1 }
0x139e   :  { %v2823_v51 = vpop.f32.mrb[43].mxu1  ;;  %2866 = vrot.lane.b32.xlu1 %v6292_v50, %s7702_s28  ;;  %v7667_v50 = vld [vmem:[%s9858_s5 + $0x70] sm:$0xff] }
0x139f   :  { %2864 = vrot.lane.b32.xlu0 %v2823_v51, %s7702_s28 }
0x13a1   :  { %v6295_v49 = vpop.f32.mrb[44].mxu1 }
0x13a2   :  { %v2833_v43 = vpop.f32.mrb[45].mxu1  ;;  %2874 = vrot.lane.b32.xlu1 %v6295_v49, %s7703_s29  ;;  %v7668_v49 = vld [vmem:[%s9858_s5 + $0x78] sm:$0xff] }
0x13a3   :  { %2872 = vrot.lane.b32.xlu0 %v2833_v43, %s7703_s29 }
0x1404   :  { %v2847_v48 = vpop.permute.xlu1 %2846 }
0x1405   :  { %v2845_v35 = vpop.permute.xlu0 %2844  ;;  %v2859_v23 = vsel %vm411_vm5, %v6280_v41, %v2847_v48  ;;  %v10106_v48 = vld [vmem:[#allocation63_spill] sm:$0xff] }
0x1406   :  { %v2858_v1 = vsel %vm411_vm5, %v2783_v21, %v2845_v35  ;;  %v10104_v21 = vld [vmem:[#allocation60_spill] sm:$0xff] }
0x1408   :  { %v2855_v15 = vpop.permute.xlu1 %2854 }
0x1409   :  { %v2853_v10 = vpop.permute.xlu0 %2852  ;;  %v2861_v38 = vsel %vm414_vm6, %v2859_v23, %v2855_v15 }
0x140a   :  { %v2860_v25 = vsel %vm414_vm6, %v2858_v1, %v2853_v10  ;;  %v7669_v10 = vld [vmem:[%s9859_s6 + $0x88] sm:$0xff] }
0x140b   :  { %6324 = vmatprep.mubr.msk.f32.mxu1 %vm437_vm7, %v2860_v25 }
0x140c   :  { %6325 = vmatmul.mubr.msk.f32.vlgmr.msra.gmra.mrb[46].mxu1 %vm437_vm7, %v2861_v38  ;;  %v7670_v38 = vld [vmem:[%s9859_s6 + $0x80] sm:$0xff] }
0x140d   :  { %7206 = vmatpush3.bf16.msra.mxu1 %v10099_v47 }
0x140e   :  { %7208 = vmatprep.subr.bf16.mxu1 %v10100_v44 }
0x1410   :  { %v2867_v41 = vpop.permute.xlu1 %2866 }
0x1411   :  { %7210 = vmatpush3.bf16.msra.mxu1 %v10100_v44  ;;  %v2865_v46 = vpop.permute.xlu0 %2864  ;;  %v2879_v4 = vsel %vm411_vm5, %v6289_v32, %v2867_v41 }
0x1412   :  { %7212 = vmatprep.subr.bf16.mxu1 %v10101_v63  ;;  %v2878_v22 = vsel %vm411_vm5, %v2813_v8, %v2865_v46 }
0x1414   :  { %v2875_v34 = vpop.permute.xlu1 %2874 }
0x1415   :  { %7214 = vmatpush3.bf16.msra.mxu1 %v10101_v63  ;;  %v2873_v58 = vpop.permute.xlu0 %2872  ;;  %v2881_v28 = vsel %vm414_vm6, %v2879_v4, %v2875_v34 }
0x1416   :  { %7216 = vmatprep.subr.bf16.mxu1 %v10102_v55  ;;  %v2880_v57 = vsel %vm414_vm6, %v2878_v22, %v2873_v58 }
0x1417   :  { %6390 = vmatprep.mubr.msk.f32.mxu1 %vm437_vm7, %v2880_v57 }
0x1419   :  { %7218 = vmatpush3.bf16.msra.mxu1 %v10102_v55 }
0x141a   :  { %7220 = vmatprep.subr.bf16.mxu1 %v10103_v61 }
0x141d   :  { %7222 = vmatpush3.bf16.msra.mxu1 %v10103_v61 }
0x141e   :  { %7224 = vmatprep.subr.bf16.mxu1 %v10104_v21 }
0x1421   :  { %7226 = vmatpush3.bf16.msra.mxu1 %v10104_v21 }
0x1422   :  { %7229 = vmatprep.subr.msk.bf16.mxu1 %vm7982_vm4, %v10105_v5 }
0x1425   :  { %7232 = vmatpush3.bf16.msk.msra.mxu1 %vm7982_vm4, %v10105_v5 }
0x1426   :  { %7251 = vmatprep.subr.bf16.mxu1 %v10032_v27 }
0x1428   :  { %6391 = vmatmul.mubr.msk.f32.vlgmr.msra.gmra.mrb[48].mxu1 %vm437_vm7, %v2881_v28 }
0x1429   :  { %7253 = vmatpush3.bf16.msra.mxu1 %v8890_v19  ;;  %6434 = vmatprep.mubr.msk.f32.mxu1 %vm7705_vm8, %v10030_v53 }
0x142a   :  { %7254 = vmatprep.subr.bf16.mxu1 %v10032_v27 }
0x142d   :  { %7256 = vmatpush3.bf16.msra.mxu1 %v8900_v40 }
0x142e   :  { %7262 = vmatprep.subr.bf16.mxu1 %v7869_v26  ;;  %v10107_v26 = vld [vmem:[#allocation64_spill] sm:$0xff] }
0x14df   :  { %v6326_v32 = vpop.f32.mrb[46].mxu1 }
0x14e0   :  { %v2954_v8 = vpop.f32.mrb[47].mxu1  ;;  %v2964_v43 = vmul.f32 %v7668_v49, %v6326_v32 }
0x14e1   :  { %v2963_v51 = vmul.f32 %v7667_v50, %v2954_v8 }
0x14e3   :  { %6359 = vmatprep.mubr.f32.mxu0 %v2963_v51 }
0x14e4   :  { %6360 = vmatmul.mubr.f32.vlgmr.msra.gmra.mrb[52].mxu0 %v2964_v43 }
0x14e5   :  { %7235 = vmatpush3.bf16.msra.mxu0 %v10106_v48  ;;  %6401 = vmatprep.mubr.msk.f32.mxu0 %vm7705_vm8, %v10030_v53 }
0x14e6   :  { %7236 = vmatprep.subr.bf16.mxu0 %v10032_v27 }
0x14e9   :  { %7238 = vmatpush3.bf16.msra.mxu0 %v10107_v26 }
0x14ea   :  { %7239 = vmatprep.subr.bf16.mxu0 %v10032_v27 }
0x14fb   :  { %v6392_v35 = vpop.f32.mrb[48].mxu1 }
0x14fc   :  { %v3112_v15 = vpop.f32.mrb[49].mxu1 }
0x15b7   :  { %v6361_v1 = vpop.f32.mrb[52].mxu0 }
0x15b8   :  { %v3037_v23 = vadd.f32 %v7669_v10, %v6361_v1  ;;  %v3031_v25 = vpop.f32.mrb[53].mxu0 }
0x15b9   :  { %v3032_v46 = vadd.f32 %v7670_v38, %v3031_v25 }
0x15ba   :  { %vm3122_vm9 = vcmp.ge.f32.partialorder %v3037_v23, 0.0  ;;  %v3124_v22 = vmul.f32 0.01, %v3037_v23 }
0x15bb   :  { %vm3121_vm11 = vcmp.ge.f32.partialorder %v3032_v46, 0.0  ;;  %v3123_v58 = vmul.f32 0.01, %v3032_v46 }
0x15bc   :  { %v9329_v57 = vsel %vm3122_vm9, %v3037_v23, %v3124_v22 }
0x15bd   :  { %v3141_v41 = vsel %vm1511_vm3, %v9329_v57, 0.0  ;;  %v9333_v4 = vsel %vm3121_vm11, %v3032_v46, %v3123_v58  ;;  %v10108_v58 = vld [vmem:[#allocation66_spill] sm:$0xff] }
0x15be   :  { %v3142_v34 = vrot.slane %v3141_v41, 4  ;;  %v3133_v28 = vsel %vm1511_vm3, %v9333_v4, 0.0 }
0x15bf   :  { %v3134_v32 = vrot.slane %v3133_v28, 4 }
0x15c0   :  { %v3143_v8 = vadd.f32 %v3142_v34, %v3141_v41  ;;  %v7671_v41 = vld [vmem:[%s9859_s6 + $0x108] sm:$0xff] }
0x15c1   :  { %v3135_v50 = vadd.f32 %v3134_v32, %v3133_v28  ;;  %v3118_v34 = vadd.f32 %v7671_v41, %v6392_v35 }
0x15c2   :  { %v3144_v51 = vrot.slane %v3143_v8, 2 }
0x15c3   :  { %v3136_v49 = vrot.slane %v3135_v50, 2  ;;  %v3130_v32 = vmul.f32 0.01, %v3118_v34  ;;  %vm3128_vm13 = vcmp.ge.f32.partialorder %v3118_v34, 0.0 }
0x15c4   :  { %v3145_v43 = vadd.f32 %v3144_v51, %v3143_v8 }
0x15c5   :  { %v3137_v1 = vadd.f32 %v3136_v49, %v3135_v50  ;;  %v9351_v50 = vsel %vm3128_vm13, %v3118_v34, %v3130_v32 }
0x15c6   :  { %v3146_v10 = vrot.slane %v3145_v43, 1  ;;  %v3319_v49 = vsel %vm1511_vm3, %v9351_v50, 0.0 }
0x15c7   :  { %v3138_v25 = vrot.slane %v3137_v1, 1  ;;  %v3320_v35 = vrot.slane %v3319_v49, 4 }
0x15c8   :  { %v3147_v23 = vadd.f32 %v3146_v10, %v3145_v43 }
0x15c9   :  { %v3139_v38 = vadd.f32 %v3138_v25, %v3137_v1  ;;  %v3321_v10 = vadd.f32 %v3320_v35, %v3319_v49 }
0x15ca   :  { %v3148_v22 = vmul.f32 0.125, %v3147_v23 }
0x15cb   :  { %v3140_v26 = vmul.f32 0.125, %v3139_v38  ;;  %v3322_v23 = vrot.slane %v3321_v10, 2 }
0x15cd   :  { %v3149_v46 = vsel %vm721_vm12, %v3140_v26, %v3148_v22  ;;  %v7672_v26 = vld [vmem:[%s9859_s6 + $0x100] sm:$0xff]  ;;  %v3323_v38 = vadd.f32 %v3322_v23, %v3321_v10 }
0x15ce   :  { %6402 = vmatmul.mubr.msk.f32.vlgmr.msra.gmra.mrb[54].mxu0 %vm1511_vm3, %v3149_v46  ;;  %v3113_v28 = vadd.f32 %v7672_v26, %v3112_v15 }
0x15cf   :  { %7241 = vmatpush3.bf16.msra.mxu0 %v8821_v45  ;;  %6412 = vmatprep.mubr.msk.f32.mxu0 %vm7705_vm8, %v10030_v53  ;;  %v3324_v46 = vrot.slane %v3323_v38, 1 }
0x15d0   :  { %7242 = vmatprep.subr.bf16.mxu0 %v10032_v27  ;;  %v3129_v8 = vmul.f32 0.01, %v3113_v28  ;;  %vm3127_vm14 = vcmp.ge.f32.partialorder %v3113_v28, 0.0 }
0x15d2   :  { %v9353_v51 = vsel %vm3127_vm14, %v3113_v28, %v3129_v8  ;;  %v3325_v8 = vadd.f32 %v3324_v46, %v3323_v38 }
0x15d3   :  { %7244 = vmatpush3.bf16.msra.mxu0 %v10108_v58  ;;  %v3311_v43 = vsel %vm1511_vm3, %v9353_v51, 0.0 }
0x15d4   :  { %7245 = vmatprep.subr.bf16.mxu0 %v10032_v27  ;;  %v3312_v1 = vrot.slane %v3311_v43, 4 }
0x15d6   :  { %v3313_v25 = vadd.f32 %v3312_v1, %v3311_v43  ;;  %v3326_v43 = vmul.f32 0.125, %v3325_v8  ;;  %v9370_v1 = vld [vmem:[%s9854_s2] sm:$0xff]  ;;  %v10111_v8 = vld [vmem:[#allocation4_spill] sm:$0xff] }
0x15d8   :  { %v3314_v15 = vrot.slane %v3313_v25, 2 }
0x15da   :  { %v3315_v22 = vadd.f32 %v3314_v15, %v3313_v25 }
0x15dc   :  { %v3316_v41 = vrot.slane %v3315_v22, 1 }
0x15de   :  { %v3317_v32 = vadd.f32 %v3316_v41, %v3315_v22 }
0x15e0   :  { %v3318_v49 = vmul.f32 0.125, %v3317_v32  ;;  %v10110_v32 = vld [vmem:[#allocation3_spill] sm:$0xff] }
0x15e2   :  { %v3327_v35 = vsel %vm721_vm12, %v3318_v49, %v3326_v43  ;;  %v10112_v49 = vld [vmem:[#allocation5_spill] sm:$0xff]  ;;  %v10113_v43 = vld [vmem:[#allocation6_spill] sm:$0xff] }
0x16a1   :  { %v3219_v34 = vpop.f32.mrb[54].mxu0 }
0x16a2   :  { %v3223_v26 = vmax.f32 %v3219_v34, 0.0  ;;  %v6403_v28 = vpop.f32.mrb[55].mxu0 }
0x16a3   :  { %v10109_v28 = vld [vmem:[#allocation2_spill] sm:$0xff] }
0x16a4   :  { %6413 = vmatmul.mubr.msk.f32.vlgmr.msra.gmra.mrb[56].mxu0 %vm1511_vm3, %v3223_v26 }
0x16a5   :  { %7247 = vmatpush3.bf16.msra.mxu0 %v8859_v0  ;;  %6423 = vmatprep.mubr.msk.f32.mxu0 %vm7705_vm8, %v10030_v53 }
0x16a6   :  { %7248 = vmatprep.subr.bf16.mxu0 %v10032_v27 }
0x16a9   :  { %7250 = vmatpush3.bf16.msra.mxu0 %v8869_v52 }
0x16ac   :  { %6424 = vmatmul.mubr.msk.f32.vlgmr.msra.gmra.mrb[58].mxu0 %vm1511_vm3, %v3327_v35  ;;  %v10115_v35 = vld [vmem:[#allocation8_spill] sm:$0xff] }
0x16ad   :  { %6441 = vmatprep.mubr.msk.f32.mxu0 %vm233_vm0, %v9370_v1 }
0x1777   :  { %v3293_v10 = vpop.f32.mrb[56].mxu0 }
0x1778   :  { %v3297_v25 = vmul.f32 0.16666667, %v3293_v10  ;;  %v6414_v23 = vpop.f32.mrb[57].mxu0 }
0x177a   :  { %v3298_v15 = vadd.f32 0.5, %v3297_v25 }
0x177c   :  { %v3299_v38 = vmax.f32 %v3298_v15, 0.0 }
0x177e   :  { %v3300_v22 = vmin.f32 %v3299_v38, 1.0 }
0x177f   :  { %v3397_v46 = vpop.f32.mrb[58].mxu0 }
0x1780   :  { %v3401_v41 = vmax.f32 %v3397_v46, 0.0  ;;  %v6425_v34 = vpop.f32.mrb[59].mxu0  ;;  %7545 = vpush %v3300_v22  ;;  %v3306_v26 = vrot.slane %v3300_v22, 1 }
0x1782   :  { %6435 = vmatmul.mubr.msk.f32.vlgmr.msra.gmra.mrb[50].mxu1 %vm1511_vm3, %v3401_v41  ;;  %7547 = vpush %v3306_v26 }
0x1783   :  { %7264 = vmatpush1.bf16.msra.mxu1 %v7880_v30  ;;  %3766 = vmatprep.mubr.f32.mxu1 %v10030_v53  ;;  %v10114_v30 = vld [vmem:[#allocation7_spill] sm:$0xff] }
0x1784   :  { %7266 = vmatprep.subr.bf16.mxu1 %v7882_v31  ;;  %v10116_v31 = vld [vmem:[#allocation9_spill] sm:$0xff] }
0x1787   :  { %7268 = vmatpush1.bf16.msra.mxu1 %v7898_v36  ;;  %v10117_v36 = vld [vmem:[#allocation10_spill] sm:$0xff] }
0x1788   :  { %7270 = vmatprep.subr.bf16.mxu1 %v7901_v37 }
0x178b   :  { %7272 = vmatpush1.bf16.msra.mxu1 %v7916_v42 }
0x178c   :  { %7274 = vmatprep.subr.bf16.mxu1 %v10109_v28 }
0x178f   :  { %7276 = vmatpush1.bf16.msra.mxu1 %v10110_v32 }
0x1790   :  { %7278 = vmatprep.subr.bf16.mxu1 %v10111_v8 }
0x1793   :  { %7280 = vmatpush1.bf16.msra.mxu1 %v10112_v49 }
0x1794   :  { %7282 = vmatprep.subr.bf16.mxu1 %v10113_v43 }
0x1797   :  { %7284 = vmatpush1.bf16.msra.mxu1 %v10114_v30 }
0x1798   :  { %7287 = vmatprep.subr.msk.bf16.mxu1 %vm7982_vm4, %v10115_v35 }
0x179b   :  { %7290 = vmatpush1.bf16.msk.msra.mxu1 %vm7982_vm4, %v10116_v31 }
0x179c   :  { %7324 = vmatprep.subr.bf16.mxu1 %v10117_v36 }
0x17b1   :  { %s7546_s14 = spop %7545 }
0x17b2   :  { %v3303_v22 = vstv %s7546_s14 }
0x17b3   :  { %s7548_s15 = spop %7547  ;;  %v3305_v34 = vmul.f32 %v3303_v22, %v9333_v4  ;;  %v3495_v4 = vsub.f32 1.0, %v9213_v11 }
0x17b4   :  { %v3308_v46 = vstv %s7548_s15 }
0x17b5   :  { %v3310_v32 = vmul.f32 %v3308_v46, %v9329_v57  ;;  %v10118_v57 = vld [vmem:[#allocation71_spill] sm:$0xff] }
0x1855   :  { %v3471_v37 = vpop.f32.mrb[50].mxu1 }
0x1856   :  { %v3475_v42 = vmul.f32 0.16666667, %v3471_v37  ;;  %v6436_v10 = vpop.f32.mrb[51].mxu1  ;;  %v3496_v37 = vsub.f32 1.0, %v9215_v60 }
0x1857   :  { %v3493_v10 = vmul.f32 %v9213_v11, %v10118_v57  ;;  %v9421_v11 = vld [vmem:[%s9855_s0 + $0x28] sm:$0xff]  ;;  %v9470_v57 = vld [vmem:[%s9854_s2 + $0x30] sm:$0xff] }
0x1858   :  { %v3476_v25 = vadd.f32 0.5, %v3475_v42 }
0x185a   :  { %v3477_v23 = vmax.f32 %v3476_v25, 0.0 }
0x185c   :  { %v3478_v15 = vmin.f32 %v3477_v23, 1.0 }
0x185e   :  { %7549 = vpush %v3478_v15  ;;  %v3484_v38 = vrot.slane %v3478_v15, 1 }
0x1860   :  { %7551 = vpush %v3484_v38 }
0x188f   :  { %s7550_s1 = spop %7549 }
0x1890   :  { %v3481_v41 = vstv %s7550_s1 }
0x1891   :  { %v3483_v26 = vmul.f32 %v3481_v41, %v9353_v51  ;;  %s7552_s16 = spop %7551  ;;  %v9416_v41 = vld [vmem:[%s9855_s0 + $0x20] sm:$0xff] }
0x1892   :  { %v3486_v28 = vstv %s7552_s16 }
0x1893   :  { %v3489_v8 = vadd.f32 %v3483_v26, %v3305_v34  ;;  %v3488_v49 = vmul.f32 %v3486_v28, %v9351_v50  ;;  %v10119_v50 = vld [vmem:[#allocation72_spill] sm:$0xff] }
0x1894   :  { %v3494_v25 = vmul.f32 %v9215_v60, %v10119_v50  ;;  %v10128_v50 = vld [vmem:[#allocation17_spill] sm:$0xff] }
0x1895   :  { %7629 = vtanh.f32 %v3489_v8  ;;  %v3490_v43 = vadd.f32 %v3488_v49, %v3310_v32  ;;  %v10122_v8 = vld [vmem:[#allocation11_spill] sm:$0xff] }
0x1896   :  { %v9431_v49 = vld [vmem:[%s9854_s2 + $0x8] sm:$0xff] }
0x1897   :  { %7631 = vtanh.f32 %v3490_v43  ;;  %v9438_v43 = vld [vmem:[%s9854_s2 + $0x10] sm:$0xff] }
0x189f   :  { %v7630_v30 = vpop.eup %7629 }
0x18a0   :  { %3499 = vrot.lane.b32.xlu0 %v7630_v30, %s7706_s26  ;;  %v10123_v30 = vld [vmem:[#allocation12_spill] sm:$0xff] }
0x18a1   :  { %v7632_v35 = vpop.eup %7631 }
0x18a2   :  { %3501 = vrot.lane.b32.xlu1 %v7632_v35, %s7706_s26  ;;  %v10124_v35 = vld [vmem:[#allocation13_spill] sm:$0xff] }
0x1912   :  { %v3500_v31 = vpop.permute.xlu0 %3499 }
0x1913   :  { %v3505_v51 = vmul.f32 %v3500_v31, %v3495_v4  ;;  %v9447_v4 = vld [vmem:[%s9854_s2 + $0x18] sm:$0xff]  ;;  %v9454_v31 = vld [vmem:[%s9854_s2 + $0x20] sm:$0xff] }
0x1914   :  { %v3502_v42 = vpop.permute.xlu1 %3501 }
0x1915   :  { %v3506_v23 = vmul.f32 %v3502_v42, %v3496_v37  ;;  %v9406_v15 = vadd.f32 %v3505_v51, %v3493_v10  ;;  %v10125_v51 = vld [vmem:[#allocation14_spill] sm:$0xff]  ;;  %v10126_v37 = vld [vmem:[#allocation15_spill] sm:$0xff]  ;;  %v10127_v10 = vld [vmem:[#allocation16_spill] sm:$0xff] }
0x1916   :  { %v9463_v42 = vld [vmem:[%s9854_s2 + $0x28] sm:$0xff] }
0x1917   :  { %10120 = vst [vmem:[#allocation41_spill] sm:$0xff] %v9406_v15  ;;  %v9408_v38 = vadd.f32 %v3506_v23, %v3494_v25  ;;  %v9479_v25 = vld [vmem:[%s9854_s2 + $0x38] sm:$0xff]  ;;  %v9486_v23 = vld [vmem:[%s9854_s2 + $0x40] sm:$0xff] }
0x1919   :  { %10121 = vst [vmem:[#allocation42_spill] sm:$0xff] %v9408_v38  ;;  %v7599_v22 = vpack.i.bf16 %v9408_v38, %v9406_v15 }
0x191b   :  { %7600 = vrot.lane.b32.xlu0 %v7599_v22, %s7707_s22  ;;  %v10129_v22 = vld [vmem:[#allocation18_spill] sm:$0xff] }
0x198d   :  { %v7601_v46 = vpop.permute.xlu0 %7600 }
0x198e   :  { %v7603_v60 = vunpack.i.h.bf16 %v7601_v46  ;;  %v7602_v34 = vunpack.i.l.bf16 %v7601_v46  ;;  %v10130_v46 = vld [vmem:[#allocation19_spill] sm:$0xff] }
0x1990   :  { %v3529_v26 = vsel %vm230_vm1, %v9416_v41, %v7602_v34  ;;  %v3530_v28 = vsel %vm230_vm1, %v9421_v11, %v7603_v60  ;;  %v9495_v60 = vld [vmem:[%s9854_s2 + $0x48] sm:$0xff]  ;;  %v9502_v34 = vld [vmem:[%s9854_s2 + $0x50] sm:$0xff] }
0x1991   :  { %v7257_v32 = vpack.c.bf16 %v3530_v28, %v3529_v26  ;;  %v10131_v26 = vld [vmem:[#allocation20_spill] sm:$0xff]  ;;  %v10132_v28 = vld [vmem:[#allocation21_spill] sm:$0xff] }
0x1993   :  { %7258 = vmatprep.subr.bf16.mxu0 %v7257_v32 }
0x1994   :  { %7260 = vmatpush3.bf16.msra.mxu0 %v7257_v32  ;;  %v9511_v32 = vld [vmem:[%s9854_s2 + $0x58] sm:$0xff] }
0x1995   :  { %7292 = vmatprep.subr.bf16.mxu0 %v10122_v8  ;;  %v10133_v8 = vld [vmem:[#allocation22_spill] sm:$0xff] }
0x1997   :  { %6442 = vmatmul.mubr.msk.f32.vlgmr.msra.gmra.mrb[60].mxu0 %vm233_vm0, %v9431_v49 }
0x1998   :  { %6444 = vmatprep.mubr.msk.f32.mxu0 %vm233_vm0, %v9438_v43  ;;  %7294 = vmatpush3.bf16.msra.mxu0 %v10123_v30  ;;  %v10134_v30 = vld [vmem:[#allocation23_spill] sm:$0xff] }
0x1999   :  { %7296 = vmatprep.subr.bf16.mxu0 %v10124_v35  ;;  %v10135_v35 = vld [vmem:[#allocation24_spill] sm:$0xff] }
0x199b   :  { %6445 = vmatmul.mubr.msk.f32.gmra.mrb[62].mxu0 %vm233_vm0, %v9447_v4 }
0x199c   :  { %6447 = vmatprep.mubr.msk.f32.mxu0 %vm233_vm0, %v9454_v31  ;;  %7298 = vmatpush3.bf16.msra.mxu0 %v10125_v51  ;;  %v10136_v51 = vld [vmem:[#allocation31_spill] sm:$0xff] }
0x199d   :  { %7300 = vmatprep.subr.bf16.mxu0 %v10126_v37  ;;  %v10137_v37 = vld [vmem:[#allocation32_spill] sm:$0xff] }
0x199f   :  { %6448 = vmatmul.mubr.msk.f32.gmra.mrb[64].mxu0 %vm233_vm0, %v9463_v42 }
0x19a0   :  { %6450 = vmatprep.mubr.msk.f32.mxu0 %vm233_vm0, %v9470_v57  ;;  %7302 = vmatpush3.bf16.msra.mxu0 %v10127_v10 }
0x19a1   :  { %7304 = vmatprep.subr.bf16.mxu0 %v10128_v50 }
0x19a3   :  { %6451 = vmatmul.mubr.msk.f32.gmra.mrb[66].mxu0 %vm233_vm0, %v9479_v25 }
0x19a4   :  { %6453 = vmatprep.mubr.msk.f32.mxu0 %vm233_vm0, %v9486_v23  ;;  %7306 = vmatpush3.bf16.msra.mxu0 %v10129_v22 }
0x19a5   :  { %7308 = vmatprep.subr.bf16.mxu0 %v10130_v46 }
0x19a7   :  { %6454 = vmatmul.mubr.msk.f32.gmra.mrb[68].mxu0 %vm233_vm0, %v9495_v60 }
0x19a8   :  { %6456 = vmatprep.mubr.msk.f32.mxu0 %vm233_vm0, %v9502_v34  ;;  %7310 = vmatpush3.bf16.msra.mxu0 %v10131_v26 }
0x19a9   :  { %7312 = vmatprep.subr.bf16.mxu0 %v10132_v28 }
0x19ab   :  { %6457 = vmatmul.mubr.msk.f32.gmra.mrb[70].mxu0 %vm233_vm0, %v9511_v32 }
0x19ac   :  { %7314 = vmatpush3.bf16.msra.mxu0 %v10133_v8 }
0x19ad   :  { %7316 = vmatprep.subr.bf16.mxu0 %v10134_v30 }
0x19b0   :  { %7318 = vmatpush3.bf16.msra.mxu0 %v10135_v35 }
0x19b1   :  { %7320 = vmatprep.subr.bf16.mxu0 %v10136_v51 }
0x19b4   :  { %7322 = vmatpush3.bf16.msra.mxu0 %v10137_v37 }
0x19b5   :  { %7353 = vmatprep.subr.bf16.mxu0 %v10032_v27 }
0x1a6a   :  { %v6443_v10 = vpop.f32.mrb[60].mxu0 }
0x1a6b   :  { %v3597_v50 = vpop.f32.mrb[61].mxu0 }
0x1a6e   :  { %v6446_v22 = vpop.f32.mrb[62].mxu0 }
0x1a6f   :  { %v3607_v46 = vpop.f32.mrb[63].mxu0 }
0x1a70   :  { %3658 = vrot.lane.b32.xlu1 %v3607_v46, %s7702_s28 }
0x1a72   :  { %v6449_v26 = vpop.f32.mrb[64].mxu0 }
0x1a73   :  { %v3617_v28 = vpop.f32.mrb[65].mxu0 }
0x1a74   :  { %3660 = vrot.lane.b32.xlu1 %v6446_v22, %s7702_s28  ;;  %3666 = vrot.lane.b32.xlu0 %v3617_v28, %s7703_s29 }
0x1a76   :  { %v6452_v8 = vpop.f32.mrb[66].mxu0 }
0x1a77   :  { %v3627_v30 = vpop.f32.mrb[67].mxu0 }
0x1a78   :  { %3668 = vrot.lane.b32.xlu0 %v6449_v26, %s7703_s29 }
0x1a7a   :  { %v6455_v35 = vpop.f32.mrb[68].mxu0 }
0x1a7b   :  { %v3637_v51 = vpop.f32.mrb[69].mxu0 }
0x1a7c   :  { %3680 = vrot.lane.b32.xlu0 %v6455_v35, %s7702_s28  ;;  %3678 = vrot.lane.b32.xlu1 %v3637_v51, %s7702_s28 }
0x1a7e   :  { %v6458_v37 = vpop.f32.mrb[70].mxu0 }
0x1a7f   :  { %v3647_v52 = vpop.f32.mrb[71].mxu0 }
0x1a80   :  { %3688 = vrot.lane.b32.xlu0 %v6458_v37, %s7703_s29  ;;  %3686 = vrot.lane.b32.xlu1 %v3647_v52, %s7703_s29  ;;  %v10138_v37 = vld [vmem:[#allocation25_spill] sm:$0xff] }
0x1a84   :  { %3513 = vrot.lane.b32.xlu0 %v9408_v38, %s7708_s11  ;;  %3511 = vrot.lane.b32.xlu1 %v9406_v15, %s7708_s11 }
0x1ae2   :  { %v3659_v22 = vpop.permute.xlu1 %3658 }
0x1ae3   :  { %v3672_v46 = vsel %vm411_vm5, %v3597_v50, %v3659_v22 }
0x1ae6   :  { %v3667_v26 = vpop.permute.xlu0 %3666  ;;  %v3661_v28 = vpop.permute.xlu1 %3660 }
0x1ae7   :  { %v3674_v35 = vsel %vm414_vm6, %v3672_v46, %v3667_v26  ;;  %v3673_v52 = vsel %vm411_vm5, %v6443_v10, %v3661_v28  ;;  %v10139_v46 = vld [vmem:[#allocation26_spill] sm:$0xff]  ;;  %v10140_v10 = vld [vmem:[#allocation27_spill] sm:$0xff] }
0x1ae8   :  { %5254 = vmatmul.mubr.msk.f32.vlgmr.msra.gmra.mrb[52].mxu1 %vm437_vm7, %v3674_v35 }
0x1ae9   :  { %3772 = vmatprep.mubr.f32.mxu1 %v10030_v53  ;;  %7326 = vmatpush3.bf16.msra.mxu1 %v10117_v36 }
0x1aea   :  { %v3669_v51 = vpop.permute.xlu0 %3668  ;;  %7328 = vmatprep.subr.bf16.mxu1 %v10138_v37 }
0x1aeb   :  { %v3675_v38 = vsel %vm414_vm6, %v3673_v52, %v3669_v51  ;;  %v10141_v51 = vld [vmem:[#allocation28_spill] sm:$0xff] }
0x1aec   :  { %5255 = vmatmul.mubr.msk.f32.gmra.mrb[54].mxu1 %vm437_vm7, %v3675_v38 }
0x1aed   :  { %7330 = vmatpush3.bf16.msra.mxu1 %v10138_v37 }
0x1aee   :  { %v3681_v50 = vpop.permute.xlu0 %3680  ;;  %v3679_v22 = vpop.permute.xlu1 %3678  ;;  %7332 = vmatprep.subr.bf16.mxu1 %v10139_v46 }
0x1aef   :  { %v3692_v26 = vsel %vm411_vm5, %v3627_v30, %v3679_v22  ;;  %v10142_v30 = vld [vmem:[#allocation29_spill] sm:$0xff]  ;;  %v3693_v37 = vsel %vm411_vm5, %v6452_v8, %v3681_v50  ;;  %v10143_v22 = vld [vmem:[#allocation30_spill] sm:$0xff]  ;;  %v10146_v50 = vld [vmem:[#allocation35_spill] sm:$0xff] }
0x1af0   :  { %v10145_v8 = vld [vmem:[#allocation34_spill] sm:$0xff] }
0x1af1   :  { %7334 = vmatpush3.bf16.msra.mxu1 %v10139_v46 }
0x1af2   :  { %v3689_v36 = vpop.permute.xlu0 %3688  ;;  %v3687_v35 = vpop.permute.xlu1 %3686  ;;  %7336 = vmatprep.subr.bf16.mxu1 %v10140_v10 }
0x1af3   :  { %v3694_v28 = vsel %vm414_vm6, %v3692_v26, %v3687_v35  ;;  %v3695_v46 = vsel %vm414_vm6, %v3693_v37, %v3689_v36  ;;  %v10144_v26 = vld [vmem:[#allocation33_spill] sm:$0xff]  ;;  %v10147_v36 = vld [vmem:[#allocation36_spill] sm:$0xff] }
0x1af4   :  { %6487 = vmatprep.mubr.msk.f32.mxu1 %vm437_vm7, %v3694_v28  ;;  %v7685_v28 = vld [vmem:[%s9856_s3 + $0xe8] sm:$0xff] }
0x1af5   :  { %7338 = vmatpush3.bf16.msra.mxu1 %v10140_v10 }
0x1af6   :  { %v9550_v38 = vpop.permute.xlu0 %3513  ;;  %v9552_v52 = vpop.permute.xlu1 %3511  ;;  %7340 = vmatprep.subr.bf16.mxu1 %v10141_v51 }
0x1af7   :  { %5237 = vst.msk [vmem:[%s9860_s7 + $0x18] sm:$0xff] %vm1511_vm3, %v9550_v38  ;;  %5236 = vst.msk [vmem:[%s9860_s7 + $0x10] sm:$0xff] %vm1511_vm3, %v9552_v52 }
0x1af9   :  { %7342 = vmatpush3.bf16.msra.mxu1 %v10141_v51 }
0x1afa   :  { %7344 = vmatprep.subr.bf16.mxu1 %v10142_v30 }
0x1afd   :  { %7346 = vmatpush3.bf16.msra.mxu1 %v10142_v30  ;;  %v7686_v30 = vld [vmem:[%s9856_s3 + $0xe0] sm:$0xff] }
0x1afe   :  { %7349 = vmatprep.subr.msk.bf16.mxu1 %vm7982_vm4, %v10143_v22 }
0x1b01   :  { %7352 = vmatpush3.bf16.msk.msra.mxu1 %vm7982_vm4, %v10143_v22 }
0x1b02   :  { %7377 = vmatprep.subr.bf16.mxu1 %v10032_v27 }
0x1b04   :  { %6488 = vmatmul.mubr.msk.f32.vlgmr.msra.gmra.mrb[56].mxu1 %vm437_vm7, %v3695_v46 }
0x1b05   :  { %7379 = vmatpush3.bf16.msra.mxu1 %v10144_v26  ;;  %6544 = vmatprep.mubr.msk.f32.mxu1 %vm7705_vm8, %v10030_v53  ;;  %v7687_v26 = vld [vmem:[%s9856_s3 + $0xf8] sm:$0xff] }
0x1b06   :  { %7380 = vmatprep.subr.bf16.mxu1 %v10032_v27 }
0x1b09   :  { %7382 = vmatpush3.bf16.msra.mxu1 %v10145_v8 }
0x1b0a   :  { %7383 = vmatprep.subr.bf16.mxu1 %v10032_v27 }
0x1b0d   :  { %7385 = vmatpush3.bf16.msra.mxu1 %v10146_v50  ;;  %v10148_v50 = vld [vmem:[#allocation37_spill] sm:$0xff] }
0x1b0e   :  { %7386 = vmatprep.subr.bf16.mxu1 %v10032_v27 }
0x1b11   :  { %7388 = vmatpush3.bf16.msra.mxu1 %v10147_v36  ;;  %v7688_v36 = vld [vmem:[%s9856_s3 + $0xf0] sm:$0xff] }
0x1bbb   :  { %v3768_v35 = vpop.f32.mrb[52].mxu1 }
0x1bbc   :  { %v3770_v10 = vpop.f32.mrb[53].mxu1  ;;  %v3779_v37 = vmul.f32 %v7686_v30, %v3768_v35  ;;  %v10149_v35 = vld [vmem:[#allocation38_spill] sm:$0xff] }
0x1bbd   :  { %v3780_v51 = vmul.f32 %v7685_v28, %v3770_v10  ;;  %v10150_v28 = vld [vmem:[#allocation39_spill] sm:$0xff] }
0x1bbf   :  { %v3774_v22 = vpop.f32.mrb[54].mxu1  ;;  %3847 = vmatprep.mubr.f32.mxu0 %v3780_v51  ;;  %v10151_v51 = vld [vmem:[#allocation40_spill] sm:$0xff] }
0x1bc0   :  { %v3776_v46 = vpop.f32.mrb[55].mxu1  ;;  %3848 = vmatmul.mubr.f32.vlgmr.msra.gmra.mrb[72].mxu0 %v3779_v37  ;;  %v3781_v10 = vmul.f32 %v7688_v36, %v3774_v22  ;;  %v7689_v37 = vld [vmem:[%s9857_s4 + $0x188] sm:$0xff] }
0x1bc1   :  { %v3782_v8 = vmul.f32 %v7687_v26, %v3776_v46  ;;  %7355 = vmatpush3.bf16.msra.mxu0 %v10148_v50  ;;  %v7690_v26 = vld [vmem:[%s9857_s4 + $0x180] sm:$0xff] }
0x1bc2   :  { %7356 = vmatprep.subr.bf16.mxu0 %v10032_v27 }
0x1bc3   :  { %3852 = vmatprep.mubr.f32.mxu0 %v3782_v8 }
0x1bc4   :  { %3853 = vmatmul.mubr.f32.gmra.mrb[74].mxu0 %v3781_v10 }
0x1bc5   :  { %7358 = vmatpush3.bf16.msra.mxu0 %v10149_v35  ;;  %6506 = vmatprep.mubr.msk.f32.mxu0 %vm7705_vm8, %v10030_v53 }
0x1bc6   :  { %7359 = vmatprep.subr.bf16.mxu0 %v10032_v27 }
0x1bc9   :  { %7361 = vmatpush3.bf16.msra.mxu0 %v10150_v28 }
0x1bca   :  { %7362 = vmatprep.subr.bf16.mxu0 %v10032_v27 }
0x1bcd   :  { %7364 = vmatpush3.bf16.msra.mxu0 %v10151_v51 }
0x1bce   :  { %7365 = vmatprep.subr.bf16.mxu0 %v10032_v27 }
0x1bd7   :  { %v6489_v30 = vpop.f32.mrb[56].mxu1 }
0x1bd8   :  { %v3936_v22 = vadd.f32 %v7689_v37, %v6489_v30  ;;  %v3930_v46 = vpop.f32.mrb[57].mxu1 }
0x1bd9   :  { %v3931_v8 = vadd.f32 %v7690_v26, %v3930_v46 }
0x1bda   :  { %vm3946_vm15 = vcmp.ge.f32.partialorder %v3936_v22, 0.0  ;;  %v3948_v50 = vmul.f32 0.01, %v3936_v22 }
0x1bdb   :  { %vm3945_vm2 = vcmp.ge.f32.partialorder %v3931_v8, 0.0  ;;  %v3947_v36 = vmul.f32 0.01, %v3931_v8 }
0x1bdc   :  { %v9615_v10 = vsel %vm3946_vm15, %v3936_v22, %v3948_v50 }
0x1bdd   :  { %v4137_v35 = vsel %vm703_vm10, %v9615_v10, 0.0  ;;  %v9619_v28 = vsel %vm3945_vm2, %v3931_v8, %v3947_v36 }
0x1bde   :  { %v4138_v51 = vrot.slane %v4137_v35, 4  ;;  %v4129_v30 = vsel %vm703_vm10, %v9619_v28, 0.0 }
0x1bdf   :  { %v4130_v37 = vrot.slane %v4129_v30, 4 }
0x1be0   :  { %v4139_v15 = vadd.f32 %v4138_v51, %v4137_v35 }
0x1be1   :  { %v4131_v0 = vadd.f32 %v4130_v37, %v4129_v30 }
0x1be2   :  { %v4140_v58 = vrot.slane %v4139_v15, 2 }
0x1be3   :  { %v4132_v46 = vrot.slane %v4131_v0, 2 }
0x1be4   :  { %v4141_v26 = vadd.f32 %v4140_v58, %v4139_v15 }
0x1be5   :  { %v4133_v45 = vadd.f32 %v4132_v46, %v4131_v0  ;;  %v7691_v0 = vld [vmem:[%s9857_s4 + $0x100] sm:$0xff] }
0x1be6   :  { %v4142_v48 = vrot.slane %v4141_v26, 1 }
0x1be7   :  { %v4134_v40 = vrot.slane %v4133_v45, 1 }
0x1be8   :  { %v4143_v22 = vadd.f32 %v4142_v48, %v4141_v26 }
0x1be9   :  { %v4135_v50 = vadd.f32 %v4134_v40, %v4133_v45 }
0x1bea   :  { %v4144_v19 = vmul.f32 0.125, %v4143_v22 }
0x1beb   :  { %v4136_v5 = vmul.f32 0.125, %v4135_v50 }
0x1bed   :  { %v4145_v8 = vsel %vm721_vm12, %v4136_v5, %v4144_v19  ;;  %v7692_v19 = vld [vmem:[%s9857_s4 + $0x108] sm:$0xff] }
0x1bee   :  { %6545 = vmatmul.mubr.msk.f32.vlgmr.msra.gmra.mrb[58].mxu1 %vm703_vm10, %v4145_v8 }
0x1bef   :  { %6570 = vmatprep.mubr.msk.f32.mxu1 %vm233_vm0, %v9370_v1 }
0x1c93   :  { %v5711_v36 = vpop.f32.mrb[72].mxu0 }
0x1c94   :  { %v5712_v35 = vpop.f32.mrb[73].mxu0 }
0x1c95   :  { %v5713_v51 = vadd.f32 %v5712_v35, %v5711_v36 }
0x1c97   :  { %v3850_v58 = vadd.f32 %v7691_v0, %v5713_v51  ;;  %v5714_v15 = vpop.f32.mrb[74].mxu0 }
0x1c98   :  { %v5715_v48 = vpop.f32.mrb[75].mxu0 }
0x1c99   :  { %vm3939_vm9 = vcmp.ge.f32.partialorder %v3850_v58, 0.0  ;;  %v3941_v45 = vmul.f32 0.01, %v3850_v58  ;;  %v5716_v40 = vadd.f32 %v5715_v48, %v5714_v15 }
0x1c9b   :  { %v9630_v30 = vsel %vm3939_vm9, %v3850_v58, %v3941_v45  ;;  %v3855_v5 = vadd.f32 %v7692_v19, %v5716_v40 }
0x1c9c   :  { %v3951_v1 = vsel %vm703_vm10, %v9630_v30, 0.0 }
0x1c9d   :  { %v3952_v37 = vrot.slane %v3951_v1, 4  ;;  %vm3940_vm11 = vcmp.ge.f32.partialorder %v3855_v5, 0.0  ;;  %v3942_v46 = vmul.f32 0.01, %v3855_v5 }
0x1c9f   :  { %v3953_v26 = vadd.f32 %v3952_v37, %v3951_v1  ;;  %v9637_v22 = vsel %vm3940_vm11, %v3855_v5, %v3942_v46 }
0x1ca0   :  { %v3959_v50 = vsel %vm703_vm10, %v9637_v22, 0.0 }
0x1ca1   :  { %v3954_v8 = vrot.slane %v3953_v26, 2  ;;  %v3960_v36 = vrot.slane %v3959_v50, 4 }
0x1ca3   :  { %v3955_v35 = vadd.f32 %v3954_v8, %v3953_v26  ;;  %v3961_v51 = vadd.f32 %v3960_v36, %v3959_v50 }
0x1ca5   :  { %v3956_v0 = vrot.slane %v3955_v35, 1  ;;  %v3962_v58 = vrot.slane %v3961_v51, 2 }
0x1ca7   :  { %v3963_v15 = vadd.f32 %v3962_v58, %v3961_v51  ;;  %v3957_v48 = vadd.f32 %v3956_v0, %v3955_v35 }
0x1ca9   :  { %v3964_v45 = vrot.slane %v3963_v15, 1  ;;  %v3958_v19 = vmul.f32 0.125, %v3957_v48 }
0x1cab   :  { %v3965_v40 = vadd.f32 %v3964_v45, %v3963_v15 }
0x1cad   :  { %v3966_v21 = vmul.f32 0.125, %v3965_v40 }
0x1caf   :  { %v3967_v61 = vsel %vm721_vm12, %v3958_v19, %v3966_v21 }
0x1cb0   :  { %6507 = vmatmul.mubr.msk.f32.vlgmr.msra.gmra.mrb[76].mxu0 %vm703_vm10, %v3967_v61 }
0x1cb1   :  { %7367 = vmatpush3.bf16.msra.mxu0 %v8381_v39  ;;  %6525 = vmatprep.mubr.msk.f32.mxu0 %vm7705_vm8, %v10030_v53 }
0x1cb2   :  { %7368 = vmatprep.subr.bf16.mxu0 %v10032_v27 }
0x1cb5   :  { %7370 = vmatpush3.bf16.msra.mxu0 %v10088_v54 }
0x1cb6   :  { %7371 = vmatprep.subr.bf16.mxu0 %v10032_v27 }
0x1cb9   :  { %7373 = vmatpush3.bf16.msra.mxu0 %v10089_v18  ;;  %v10152_v18 = vld [vmem:[#allocation53_spill] sm:$0xff] }
0x1cba   :  { %7374 = vmatprep.subr.bf16.mxu0 %v10032_v27 }
0x1cbd   :  { %7376 = vmatpush3.bf16.msra.mxu0 %v10090_v3  ;;  %v10153_v3 = vld [vmem:[#allocation54_spill] sm:$0xff] }
0x1cbe   :  { %7389 = vmatprep.subr.bf16.mxu0 %v10032_v27 }
0x1cc1   :  { %v4215_v61 = vpop.f32.mrb[58].mxu1 }
0x1cc2   :  { %v6546_v21 = vpop.f32.mrb[59].mxu1  ;;  %v4219_v54 = vmax.f32 %v4215_v61, 0.0 }
0x1d83   :  { %v4037_v39 = vpop.f32.mrb[76].mxu0 }
0x1d84   :  { %v4041_v5 = vmax.f32 %v4037_v39, 0.0  ;;  %v6508_v1 = vpop.f32.mrb[77].mxu0 }
0x1d86   :  { %6526 = vmatmul.mubr.msk.f32.vlgmr.msra.gmra.mrb[78].mxu0 %vm703_vm10, %v4041_v5 }
0x1d87   :  { %7391 = vmatpush3.bf16.msra.mxu0 %v10091_v24  ;;  %6563 = vmatprep.mubr.msk.f32.mxu0 %vm7705_vm8, %v10030_v53 }
0x1d88   :  { %7392 = vmatprep.subr.bf16.mxu0 %v10032_v27 }
0x1d8b   :  { %7394 = vmatpush3.bf16.msra.mxu0 %v10092_v59 }
0x1d8c   :  { %7395 = vmatprep.subr.bf16.mxu0 %v10032_v27 }
0x1d8f   :  { %7397 = vmatpush3.bf16.msra.mxu0 %v10093_v56 }
0x1d90   :  { %7398 = vmatprep.subr.bf16.mxu0 %v10032_v27 }
0x1d93   :  { %7400 = vmatpush3.bf16.msra.mxu0 %v10094_v33 }
0x1d94   :  { %7436 = vmatprep.subr.bf16.mxu0 %v8604_v12 }
0x1d96   :  { %6564 = vmatmul.mubr.msk.f32.vlgmr.msra.gmra.mrb[80].mxu0 %vm703_vm10, %v4219_v54 }
0x1d97   :  { %7438 = vmatpush3.bf16.msra.mxu0 %v8604_v12  ;;  %v10154_v12 = vld [vmem:[#allocation55_spill] sm:$0xff] }
0x1d98   :  { %7440 = vmatprep.subr.bf16.mxu0 %v8615_v20 }
0x1d9b   :  { %7442 = vmatpush3.bf16.msra.mxu0 %v8615_v20  ;;  %v10155_v20 = vld [vmem:[#allocation62_spill] sm:$0xff] }
0x1d9c   :  { %7444 = vmatprep.subr.bf16.mxu0 %v8630_v29 }
0x1d9f   :  { %7446 = vmatpush3.bf16.msra.mxu0 %v8630_v29 }
0x1da0   :  { %7448 = vmatprep.subr.bf16.mxu0 %v8646_v62 }
0x1da3   :  { %7450 = vmatpush3.bf16.msra.mxu0 %v8646_v62 }
0x1da4   :  { %7452 = vmatprep.subr.bf16.mxu0 %v10152_v18 }
0x1da7   :  { %7454 = vmatpush3.bf16.msra.mxu0 %v10152_v18 }
0x1da8   :  { %7456 = vmatprep.subr.bf16.mxu0 %v10153_v3 }
0x1dab   :  { %7458 = vmatpush3.bf16.msra.mxu0 %v10153_v3 }
0x1dac   :  { %7460 = vmatprep.subr.bf16.mxu0 %v10154_v12 }
0x1daf   :  { %7462 = vmatpush3.bf16.msra.mxu0 %v10154_v12 }
0x1db0   :  { %7464 = vmatprep.subr.bf16.mxu0 %v10155_v20 }
0x1db3   :  { %7466 = vmatpush3.bf16.msra.mxu0 %v10155_v20 }
0x1db4   :  { %7497 = vmatprep.subr.bf16.mxu0 %v10032_v27 }
0x1e59   :  { %v4111_v29 = vpop.f32.mrb[78].mxu0 }
0x1e5a   :  { %v4115_v62 = vmul.f32 0.16666667, %v4111_v29  ;;  %v6527_v24 = vpop.f32.mrb[79].mxu0 }
0x1e5c   :  { %v4116_v59 = vadd.f32 0.5, %v4115_v62 }
0x1e5e   :  { %v4117_v56 = vmax.f32 %v4116_v59, 0.0 }
0x1e60   :  { %v4118_v33 = vmin.f32 %v4117_v56, 1.0 }
0x1e62   :  { %7553 = vpush %v4118_v33  ;;  %v4124_v37 = vrot.slane %v4118_v33, 1 }
0x1e64   :  { %7555 = vpush %v4124_v37 }
0x1e69   :  { %v4289_v46 = vpop.f32.mrb[80].mxu0 }
0x1e6a   :  { %v4293_v26 = vmul.f32 0.16666667, %v4289_v46  ;;  %v6565_v50 = vpop.f32.mrb[81].mxu0 }
0x1e6b   :  { %v10158_v50 = vld [vmem:[#allocation61_spill] sm:$0xff] }
0x1e6c   :  { %v4294_v8 = vadd.f32 0.5, %v4293_v26 }
0x1e6e   :  { %v4295_v36 = vmax.f32 %v4294_v8, 0.0 }
0x1e70   :  { %v4296_v35 = vmin.f32 %v4295_v36, 1.0  ;;  %v10159_v36 = vld [vmem:[#allocation69_spill] sm:$0xff] }
0x1e72   :  { %7557 = vpush %v4296_v35  ;;  %v4302_v51 = vrot.slane %v4296_v35, 1  ;;  %v10160_v35 = vld [vmem:[#allocation70_spill] sm:$0xff] }
0x1e74   :  { %7559 = vpush %v4302_v51 }
0x1e93   :  { %s7554_s4 = spop %7553 }
0x1e94   :  { %v4121_v0 = vstv %s7554_s4 }
0x1e95   :  { %s7556_s22 = spop %7555  ;;  %v4123_v48 = vmul.f32 %v4121_v0, %v9630_v30 }
0x1e96   :  { %v4126_v58 = vstv %s7556_s22 }
0x1e97   :  { %v4128_v19 = vmul.f32 %v4126_v58, %v9637_v22 }
0x1ea3   :  { %s7558_s21 = spop %7557 }
0x1ea4   :  { %v4299_v15 = vstv %s7558_s21 }
0x1ea5   :  { %v4301_v45 = vmul.f32 %v4299_v15, %v9619_v28  ;;  %s7560_s2 = spop %7559  ;;  %v7694_v15 = vld [vmem:[%s9858_s5 + $0x78] sm:$0xff] }
0x1ea6   :  { %v4304_v40 = vstv %s7560_s2 }
0x1ea7   :  { %v4307_v61 = vadd.f32 %v4301_v45, %v4123_v48  ;;  %v4306_v21 = vmul.f32 %v4304_v40, %v9615_v10  ;;  %v10161_v45 = vld [vmem:[#allocation63_spill] sm:$0xff]  ;;  %v10162_v40 = vld [vmem:[#allocation64_spill] sm:$0xff] }
0x1ea9   :  { %v5263_v39 = vmul.f32 -1.442695, %v4307_v61  ;;  %v4308_v5 = vadd.f32 %v4306_v21, %v4128_v19 }
0x1eab   :  { %7633 = vpow2.f32 %v5263_v39  ;;  %v5264_v1 = vmul.f32 -1.442695, %v4308_v5  ;;  %v7695_v39 = vld [vmem:[%s9859_s6 + $0x88] sm:$0xff] }
0x1ead   :  { %7635 = vpow2.f32 %v5264_v1 }
0x1eb5   :  { %v7634_v54 = vpop.eup %7633 }
0x1eb6   :  { %v4315_v18 = vadd.f32 1.0, %v7634_v54  ;;  %v7696_v54 = vld [vmem:[%s9859_s6 + $0x80] sm:$0xff] }
0x1eb7   :  { %v7636_v3 = vpop.eup %7635 }
0x1eb8   :  { %7637 = vrcp.f32 %v4315_v18  ;;  %v4316_v12 = vadd.f32 1.0, %v7636_v3 }
0x1eba   :  { %7639 = vrcp.f32 %v4316_v12 }
0x1ec2   :  { %v9685_v30 = vpop.eup %7637 }
0x1ec3   :  { %v4321_v22 = vmul.f32 %v9685_v30, %v9552_v52 }
0x1ec4   :  { %v9687_v28 = vpop.eup %7639 }
0x1ec5   :  { %v4322_v10 = vmul.f32 %v9687_v28, %v9550_v38 }
0x1ec7   :  { %v7604_v20 = vpack.i.bf16 %v4322_v10, %v4321_v22 }
0x1ec9   :  { %7605 = vrot.lane.b32.xlu1 %v7604_v20, %s7699_s30 }
0x1f3b   :  { %v7606_v29 = vpop.permute.xlu1 %7605 }
0x1f3c   :  { %v7608_v62 = vunpack.i.h.bf16 %v7606_v29  ;;  %v7607_v24 = vunpack.i.l.bf16 %v7606_v29 }
0x1f3e   :  { %v4331_v59 = vsel %vm230_vm1, %v9416_v41, %v7607_v24  ;;  %v4332_v56 = vsel %vm230_vm1, %v9421_v11, %v7608_v62 }
0x1f3f   :  { %v7401_v33 = vpack.c.bf16 %v4332_v56, %v4331_v59 }
0x1f41   :  { %7402 = vmatprep.subr.bf16.mxu1 %v7401_v33 }
0x1f42   :  { %7404 = vmatpush3.bf16.msra.mxu1 %v7401_v33 }
0x1f43   :  { %7406 = vmatprep.subr.bf16.mxu1 %v8510_v6 }
0x1f45   :  { %6571 = vmatmul.mubr.msk.f32.vlgmr.msra.gmra.mrb[60].mxu1 %vm233_vm0, %v9431_v49 }
0x1f46   :  { %6573 = vmatprep.mubr.msk.f32.mxu1 %vm233_vm0, %v9438_v43  ;;  %7408 = vmatpush3.bf16.msra.mxu1 %v8510_v6 }
0x1f47   :  { %7410 = vmatprep.subr.bf16.mxu1 %v8515_v13 }
0x1f49   :  { %6574 = vmatmul.mubr.msk.f32.gmra.mrb[62].mxu1 %vm233_vm0, %v9447_v4 }
0x1f4a   :  { %6576 = vmatprep.mubr.msk.f32.mxu1 %vm233_vm0, %v9454_v31  ;;  %7412 = vmatpush3.bf16.msra.mxu1 %v8515_v13 }
0x1f4b   :  { %7414 = vmatprep.subr.bf16.mxu1 %v8526_v16 }
0x1f4d   :  { %6577 = vmatmul.mubr.msk.f32.gmra.mrb[64].mxu1 %vm233_vm0, %v9463_v42 }
0x1f4e   :  { %6579 = vmatprep.mubr.msk.f32.mxu1 %vm233_vm0, %v9470_v57  ;;  %7416 = vmatpush3.bf16.msra.mxu1 %v8526_v16 }
0x1f4f   :  { %7418 = vmatprep.subr.bf16.mxu1 %v10095_v14 }
0x1f51   :  { %6580 = vmatmul.mubr.msk.f32.gmra.mrb[66].mxu1 %vm233_vm0, %v9479_v25 }
0x1f52   :  { %6582 = vmatprep.mubr.msk.f32.mxu1 %vm233_vm0, %v9486_v23  ;;  %7420 = vmatpush3.bf16.msra.mxu1 %v10095_v14 }
0x1f53   :  { %7422 = vmatprep.subr.bf16.mxu1 %v10096_v9 }
0x1f55   :  { %6583 = vmatmul.mubr.msk.f32.gmra.mrb[68].mxu1 %vm233_vm0, %v9495_v60 }
0x1f56   :  { %6585 = vmatprep.mubr.msk.f32.mxu1 %vm233_vm0, %v9502_v34  ;;  %7424 = vmatpush3.bf16.msra.mxu1 %v10096_v9 }
0x1f57   :  { %7426 = vmatprep.subr.bf16.mxu1 %v10097_v7 }
0x1f59   :  { %6586 = vmatmul.mubr.msk.f32.gmra.mrb[70].mxu1 %vm233_vm0, %v9511_v32 }
0x1f5a   :  { %7428 = vmatpush3.bf16.msra.mxu1 %v10097_v7 }
0x1f5b   :  { %7431 = vmatprep.subr.msk.bf16.mxu1 %vm7982_vm4, %v10098_v17 }
0x1f5e   :  { %7434 = vmatpush3.bf16.msk.msra.mxu1 %vm7982_vm4, %v10098_v17 }
0x1f5f   :  { %7468 = vmatprep.subr.bf16.mxu1 %v10099_v47 }
0x2018   :  { %v6572_v6 = vpop.f32.mrb[60].mxu1 }
0x2019   :  { %v4399_v13 = vpop.f32.mrb[61].mxu1 }
0x201c   :  { %v6575_v16 = vpop.f32.mrb[62].mxu1 }
0x201d   :  { %4462 = vrot.lane.b32.xlu1 %v6575_v16, %s7702_s28  ;;  %v4409_v14 = vpop.f32.mrb[63].mxu1 }
0x201e   :  { %4460 = vrot.lane.b32.xlu0 %v4409_v14, %s7702_s28 }
0x2020   :  { %v6578_v9 = vpop.f32.mrb[64].mxu1 }
0x2021   :  { %4470 = vrot.lane.b32.xlu1 %v6578_v9, %s7703_s29  ;;  %v4419_v7 = vpop.f32.mrb[65].mxu1 }
0x2022   :  { %4468 = vrot.lane.b32.xlu0 %v4419_v7, %s7703_s29 }
0x2024   :  { %v6581_v41 = vpop.f32.mrb[66].mxu1 }
0x2025   :  { %v4429_v11 = vpop.f32.mrb[67].mxu1 }
0x2028   :  { %v6584_v49 = vpop.f32.mrb[68].mxu1 }
0x2029   :  { %v4439_v17 = vpop.f32.mrb[69].mxu1  ;;  %4482 = vrot.lane.b32.xlu1 %v6584_v49, %s7702_s28 }
0x202a   :  { %4480 = vrot.lane.b32.xlu0 %v4439_v17, %s7702_s28 }
0x202c   :  { %v6587_v43 = vpop.f32.mrb[70].mxu1 }
0x202d   :  { %v4449_v4 = vpop.f32.mrb[71].mxu1  ;;  %4490 = vrot.lane.b32.xlu1 %v6587_v43, %s7703_s29  ;;  %v10163_v43 = vld [vmem:[#allocation65_spill] sm:$0xff] }
0x202e   :  { %4488 = vrot.lane.b32.xlu0 %v4449_v4, %s7703_s29  ;;  %v10164_v4 = vld [vmem:[#allocation66_spill] sm:$0xff] }
0x208f   :  { %v4463_v31 = vpop.permute.xlu1 %4462 }
0x2090   :  { %v4461_v42 = vpop.permute.xlu0 %4460  ;;  %v4475_v60 = vsel %vm411_vm5, %v6572_v6, %v4463_v31  ;;  %v7697_v31 = vld [vmem:[%s9859_s6 + $0x108] sm:$0xff] }
0x2091   :  { %v4474_v25 = vsel %vm411_vm5, %v4399_v13, %v4461_v42 }
0x2093   :  { %v4471_v57 = vpop.permute.xlu1 %4470 }
0x2094   :  { %v4469_v23 = vpop.permute.xlu0 %4468  ;;  %v4477_v32 = vsel %vm414_vm6, %v4475_v60, %v4471_v57  ;;  %v7698_v57 = vld [vmem:[%s9859_s6 + $0x100] sm:$0xff] }
0x2095   :  { %v4476_v34 = vsel %vm414_vm6, %v4474_v25, %v4469_v23 }
0x2096   :  { %6616 = vmatprep.mubr.msk.f32.mxu1 %vm437_vm7, %v4476_v34 }
0x2097   :  { %6617 = vmatmul.mubr.msk.f32.vlgmr.msra.gmra.mrb[72].mxu1 %vm437_vm7, %v4477_v32 }
0x2098   :  { %7470 = vmatpush3.bf16.msra.mxu1 %v10099_v47  ;;  %v10156_v47 = vld [vmem:[#allocation59_spill] sm:$0xff] }
0x2099   :  { %7472 = vmatprep.subr.bf16.mxu1 %v10100_v44 }
0x209b   :  { %v4483_v26 = vpop.permute.xlu1 %4482 }
0x209c   :  { %7474 = vmatpush3.bf16.msra.mxu1 %v10100_v44  ;;  %v4481_v38 = vpop.permute.xlu0 %4480  ;;  %v10157_v44 = vld [vmem:[#allocation60_spill] sm:$0xff] }
0x209d   :  { %7476 = vmatprep.subr.bf16.mxu1 %v10101_v63  ;;  %v4494_v52 = vsel %vm411_vm5, %v4429_v11, %v4481_v38 }
0x209f   :  { %v4491_v8 = vpop.permute.xlu1 %4490 }
0x20a0   :  { %7478 = vmatpush3.bf16.msra.mxu1 %v10101_v63  ;;  %v4489_v37 = vpop.permute.xlu0 %4488  ;;  %v4495_v63 = vsel %vm411_vm5, %v6581_v41, %v4483_v26 }
0x20a1   :  { %7480 = vmatprep.subr.bf16.mxu1 %v10102_v55  ;;  %v4496_v46 = vsel %vm414_vm6, %v4494_v52, %v4489_v37 }
0x20a2   :  { %6682 = vmatprep.mubr.msk.f32.mxu1 %vm437_vm7, %v4496_v46 }
0x20a4   :  { %7482 = vmatpush3.bf16.msra.mxu1 %v10102_v55  ;;  %v4497_v55 = vsel %vm414_vm6, %v4495_v63, %v4491_v8 }
0x20a5   :  { %7484 = vmatprep.subr.bf16.mxu1 %v10156_v47 }
0x20a8   :  { %7486 = vmatpush3.bf16.msra.mxu1 %v10156_v47 }
0x20a9   :  { %7488 = vmatprep.subr.bf16.mxu1 %v10157_v44 }
0x20ac   :  { %7490 = vmatpush3.bf16.msra.mxu1 %v10157_v44 }
0x20ad   :  { %7493 = vmatprep.subr.msk.bf16.mxu1 %vm7982_vm4, %v10158_v50 }
0x20b0   :  { %7496 = vmatpush3.bf16.msk.msra.mxu1 %vm7982_vm4, %v10158_v50 }
0x20b1   :  { %7515 = vmatprep.subr.bf16.mxu1 %v10032_v27 }
0x20b3   :  { %6683 = vmatmul.mubr.msk.f32.vlgmr.msra.gmra.mrb[74].mxu1 %vm437_vm7, %v4497_v55 }
0x20b4   :  { %7517 = vmatpush3.bf16.msra.mxu1 %v10159_v36  ;;  %6726 = vmatprep.mubr.msk.f32.mxu1 %vm7705_vm8, %v10030_v53 }
0x20b5   :  { %7518 = vmatprep.subr.bf16.mxu1 %v10032_v27 }
0x20b8   :  { %7520 = vmatpush3.bf16.msra.mxu1 %v10160_v35 }
0x216a   :  { %v6618_v51 = vpop.f32.mrb[72].mxu1 }
0x216b   :  { %v4570_v0 = vpop.f32.mrb[73].mxu1  ;;  %v4580_v48 = vmul.f32 %v7694_v15, %v6618_v51  ;;  %v10165_v15 = vld [vmem:[#allocation67_spill] sm:$0xff] }
0x216c   :  { %v4579_v58 = vmul.f32 %v7693_v2, %v4570_v0 }
0x216e   :  { %6651 = vmatprep.mubr.f32.mxu0 %v4579_v58 }
0x216f   :  { %6652 = vmatmul.mubr.f32.vlgmr.msra.gmra.mrb[82].mxu0 %v4580_v48 }
0x2170   :  { %7499 = vmatpush3.bf16.msra.mxu0 %v10161_v45  ;;  %6693 = vmatprep.mubr.msk.f32.mxu0 %vm7705_vm8, %v10030_v53 }
0x2171   :  { %7500 = vmatprep.subr.bf16.mxu0 %v10032_v27 }
0x2174   :  { %7502 = vmatpush3.bf16.msra.mxu0 %v10162_v40  ;;  %v10166_v40 = vld [vmem:[#allocation68_spill] sm:$0xff] }
0x2175   :  { %7503 = vmatprep.subr.bf16.mxu0 %v10032_v27 }
0x2186   :  { %v6684_v19 = vpop.f32.mrb[74].mxu1 }
0x2187   :  { %v4728_v61 = vpop.f32.mrb[75].mxu1  ;;  %v4734_v42 = vadd.f32 %v7697_v31, %v6684_v19 }
0x2188   :  { %v4729_v25 = vadd.f32 %v7698_v57, %v4728_v61 }
0x2189   :  { %v4746_v23 = vmul.f32 0.01, %v4734_v42  ;;  %vm4744_vm4 = vcmp.ge.f32.partialorder %v4734_v42, 0.0 }
0x218a   :  { %v4745_v60 = vmul.f32 0.01, %v4729_v25  ;;  %vm4743_vm5 = vcmp.ge.f32.partialorder %v4729_v25, 0.0 }
0x218b   :  { %v4748_v34 = vsel %vm4744_vm4, %v4734_v42, %v4746_v23 }
0x218c   :  { %v4747_v32 = vsel %vm4743_vm5, %v4729_v25, %v4745_v60  ;;  %v4935_v38 = vsel %vm1511_vm3, %v4748_v34, 0.0  ;;  %v10168_v60 = vld [vmem:[#allocation42_spill] sm:$0xff] }
0x218d   :  { %v4927_v52 = vsel %vm1511_vm3, %v4747_v32, 0.0  ;;  %v4936_v37 = vrot.slane %v4935_v38, 4 }
0x218e   :  { %v4928_v46 = vrot.slane %v4927_v52, 4 }
0x218f   :  { %v4937_v47 = vadd.f32 %v4936_v37, %v4935_v38 }
0x2190   :  { %v4929_v26 = vadd.f32 %v4928_v46, %v4927_v52 }
0x2191   :  { %v4938_v44 = vrot.slane %v4937_v47, 2 }
0x2192   :  { %v4930_v63 = vrot.slane %v4929_v26, 2 }
0x2193   :  { %v4939_v50 = vadd.f32 %v4938_v44, %v4937_v47 }
0x2194   :  { %v4931_v8 = vadd.f32 %v4930_v63, %v4929_v26 }
0x2195   :  { %v4940_v55 = vrot.slane %v4939_v50, 1 }
0x2196   :  { %v4932_v36 = vrot.slane %v4931_v8, 1 }
0x2197   :  { %v4941_v58 = vadd.f32 %v4940_v55, %v4939_v50 }
0x2198   :  { %v4933_v2 = vadd.f32 %v4932_v36, %v4931_v8 }
0x2199   :  { %v4942_v45 = vmul.f32 0.125, %v4941_v58 }
0x219a   :  { %v4934_v48 = vmul.f32 0.125, %v4933_v2 }
0x219c   :  { %v4943_v19 = vsel %vm721_vm12, %v4934_v48, %v4942_v45 }
0x2242   :  { %v6653_v21 = vpop.f32.mrb[82].mxu0 }
0x2243   :  { %v4653_v5 = vadd.f32 %v7695_v39, %v6653_v21  ;;  %v4647_v1 = vpop.f32.mrb[83].mxu0 }
0x2244   :  { %v4648_v18 = vadd.f32 %v7696_v54, %v4647_v1 }
0x2245   :  { %vm4738_vm0 = vcmp.ge.f32.partialorder %v4653_v5, 0.0  ;;  %v4740_v3 = vmul.f32 0.01, %v4653_v5 }
0x2246   :  { %vm4737_vm1 = vcmp.ge.f32.partialorder %v4648_v18, 0.0  ;;  %v4739_v12 = vmul.f32 0.01, %v4648_v18 }
0x2247   :  { %v9800_v22 = vsel %vm4738_vm0, %v4653_v5, %v4740_v3 }
0x2248   :  { %v4757_v10 = vsel %vm1511_vm3, %v9800_v22, 0.0  ;;  %v9804_v20 = vsel %vm4737_vm1, %v4648_v18, %v4739_v12 }
0x2249   :  { %v4758_v29 = vrot.slane %v4757_v10, 4  ;;  %v4749_v62 = vsel %vm1511_vm3, %v9804_v20, 0.0 }
0x224a   :  { %v4750_v24 = vrot.slane %v4749_v62, 4 }
0x224b   :  { %v4759_v59 = vadd.f32 %v4758_v29, %v4757_v10 }
0x224c   :  { %v4751_v56 = vadd.f32 %v4750_v24, %v4749_v62 }
0x224d   :  { %v4760_v33 = vrot.slane %v4759_v59, 2 }
0x224e   :  { %v4752_v6 = vrot.slane %v4751_v56, 2 }
0x224f   :  { %v4761_v13 = vadd.f32 %v4760_v33, %v4759_v59 }
0x2250   :  { %v4753_v16 = vadd.f32 %v4752_v6, %v4751_v56 }
0x2251   :  { %v4762_v14 = vrot.slane %v4761_v13, 1 }
0x2252   :  { %v4754_v9 = vrot.slane %v4753_v16, 1 }
0x2253   :  { %v4763_v7 = vadd.f32 %v4762_v14, %v4761_v13 }
0x2254   :  { %v4755_v41 = vadd.f32 %v4754_v9, %v4753_v16 }
0x2255   :  { %v4764_v11 = vmul.f32 0.125, %v4763_v7 }
0x2256   :  { %v4756_v49 = vmul.f32 0.125, %v4755_v41 }
0x2258   :  { %v4765_v17 = vsel %vm721_vm12, %v4756_v49, %v4764_v11 }
0x2259   :  { %6694 = vmatmul.mubr.msk.f32.vlgmr.msra.gmra.mrb[84].mxu0 %vm1511_vm3, %v4765_v17 }
0x225a   :  { %7505 = vmatpush3.bf16.msra.mxu0 %v10163_v43  ;;  %6704 = vmatprep.mubr.msk.f32.mxu0 %vm7705_vm8, %v10030_v53 }
0x225b   :  { %7506 = vmatprep.subr.bf16.mxu0 %v10032_v27 }
0x225e   :  { %7508 = vmatpush3.bf16.msra.mxu0 %v10164_v4  ;;  %v5111_v4 = vsub.f32 1.0, %v9685_v30 }
0x225f   :  { %7509 = vmatprep.subr.bf16.mxu0 %v10032_v27 }
0x232c   :  { %v4835_v35 = vpop.f32.mrb[84].mxu0 }
0x232d   :  { %v4839_v51 = vmax.f32 %v4835_v35, 0.0  ;;  %v6695_v0 = vpop.f32.mrb[85].mxu0 }
0x232f   :  { %6705 = vmatmul.mubr.msk.f32.vlgmr.msra.gmra.mrb[86].mxu0 %vm1511_vm3, %v4839_v51 }
0x2330   :  { %7511 = vmatpush3.bf16.msra.mxu0 %v10165_v15  ;;  %6715 = vmatprep.mubr.msk.f32.mxu0 %vm7705_vm8, %v10030_v53 }
0x2331   :  { %7512 = vmatprep.subr.bf16.mxu0 %v10032_v27 }
0x2334   :  { %7514 = vmatpush3.bf16.msra.mxu0 %v10166_v40 }
0x2337   :  { %6716 = vmatmul.mubr.msk.f32.vlgmr.msra.gmra.mrb[88].mxu0 %vm1511_vm3, %v4943_v19 }
0x2402   :  { %v4909_v61 = vpop.f32.mrb[86].mxu0 }
0x2403   :  { %v4913_v21 = vmul.f32 0.16666667, %v4909_v61  ;;  %v6706_v39 = vpop.f32.mrb[87].mxu0 }
0x2405   :  { %v4914_v5 = vadd.f32 0.5, %v4913_v21 }
0x2407   :  { %v4915_v1 = vmax.f32 %v4914_v5, 0.0 }
0x2409   :  { %v4916_v54 = vmin.f32 %v4915_v1, 1.0 }
0x240a   :  { %v5013_v18 = vpop.f32.mrb[88].mxu0 }
0x240b   :  { %v5017_v3 = vmax.f32 %v5013_v18, 0.0  ;;  %v6717_v12 = vpop.f32.mrb[89].mxu0  ;;  %7561 = vpush %v4916_v54  ;;  %v4922_v53 = vrot.slane %v4916_v54, 1 }
0x240d   :  { %6727 = vmatmul.mubr.msk.f32.vlgmr.msra.gmra.mrb[76].mxu1 %vm1511_vm3, %v5017_v3  ;;  %7563 = vpush %v4922_v53 }
0x243c   :  { %s7562_s6 = spop %7561 }
0x243d   :  { %v4919_v33 = vstv %s7562_s6 }
0x243e   :  { %s7564_s12 = spop %7563  ;;  %v4921_v16 = vmul.f32 %v4919_v33, %v9804_v20  ;;  %v10167_v20 = vld [vmem:[#allocation41_spill] sm:$0xff] }
0x243f   :  { %v4924_v6 = vstv %s7564_s12  ;;  %v5109_v42 = vmul.f32 %v9685_v30, %v10167_v20 }
0x2440   :  { %v4926_v7 = vmul.f32 %v4924_v6, %v9800_v22  ;;  %v5112_v22 = vsub.f32 1.0, %v9687_v28 }
0x24e0   :  { %v5087_v27 = vpop.f32.mrb[76].mxu1 }
0x24e1   :  { %v5091_v10 = vmul.f32 0.16666667, %v5087_v27  ;;  %v6728_v29 = vpop.f32.mrb[77].mxu1 }
0x24e3   :  { %v5092_v62 = vadd.f32 0.5, %v5091_v10 }
0x24e5   :  { %v5093_v24 = vmax.f32 %v5092_v62, 0.0 }
0x24e7   :  { %v5094_v59 = vmin.f32 %v5093_v24, 1.0 }
0x24e9   :  { %7565 = vpush %v5094_v59  ;;  %v5100_v56 = vrot.slane %v5094_v59, 1 }
0x24eb   :  { %7567 = vpush %v5100_v56 }
0x251a   :  { %s7566_s13 = spop %7565 }
0x251b   :  { %v5097_v13 = vstv %s7566_s13 }
0x251c   :  { %v5099_v14 = vmul.f32 %v5097_v13, %v4747_v32  ;;  %s7568_s14 = spop %7567 }
0x251d   :  { %v5102_v9 = vstv %s7568_s14 }
0x251e   :  { %v5105_v41 = vadd.f32 %v5099_v14, %v4921_v16  ;;  %v5104_v11 = vmul.f32 %v5102_v9, %v4748_v34  ;;  %v5110_v34 = vmul.f32 %v9687_v28, %v10168_v60 }
0x2520   :  { %7641 = vtanh.f32 %v5105_v41  ;;  %v5106_v49 = vadd.f32 %v5104_v11, %v4926_v7 }
0x2522   :  { %7643 = vtanh.f32 %v5106_v49 }
0x252a   :  { %v7642_v17 = vpop.eup %7641 }
0x252b   :  { %5115 = vrot.lane.b32.xlu0 %v7642_v17, %s7706_s26 }
0x252c   :  { %v7644_v43 = vpop.eup %7643 }
0x252d   :  { %5117 = vrot.lane.b32.xlu1 %v7644_v43, %s7706_s26 }
0x259d   :  { %v5116_v31 = vpop.permute.xlu0 %5115 }
0x259e   :  { %v5121_v57 = vmul.f32 %v5116_v31, %v5111_v4 }
0x259f   :  { %v5118_v25 = vpop.permute.xlu1 %5117 }
0x25a0   :  { %v5123_v23 = vadd.f32 %v5121_v57, %v5109_v42  ;;  %v5122_v32 = vmul.f32 %v5118_v25, %v5112_v22 }
0x25a2   :  { %v5124_v38 = vadd.f32 %v5122_v32, %v5110_v34  ;;  %5127 = vrot.lane.b32.xlu0 %v5123_v23, %s7708_s11 }
0x25a4   :  { %5129 = vrot.lane.b32.xlu1 %v5124_v38, %s7708_s11 }
0x2614   :  { %v5128_v52 = vpop.permute.xlu0 %5127 }
0x2615   :  { %5287 = vst.msk [vmem:[%s9860_s7 + $0x20] sm:$0xff] %vm1511_vm3, %v5128_v52 }
0x2616   :  { %v5130_v30 = vpop.permute.xlu1 %5129 }
0x2617   :  { %5288 = vst.msk [vmem:[%s9860_s7 + $0x28] sm:$0xff] %vm1511_vm3, %v5130_v30 }

</bundles_post_ra>
